<compile_context>
chip_gen: v6e
topology: v6e:2x2x1
jax: 0.10.0
libtpu: 0.0.40
codegen_flags: <defaults>
</compile_context>

<pallas_src>
import numpy as np
import jax
import jax.numpy as jnp
from jax.experimental import pallas as pl
from jax.experimental.pallas import tpu as pltpu


# ----------------------------- host-side weight packing -----------------------------

_PARAM_ORDER = ["w0", "b0",
                "w11a", "b11a", "w11b", "b11b",
                "w21a", "b21a", "w21b", "b21b", "w21s", "b21s",
                "wl", "bl"]


def pack_params(params):
    """Pack all weights/biases into one (rows, 128) f32 slab with 8-aligned row offsets."""
    layout = {}
    blocks = []
    off = 0
    for name in _PARAM_ORDER:
        a = np.asarray(params[name], np.float32)
        if a.ndim == 3:                       # conv weight (k, Cin, Cout) -> (k*Cin, Cout)
            a = a.reshape(-1, a.shape[-1])
        rows, cols = a.shape
        rows_pad = ((rows + 7) // 8) * 8
        buf = np.zeros((rows_pad, 128), np.float32)
        buf[:rows, :cols] = a
        layout[name] = (off, rows, cols)
        blocks.append(buf)
        off += rows_pad
    slab = np.concatenate(blocks, axis=0)
    return jnp.asarray(slab), layout


# --------------------------------- kernel factory ------------------------------------

def make_resnet_kernel(layout, L, Cin, B, filters):
    f0, f1, f2 = filters
    M = B * L            # flattened rows at full resolution (sublane dim of the matmuls)
    M2 = M // 2
    L2 = L // 2

    def wslice(slab_ref, name):
        off, rows, cols = layout[name]
        return slab_ref[off:off + rows, 0:cols]

    def wfull(slab_ref, name):
        off, rows, _ = layout[name]
        return slab_ref[off:off + rows, :]

    def kernel(x_ref, slab_ref, out_ref):
        x = x_ref[...]                                              # (M, Cin) f32

        # ---- hoisted constants (built once per grid step, reused) ----
        row = jax.lax.broadcasted_iota(jnp.int32, (M, 1), 0)
        first_m = (row % L) == 0                                    # first row of each sample
        last_m = (row % L) == (L - 1)                               # last row of each sample
        row2 = jax.lax.broadcasted_iota(jnp.int32, (M2, 1), 0)
        first_m2 = (row2 % L2) == 0
        last_m2 = (row2 % L2) == (L2 - 1)
        r = jax.lax.broadcasted_iota(jnp.int32, (M2, M), 0)
        c = jax.lax.broadcasted_iota(jnp.int32, (M2, M), 1)
        sel_even = jnp.where(c == 2 * r, 1.0, 0.0).astype(jnp.bfloat16)   # (M2, M) even-row selector

        relu = lambda t: jnp.maximum(t, 0.0)

        def conv3(h, wname, bname, fmask, lmask):
            # "same" conv, k=3, stride=1, via im2col -> single MXU matmul.
            n = h.shape[0]
            w = wslice(slab_ref, wname).astype(jnp.bfloat16)        # (3*Cin_h, Cout)
            b = wslice(slab_ref, bname)                             # (1, Cout) f32
            hm1 = jnp.where(fmask, 0.0, pltpu.roll(h, shift=1, axis=0))      # h[l-1]
            hp1 = jnp.where(lmask, 0.0, pltpu.roll(h, shift=n - 1, axis=0))  # h[l+1]
            cols_ = jnp.concatenate([hm1, h, hp1], axis=-1).astype(jnp.bfloat16)
            o = jnp.dot(cols_, w, preferred_element_type=jnp.float32)
            return o + b

        def conv1(h, wname, bname):
            w = wslice(slab_ref, wname).astype(jnp.bfloat16)        # (Cin_h, Cout)
            b = wslice(slab_ref, bname)
            return jnp.dot(h.astype(jnp.bfloat16), w,
                           preferred_element_type=jnp.float32) + b

        def maxpool2(h):
            # MaxPool1d(2): VPU max of h and its +1-shifted copy, then compact even rows
            # with one selection matmul.  (Both pools in this net run at length M.)
            m = jnp.maximum(h, pltpu.roll(h, shift=M - 1, axis=0))  # m[r] = max(h[r], h[r+1])
            return jnp.dot(sel_even, m.astype(jnp.bfloat16),
                           preferred_element_type=jnp.float32)      # (M2, C)

        # ---- stem: conv1 + relu ----
        h = relu(conv3(x, "w0", "b0", first_m, last_m))             # (M, f0)

        # ---- stage 1: BasicBlock(in=f0, planes=f1, stride=1) -> identity shortcut ----
        o = relu(conv3(h, "w11a", "b11a", first_m, last_m))
        o = conv3(o, "w11b", "b11b", first_m, last_m)
        h = relu(o + h)                                             # (M, f1)

        # ---- stage 2: BasicBlock(in=f1, planes=f2, stride=2) -> projection shortcut ----
        o = conv3(h, "w21a", "b21a", first_m, last_m)               # conv1
        o = relu(maxpool2(o))                                       # pool1 + relu1
        o = conv3(o, "w21b", "b21b", first_m2, last_m2)             # conv2 (length M2)
        t = maxpool2(conv1(h, "w21s", "b21s"))                      # sconv (1x1) + smax
        h = relu(o + t)                                             # (M2, f2)

        # ---- postpool='max' over remaining length, flatten, linear (lane-dense out) ----
        feat = jnp.max(h.reshape(B, L2, f2), axis=1)                # (B, f2)
        wl = wfull(slab_ref, "wl").astype(jnp.bfloat16)             # (f2, 128), zero-padded cols
        bl = wfull(slab_ref, "bl")                                  # (1, 128)
        out_ref[...] = jnp.dot(feat.astype(jnp.bfloat16), wl,
                               preferred_element_type=jnp.float32) + bl

    return kernel


# ------------------------------------ wrapper ----------------------------------------

def resnet_forward(x, params, *, block_b=8):
    N, L, Cin = x.shape
    NC = int(params["bl"].shape[-1])
    f0 = int(params["w0"].shape[-1])
    f1 = int(params["w11b"].shape[-1])
    f2 = int(params["w21b"].shape[-1])

    slab, layout = pack_params(params)
    ROWS = int(slab.shape[0])

    nb = (N + block_b - 1) // block_b
    N_pad = nb * block_b
    xf = x
    if N_pad != N:
        xf = jnp.concatenate([x, jnp.zeros((N_pad - N, L, Cin), x.dtype)], axis=0)
    xf = xf.reshape(N_pad * L, Cin)          # samples contiguous along rows

    kernel = make_resnet_kernel(layout, L, Cin, block_b, (f0, f1, f2))

    M = block_b * L
    macs = (M * (3 * Cin) * f0              # stem
            + M * (3 * f0) * f1             # conv11a
            + M * (3 * f1) * f1             # conv11b
            + M * (3 * f1) * f2             # conv21a
            + (M // 2) * (3 * f2) * f2      # conv21b
            + M * f1 * f2                   # sconv (1x1)
            + 2 * ((M // 2) * M * f2)       # two pool-compaction matmuls
            + block_b * f2 * 128)           # linear (lane-padded)
    cost = pl.CostEstimate(
        flops=int(2 * macs * nb),
        transcendentals=0,
        bytes_accessed=int(xf.size * 4 + slab.size * 4 + N_pad * 128 * 4),
    )

    out = pl.pallas_call(
        kernel,
        out_shape=jax.ShapeDtypeStruct((N_pad, 128), jnp.float32),
        grid=(nb,),
        in_specs=[
            pl.BlockSpec((M, Cin), lambda i: (i, 0)),      # B samples (flattened rows)
            pl.BlockSpec((ROWS, 128), lambda i: (0, 0)),   # single packed weight slab
        ],
        out_specs=pl.BlockSpec((block_b, 128), lambda i: (i, 0)),   # lane-dense logits tile
        compiler_params=pltpu.CompilerParams(dimension_semantics=("parallel",)),
        cost_estimate=cost,
    )(xf, slab)
    return out[:N, :NC]


# ----------------------------- deterministic params ----------------------------------

def init_params(key, cin=4, f=(8, 8, 16), nc=5):
    ks = jax.random.split(key, 14)

    def conv_w(k_, kk, ci, co):
        return jax.random.normal(k_, (kk, ci, co), jnp.float32) * np.sqrt(2.0 / (kk * ci))

    def bias(k_, co):
        return jax.random.normal(k_, (1, co), jnp.float32) * 0.1

    p = {}
    p["w0"] = conv_w(ks[0], 3, cin, f[0]);    p["b0"] = bias(ks[1], f[0])
    p["w11a"] = conv_w(ks[2], 3, f[0], f[1]); p["b11a"] = bias(ks[3], f[1])
    p["w11b"] = conv_w(ks[4], 3, f[1], f[1]); p["b11b"] = bias(ks[5], f[1])
    p["w21a"] = conv_w(ks[6], 3, f[1], f[2]); p["b21a"] = bias(ks[7], f[2])
    p["w21b"] = conv_w(ks[8], 3, f[2], f[2]); p["b21b"] = bias(ks[9], f[2])
    p["w21s"] = conv_w(ks[10], 1, f[1], f[2]); p["b21s"] = bias(ks[11], f[2])
    p["wl"] = jax.random.normal(ks[12], (f[2], nc), jnp.float32) * np.sqrt(1.0 / f[2])
    p["bl"] = bias(ks[13], nc)
    return p


# ----------------------------- numpy reference (checking) ----------------------------

def _np_conv(x, w, b, pad):
    L, ci = x.shape
    k, _, co = w.shape
    Lout = L + 2 * pad - k + 1
    xp = np.zeros((L + 2 * pad, ci), np.float32)
    xp[pad:pad + L] = x
    out = np.zeros((Lout, co), np.float32)
    for l in range(Lout):
        for dk in range(k):
            out[l] += xp[l + dk] @ w[dk]
    return out + b


def _np_forward(x, p):
    relu = lambda a: np.maximum(a, 0.0)
    mp2 = lambda a: np.maximum(a[0::2], a[1::2])
    outs = []
    for n in range(x.shape[0]):
        h = relu(_np_conv(x[n], p["w0"], p["b0"], 1))
        o = relu(_np_conv(h, p["w11a"], p["b11a"], 1))
        o = _np_conv(o, p["w11b"], p["b11b"], 1)
        h = relu(o + h)
        o = _np_conv(h, p["w21a"], p["b21a"], 1)
        o = relu(mp2(o))
        o = _np_conv(o, p["w21b"], p["b21b"], 1)
        t = mp2(_np_conv(h, p["w21s"], p["b21s"], 0))
        h = relu(o + t)
        feat = h.max(axis=0, keepdims=True)
        outs.append(feat @ p["wl"] + p["bl"])
    return np.concatenate(outs, axis=0)


# ------------------------------------- main -------------------------------------------

if __name__ == "__main__":
    key = jax.random.PRNGKey(0)
    kx, kp = jax.random.split(key)

    N, L, Cin, NC = 16, 16, 4, 5            # batch=16 (2 grid blocks of 8), seq=16, ch=4, classes=5
    x = jax.random.normal(kx, (N, L, Cin), jnp.float32)
    params = init_params(kp, cin=Cin, nc=NC)

    out = jax.block_until_ready(resnet_forward(x, params, block_b=8))
    assert out.shape == (N, NC)

    ref = _np_forward(np.asarray(x), {k: np.asarray(v) for k, v in params.items()})
    np.testing.assert_allclose(np.asarray(out), ref, rtol=5e-2, atol=5e-2)

    print("KERNEL_OK")
</pallas_src>

<mosaic_0001>
module attributes {stable_mosaic.version = 11 : i64} {
  func.func @kernel(%arg0: i32, %arg1: memref<128x4xf32, #tpu.memory_space<vmem>>, %arg2: memref<216x128xf32, #tpu.memory_space<vmem>>, %arg3: memref<8x128xf32, #tpu.memory_space<vmem>>) attributes {dimension_semantics = [#tpu.dimension_semantics<parallel>], iteration_bounds = array<i64: 2>, scalar_prefetch = 0 : i64, scratch_operands = 0 : i64, tpu.core_type = #tpu.core_type<tc>, window_params = [{transform_indices = @transform_0, window_bounds = array<i64: 128, 4>}, {pipeline_mode = #tpu.pipeline_mode<synchronous>, transform_indices = @transform_1, window_bounds = array<i64: 216, 128>}, {transform_indices = @transform_2, window_bounds = array<i64: 8, 128>}]} {
    %c0 = arith.constant 0 : index
    %c0_0 = arith.constant 0 : index
    %0 = vector.load %arg1[%c0, %c0_0] : memref<128x4xf32, #tpu.memory_space<vmem>>, vector<128x4xf32>
    %1 = tpu.iota {dimensions = array<i32: 0>} : vector<128x1xi32>
    %c16_i32 = arith.constant 16 : i32
    %c0_i32 = arith.constant 0 : i32
    %2 = arith.cmpi eq, %c16_i32, %c0_i32 : i32
    %c1_i32 = arith.constant 1 : i32
    %3 = arith.select %2, %c1_i32, %c16_i32 : i32
    %4 = vector.broadcast %3 : i32 to vector<128x1xi32>
    %5 = arith.remsi %1, %4 : vector<128x1xi32>
    %c0_i32_1 = arith.constant 0 : i32
    %6 = vector.broadcast %c0_i32_1 : i32 to vector<128x1xi32>
    %7 = arith.cmpi ne, %5, %6 : vector<128x1xi32>
    %c0_i32_2 = arith.constant 0 : i32
    %8 = vector.broadcast %c0_i32_2 : i32 to vector<128x1xi32>
    %9 = arith.cmpi slt, %5, %8 : vector<128x1xi32>
    %c0_i32_3 = arith.constant 0 : i32
    %10 = arith.cmpi slt, %3, %c0_i32_3 : i32
    %11 = vector.broadcast %10 : i1 to vector<128x1xi1>
    %12 = vector.broadcast %11 : vector<128x1xi1> to vector<128x1xi1>
    %13 = arith.xori %9, %12 : vector<128x1xi1>
    %14 = arith.andi %13, %7 : vector<128x1xi1>
    %15 = vector.broadcast %3 : i32 to vector<128x1xi32>
    %16 = arith.addi %5, %15 : vector<128x1xi32>
    %17 = arith.select %14, %16, %5 : vector<128x1xi1>, vector<128x1xi32>
    %c0_i32_4 = arith.constant 0 : i32
    %18 = vector.broadcast %c0_i32_4 : i32 to vector<128x1xi32>
    %19 = arith.cmpi eq, %17, %18 : vector<128x1xi32>
    %c16_i32_5 = arith.constant 16 : i32
    %c0_i32_6 = arith.constant 0 : i32
    %20 = arith.cmpi eq, %c16_i32_5, %c0_i32_6 : i32
    %c1_i32_7 = arith.constant 1 : i32
    %21 = arith.select %20, %c1_i32_7, %c16_i32_5 : i32
    %22 = vector.broadcast %21 : i32 to vector<128x1xi32>
    %23 = arith.remsi %1, %22 : vector<128x1xi32>
    %c0_i32_8 = arith.constant 0 : i32
    %24 = vector.broadcast %c0_i32_8 : i32 to vector<128x1xi32>
    %25 = arith.cmpi ne, %23, %24 : vector<128x1xi32>
    %c0_i32_9 = arith.constant 0 : i32
    %26 = vector.broadcast %c0_i32_9 : i32 to vector<128x1xi32>
    %27 = arith.cmpi slt, %23, %26 : vector<128x1xi32>
    %c0_i32_10 = arith.constant 0 : i32
    %28 = arith.cmpi slt, %21, %c0_i32_10 : i32
    %29 = vector.broadcast %28 : i1 to vector<128x1xi1>
    %30 = vector.broadcast %29 : vector<128x1xi1> to vector<128x1xi1>
    %31 = arith.xori %27, %30 : vector<128x1xi1>
    %32 = arith.andi %31, %25 : vector<128x1xi1>
    %33 = vector.broadcast %21 : i32 to vector<128x1xi32>
    %34 = arith.addi %23, %33 : vector<128x1xi32>
    %35 = arith.select %32, %34, %23 : vector<128x1xi1>, vector<128x1xi32>
    %c15_i32 = arith.constant 15 : i32
    %36 = vector.broadcast %c15_i32 : i32 to vector<128x1xi32>
    %37 = arith.cmpi eq, %35, %36 : vector<128x1xi32>
    %38 = tpu.iota {dimensions = array<i32: 0>} : vector<64x1xi32>
    %c8_i32 = arith.constant 8 : i32
    %c0_i32_11 = arith.constant 0 : i32
    %39 = arith.cmpi eq, %c8_i32, %c0_i32_11 : i32
    %c1_i32_12 = arith.constant 1 : i32
    %40 = arith.select %39, %c1_i32_12, %c8_i32 : i32
    %41 = vector.broadcast %40 : i32 to vector<64x1xi32>
    %42 = arith.remsi %38, %41 : vector<64x1xi32>
    %c0_i32_13 = arith.constant 0 : i32
    %43 = vector.broadcast %c0_i32_13 : i32 to vector<64x1xi32>
    %44 = arith.cmpi ne, %42, %43 : vector<64x1xi32>
    %c0_i32_14 = arith.constant 0 : i32
    %45 = vector.broadcast %c0_i32_14 : i32 to vector<64x1xi32>
    %46 = arith.cmpi slt, %42, %45 : vector<64x1xi32>
    %c0_i32_15 = arith.constant 0 : i32
    %47 = arith.cmpi slt, %40, %c0_i32_15 : i32
    %48 = vector.broadcast %47 : i1 to vector<64x1xi1>
    %49 = vector.broadcast %48 : vector<64x1xi1> to vector<64x1xi1>
    %50 = arith.xori %46, %49 : vector<64x1xi1>
    %51 = arith.andi %50, %44 : vector<64x1xi1>
    %52 = vector.broadcast %40 : i32 to vector<64x1xi32>
    %53 = arith.addi %42, %52 : vector<64x1xi32>
    %54 = arith.select %51, %53, %42 : vector<64x1xi1>, vector<64x1xi32>
    %c0_i32_16 = arith.constant 0 : i32
    %55 = vector.broadcast %c0_i32_16 : i32 to vector<64x1xi32>
    %56 = arith.cmpi eq, %54, %55 : vector<64x1xi32>
    %c8_i32_17 = arith.constant 8 : i32
    %c0_i32_18 = arith.constant 0 : i32
    %57 = arith.cmpi eq, %c8_i32_17, %c0_i32_18 : i32
    %c1_i32_19 = arith.constant 1 : i32
    %58 = arith.select %57, %c1_i32_19, %c8_i32_17 : i32
    %59 = vector.broadcast %58 : i32 to vector<64x1xi32>
    %60 = arith.remsi %38, %59 : vector<64x1xi32>
    %c0_i32_20 = arith.constant 0 : i32
    %61 = vector.broadcast %c0_i32_20 : i32 to vector<64x1xi32>
    %62 = arith.cmpi ne, %60, %61 : vector<64x1xi32>
    %c0_i32_21 = arith.constant 0 : i32
    %63 = vector.broadcast %c0_i32_21 : i32 to vector<64x1xi32>
    %64 = arith.cmpi slt, %60, %63 : vector<64x1xi32>
    %c0_i32_22 = arith.constant 0 : i32
    %65 = arith.cmpi slt, %58, %c0_i32_22 : i32
    %66 = vector.broadcast %65 : i1 to vector<64x1xi1>
    %67 = vector.broadcast %66 : vector<64x1xi1> to vector<64x1xi1>
    %68 = arith.xori %64, %67 : vector<64x1xi1>
    %69 = arith.andi %68, %62 : vector<64x1xi1>
    %70 = vector.broadcast %58 : i32 to vector<64x1xi32>
    %71 = arith.addi %60, %70 : vector<64x1xi32>
    %72 = arith.select %69, %71, %60 : vector<64x1xi1>, vector<64x1xi32>
    %c7_i32 = arith.constant 7 : i32
    %73 = vector.broadcast %c7_i32 : i32 to vector<64x1xi32>
    %74 = arith.cmpi eq, %72, %73 : vector<64x1xi32>
    %75 = tpu.iota {dimensions = array<i32: 0>} : vector<64x128xi32>
    %76 = tpu.iota {dimensions = array<i32: 1>} : vector<64x128xi32>
    %c2_i32 = arith.constant 2 : i32
    %77 = vector.broadcast %c2_i32 : i32 to vector<64x128xi32>
    %78 = arith.muli %77, %75 : vector<64x128xi32>
    %79 = arith.cmpi eq, %76, %78 : vector<64x128xi32>
    %cst = arith.constant 1.000000e+00 : f32
    %cst_23 = arith.constant 0.000000e+00 : f32
    %80 = vector.broadcast %cst : f32 to vector<64x128xf32>
    %81 = vector.broadcast %cst_23 : f32 to vector<64x128xf32>
    %82 = arith.select %79, %80, %81 : vector<64x128xi1>, vector<64x128xf32>
    %83 = arith.truncf %82 : vector<64x128xf32> to vector<64x128xbf16>
    %c0_24 = arith.constant 0 : index
    %c0_25 = arith.constant 0 : index
    %84 = vector.load %arg2[%c0_24, %c0_25] : memref<216x128xf32, #tpu.memory_space<vmem>>, vector<12x8xf32>
    %85 = arith.truncf %84 : vector<12x8xf32> to vector<12x8xbf16>
    %c16 = arith.constant 16 : index
    %c0_26 = arith.constant 0 : index
    %86 = vector.load %arg2[%c16, %c0_26] : memref<216x128xf32, #tpu.memory_space<vmem>>, vector<1x8xf32>
    %c1_i32_27 = arith.constant 1 : i32
    %87 = tpu.dynamic_rotate %0 by %c1_i32_27 dim 0 : vector<128x4xf32>, i32 -> vector<128x4xf32>
    %cst_28 = arith.constant 0.000000e+00 : f32
    %88 = vector.shape_cast %19 : vector<128x1xi1> to vector<128x1xi1>
    %89 = vector.broadcast %88 : vector<128x1xi1> to vector<128x4xi1>
    %90 = vector.broadcast %cst_28 : f32 to vector<128x4xf32>
    %91 = arith.select %89, %90, %87 : vector<128x4xi1>, vector<128x4xf32>
    %c127_i32 = arith.constant 127 : i32
    %92 = tpu.dynamic_rotate %0 by %c127_i32 dim 0 : vector<128x4xf32>, i32 -> vector<128x4xf32>
    %cst_29 = arith.constant 0.000000e+00 : f32
    %93 = vector.shape_cast %37 : vector<128x1xi1> to vector<128x1xi1>
    %94 = vector.broadcast %93 : vector<128x1xi1> to vector<128x4xi1>
    %95 = vector.broadcast %cst_29 : f32 to vector<128x4xf32>
    %96 = arith.select %94, %95, %92 : vector<128x4xi1>, vector<128x4xf32>
    %97 = tpu.concatenate %91, %0, %96 in 1 : vector<128x4xf32>, vector<128x4xf32>, vector<128x4xf32> -> vector<128x12xf32>
    %98 = arith.truncf %97 : vector<128x12xf32> to vector<128x12xbf16>
    %cst_30 = arith.constant dense<0.000000e+00> : vector<128x8xf32>
    %99 = tpu.matmul %98, %85, %cst_30 {dimension_numbers = #tpu.dot_dimension_numbers<[1], [0], [0], [1], [0, 0, 1, 1], [], []>} : vector<128x12xbf16>, vector<12x8xbf16>, vector<128x8xf32> -> vector<128x8xf32>
    %100 = vector.broadcast %86 : vector<1x8xf32> to vector<128x8xf32>
    %101 = arith.addf %99, %100 : vector<128x8xf32>
    %cst_31 = arith.constant 0.000000e+00 : f32
    %102 = vector.broadcast %cst_31 : f32 to vector<128x8xf32>
    %103 = arith.maximumf %101, %102 : vector<128x8xf32>
    %c24 = arith.constant 24 : index
    %c0_32 = arith.constant 0 : index
    %104 = vector.load %arg2[%c24, %c0_32] : memref<216x128xf32, #tpu.memory_space<vmem>>, vector<24x8xf32>
    %105 = arith.truncf %104 : vector<24x8xf32> to vector<24x8xbf16>
    %c48 = arith.constant 48 : index
    %c0_33 = arith.constant 0 : index
    %106 = vector.load %arg2[%c48, %c0_33] : memref<216x128xf32, #tpu.memory_space<vmem>>, vector<1x8xf32>
    %c1_i32_34 = arith.constant 1 : i32
    %107 = tpu.dynamic_rotate %103 by %c1_i32_34 dim 0 : vector<128x8xf32>, i32 -> vector<128x8xf32>
    %cst_35 = arith.constant 0.000000e+00 : f32
    %108 = vector.shape_cast %19 : vector<128x1xi1> to vector<128x1xi1>
    %109 = vector.broadcast %108 : vector<128x1xi1> to vector<128x8xi1>
    %110 = vector.broadcast %cst_35 : f32 to vector<128x8xf32>
    %111 = arith.select %109, %110, %107 : vector<128x8xi1>, vector<128x8xf32>
    %c127_i32_36 = arith.constant 127 : i32
    %112 = tpu.dynamic_rotate %103 by %c127_i32_36 dim 0 : vector<128x8xf32>, i32 -> vector<128x8xf32>
    %cst_37 = arith.constant 0.000000e+00 : f32
    %113 = vector.shape_cast %37 : vector<128x1xi1> to vector<128x1xi1>
    %114 = vector.broadcast %113 : vector<128x1xi1> to vector<128x8xi1>
    %115 = vector.broadcast %cst_37 : f32 to vector<128x8xf32>
    %116 = arith.select %114, %115, %112 : vector<128x8xi1>, vector<128x8xf32>
    %117 = tpu.concatenate %111, %103, %116 in 1 : vector<128x8xf32>, vector<128x8xf32>, vector<128x8xf32> -> vector<128x24xf32>
    %118 = arith.truncf %117 : vector<128x24xf32> to vector<128x24xbf16>
    %cst_38 = arith.constant dense<0.000000e+00> : vector<128x8xf32>
    %119 = tpu.matmul %118, %105, %cst_38 {dimension_numbers = #tpu.dot_dimension_numbers<[1], [0], [0], [1], [0, 0, 1, 1], [], []>} : vector<128x24xbf16>, vector<24x8xbf16>, vector<128x8xf32> -> vector<128x8xf32>
    %120 = vector.broadcast %106 : vector<1x8xf32> to vector<128x8xf32>
    %121 = arith.addf %119, %120 : vector<128x8xf32>
    %cst_39 = arith.constant 0.000000e+00 : f32
    %122 = vector.broadcast %cst_39 : f32 to vector<128x8xf32>
    %123 = arith.maximumf %121, %122 : vector<128x8xf32>
    %c56 = arith.constant 56 : index
    %c0_40 = arith.constant 0 : index
    %124 = vector.load %arg2[%c56, %c0_40] : memref<216x128xf32, #tpu.memory_space<vmem>>, vector<24x8xf32>
    %125 = arith.truncf %124 : vector<24x8xf32> to vector<24x8xbf16>
    %c80 = arith.constant 80 : index
    %c0_41 = arith.constant 0 : index
    %126 = vector.load %arg2[%c80, %c0_41] : memref<216x128xf32, #tpu.memory_space<vmem>>, vector<1x8xf32>
    %c1_i32_42 = arith.constant 1 : i32
    %127 = tpu.dynamic_rotate %123 by %c1_i32_42 dim 0 : vector<128x8xf32>, i32 -> vector<128x8xf32>
    %cst_43 = arith.constant 0.000000e+00 : f32
    %128 = vector.shape_cast %19 : vector<128x1xi1> to vector<128x1xi1>
    %129 = vector.broadcast %128 : vector<128x1xi1> to vector<128x8xi1>
    %130 = vector.broadcast %cst_43 : f32 to vector<128x8xf32>
    %131 = arith.select %129, %130, %127 : vector<128x8xi1>, vector<128x8xf32>
    %c127_i32_44 = arith.constant 127 : i32
    %132 = tpu.dynamic_rotate %123 by %c127_i32_44 dim 0 : vector<128x8xf32>, i32 -> vector<128x8xf32>
    %cst_45 = arith.constant 0.000000e+00 : f32
    %133 = vector.shape_cast %37 : vector<128x1xi1> to vector<128x1xi1>
    %134 = vector.broadcast %133 : vector<128x1xi1> to vector<128x8xi1>
    %135 = vector.broadcast %cst_45 : f32 to vector<128x8xf32>
    %136 = arith.select %134, %135, %132 : vector<128x8xi1>, vector<128x8xf32>
    %137 = tpu.concatenate %131, %123, %136 in 1 : vector<128x8xf32>, vector<128x8xf32>, vector<128x8xf32> -> vector<128x24xf32>
    %138 = arith.truncf %137 : vector<128x24xf32> to vector<128x24xbf16>
    %cst_46 = arith.constant dense<0.000000e+00> : vector<128x8xf32>
    %139 = tpu.matmul %138, %125, %cst_46 {dimension_numbers = #tpu.dot_dimension_numbers<[1], [0], [0], [1], [0, 0, 1, 1], [], []>} : vector<128x24xbf16>, vector<24x8xbf16>, vector<128x8xf32> -> vector<128x8xf32>
    %140 = vector.broadcast %126 : vector<1x8xf32> to vector<128x8xf32>
    %141 = arith.addf %139, %140 : vector<128x8xf32>
    %142 = arith.addf %141, %103 : vector<128x8xf32>
    %cst_47 = arith.constant 0.000000e+00 : f32
    %143 = vector.broadcast %cst_47 : f32 to vector<128x8xf32>
    %144 = arith.maximumf %142, %143 : vector<128x8xf32>
    %c88 = arith.constant 88 : index
    %c0_48 = arith.constant 0 : index
    %145 = vector.load %arg2[%c88, %c0_48] : memref<216x128xf32, #tpu.memory_space<vmem>>, vector<24x16xf32>
    %146 = arith.truncf %145 : vector<24x16xf32> to vector<24x16xbf16>
    %c112 = arith.constant 112 : index
    %c0_49 = arith.constant 0 : index
    %147 = vector.load %arg2[%c112, %c0_49] : memref<216x128xf32, #tpu.memory_space<vmem>>, vector<1x16xf32>
    %c1_i32_50 = arith.constant 1 : i32
    %148 = tpu.dynamic_rotate %144 by %c1_i32_50 dim 0 : vector<128x8xf32>, i32 -> vector<128x8xf32>
    %cst_51 = arith.constant 0.000000e+00 : f32
    %149 = vector.shape_cast %19 : vector<128x1xi1> to vector<128x1xi1>
    %150 = vector.broadcast %149 : vector<128x1xi1> to vector<128x8xi1>
    %151 = vector.broadcast %cst_51 : f32 to vector<128x8xf32>
    %152 = arith.select %150, %151, %148 : vector<128x8xi1>, vector<128x8xf32>
    %c127_i32_52 = arith.constant 127 : i32
    %153 = tpu.dynamic_rotate %144 by %c127_i32_52 dim 0 : vector<128x8xf32>, i32 -> vector<128x8xf32>
    %cst_53 = arith.constant 0.000000e+00 : f32
    %154 = vector.shape_cast %37 : vector<128x1xi1> to vector<128x1xi1>
    %155 = vector.broadcast %154 : vector<128x1xi1> to vector<128x8xi1>
    %156 = vector.broadcast %cst_53 : f32 to vector<128x8xf32>
    %157 = arith.select %155, %156, %153 : vector<128x8xi1>, vector<128x8xf32>
    %158 = tpu.concatenate %152, %144, %157 in 1 : vector<128x8xf32>, vector<128x8xf32>, vector<128x8xf32> -> vector<128x24xf32>
    %159 = arith.truncf %158 : vector<128x24xf32> to vector<128x24xbf16>
    %cst_54 = arith.constant dense<0.000000e+00> : vector<128x16xf32>
    %160 = tpu.matmul %159, %146, %cst_54 {dimension_numbers = #tpu.dot_dimension_numbers<[1], [0], [0], [1], [0, 0, 1, 1], [], []>} : vector<128x24xbf16>, vector<24x16xbf16>, vector<128x16xf32> -> vector<128x16xf32>
    %161 = vector.broadcast %147 : vector<1x16xf32> to vector<128x16xf32>
    %162 = arith.addf %160, %161 : vector<128x16xf32>
    %c127_i32_55 = arith.constant 127 : i32
    %163 = tpu.dynamic_rotate %162 by %c127_i32_55 dim 0 : vector<128x16xf32>, i32 -> vector<128x16xf32>
    %164 = arith.maximumf %162, %163 : vector<128x16xf32>
    %165 = arith.truncf %164 : vector<128x16xf32> to vector<128x16xbf16>
    %cst_56 = arith.constant dense<0.000000e+00> : vector<64x16xf32>
    %166 = tpu.matmul %83, %165, %cst_56 {dimension_numbers = #tpu.dot_dimension_numbers<[1], [0], [0], [1], [0, 0, 1, 1], [], []>} : vector<64x128xbf16>, vector<128x16xbf16>, vector<64x16xf32> -> vector<64x16xf32>
    %cst_57 = arith.constant 0.000000e+00 : f32
    %167 = vector.broadcast %cst_57 : f32 to vector<64x16xf32>
    %168 = arith.maximumf %166, %167 : vector<64x16xf32>
    %c120 = arith.constant 120 : index
    %c0_58 = arith.constant 0 : index
    %169 = vector.load %arg2[%c120, %c0_58] : memref<216x128xf32, #tpu.memory_space<vmem>>, vector<48x16xf32>
    %170 = arith.truncf %169 : vector<48x16xf32> to vector<48x16xbf16>
    %c168 = arith.constant 168 : index
    %c0_59 = arith.constant 0 : index
    %171 = vector.load %arg2[%c168, %c0_59] : memref<216x128xf32, #tpu.memory_space<vmem>>, vector<1x16xf32>
    %c1_i32_60 = arith.constant 1 : i32
    %172 = tpu.dynamic_rotate %168 by %c1_i32_60 dim 0 : vector<64x16xf32>, i32 -> vector<64x16xf32>
    %cst_61 = arith.constant 0.000000e+00 : f32
    %173 = vector.shape_cast %56 : vector<64x1xi1> to vector<64x1xi1>
    %174 = vector.broadcast %173 : vector<64x1xi1> to vector<64x16xi1>
    %175 = vector.broadcast %cst_61 : f32 to vector<64x16xf32>
    %176 = arith.select %174, %175, %172 : vector<64x16xi1>, vector<64x16xf32>
    %c63_i32 = arith.constant 63 : i32
    %177 = tpu.dynamic_rotate %168 by %c63_i32 dim 0 : vector<64x16xf32>, i32 -> vector<64x16xf32>
    %cst_62 = arith.constant 0.000000e+00 : f32
    %178 = vector.shape_cast %74 : vector<64x1xi1> to vector<64x1xi1>
    %179 = vector.broadcast %178 : vector<64x1xi1> to vector<64x16xi1>
    %180 = vector.broadcast %cst_62 : f32 to vector<64x16xf32>
    %181 = arith.select %179, %180, %177 : vector<64x16xi1>, vector<64x16xf32>
    %182 = tpu.concatenate %176, %168, %181 in 1 : vector<64x16xf32>, vector<64x16xf32>, vector<64x16xf32> -> vector<64x48xf32>
    %183 = arith.truncf %182 : vector<64x48xf32> to vector<64x48xbf16>
    %cst_63 = arith.constant dense<0.000000e+00> : vector<64x16xf32>
    %184 = tpu.matmul %183, %170, %cst_63 {dimension_numbers = #tpu.dot_dimension_numbers<[1], [0], [0], [1], [0, 0, 1, 1], [], []>} : vector<64x48xbf16>, vector<48x16xbf16>, vector<64x16xf32> -> vector<64x16xf32>
    %185 = vector.broadcast %171 : vector<1x16xf32> to vector<64x16xf32>
    %186 = arith.addf %184, %185 : vector<64x16xf32>
    %c176 = arith.constant 176 : index
    %c0_64 = arith.constant 0 : index
    %187 = vector.load %arg2[%c176, %c0_64] : memref<216x128xf32, #tpu.memory_space<vmem>>, vector<8x16xf32>
    %188 = arith.truncf %187 : vector<8x16xf32> to vector<8x16xbf16>
    %c184 = arith.constant 184 : index
    %c0_65 = arith.constant 0 : index
    %189 = vector.load %arg2[%c184, %c0_65] : memref<216x128xf32, #tpu.memory_space<vmem>>, vector<1x16xf32>
    %190 = arith.truncf %144 : vector<128x8xf32> to vector<128x8xbf16>
    %cst_66 = arith.constant dense<0.000000e+00> : vector<128x16xf32>
    %191 = tpu.matmul %190, %188, %cst_66 {dimension_numbers = #tpu.dot_dimension_numbers<[1], [0], [0], [1], [0, 0, 1, 1], [], []>} : vector<128x8xbf16>, vector<8x16xbf16>, vector<128x16xf32> -> vector<128x16xf32>
    %192 = vector.broadcast %189 : vector<1x16xf32> to vector<128x16xf32>
    %193 = arith.addf %191, %192 : vector<128x16xf32>
    %c127_i32_67 = arith.constant 127 : i32
    %194 = tpu.dynamic_rotate %193 by %c127_i32_67 dim 0 : vector<128x16xf32>, i32 -> vector<128x16xf32>
    %195 = arith.maximumf %193, %194 : vector<128x16xf32>
    %196 = arith.truncf %195 : vector<128x16xf32> to vector<128x16xbf16>
    %cst_68 = arith.constant dense<0.000000e+00> : vector<64x16xf32>
    %197 = tpu.matmul %83, %196, %cst_68 {dimension_numbers = #tpu.dot_dimension_numbers<[1], [0], [0], [1], [0, 0, 1, 1], [], []>} : vector<64x128xbf16>, vector<128x16xbf16>, vector<64x16xf32> -> vector<64x16xf32>
    %198 = arith.addf %186, %197 : vector<64x16xf32>
    %cst_69 = arith.constant 0.000000e+00 : f32
    %199 = vector.broadcast %cst_69 : f32 to vector<64x16xf32>
    %200 = arith.maximumf %198, %199 : vector<64x16xf32>
    %201 = vector.shape_cast %200 : vector<64x16xf32> to vector<8x8x16xf32>
    %cst_70 = arith.constant dense<0xFF800000> : vector<8x16xf32>
    %202 = vector.multi_reduction <maximumf>, %201, %cst_70 [1] : vector<8x8x16xf32> to vector<8x16xf32>
    %c192 = arith.constant 192 : index
    %c0_71 = arith.constant 0 : index
    %203 = vector.load %arg2[%c192, %c0_71] : memref<216x128xf32, #tpu.memory_space<vmem>>, vector<16x128xf32>
    %204 = arith.truncf %203 : vector<16x128xf32> to vector<16x128xbf16>
    %c208 = arith.constant 208 : index
    %c0_72 = arith.constant 0 : index
    %205 = vector.load %arg2[%c208, %c0_72] : memref<216x128xf32, #tpu.memory_space<vmem>>, vector<1x128xf32>
    %206 = arith.truncf %202 : vector<8x16xf32> to vector<8x16xbf16>
    %cst_73 = arith.constant dense<0.000000e+00> : vector<8x128xf32>
    %207 = tpu.matmul %206, %204, %cst_73 {dimension_numbers = #tpu.dot_dimension_numbers<[1], [0], [0], [1], [0, 0, 1, 1], [], []>} : vector<8x16xbf16>, vector<16x128xbf16>, vector<8x128xf32> -> vector<8x128xf32>
    %208 = vector.broadcast %205 : vector<1x128xf32> to vector<8x128xf32>
    %209 = arith.addf %207, %208 : vector<8x128xf32>
    %c0_74 = arith.constant 0 : index
    %c0_75 = arith.constant 0 : index
    %210 = vector.load %arg3[%c0_74, %c0_75] : memref<8x128xf32, #tpu.memory_space<vmem>>, vector<8x128xf32>
    tpu.vector_store %arg3[%c0_74, %c0_75], %209 {strides = array<i32>} : memref<8x128xf32, #tpu.memory_space<vmem>>, vector<8x128xf32>,
    return
  }
  func.func @transform_0(%arg0: i32) -> (i32, i32) {
    %c0_i32 = arith.constant 0 : i32
    %c0_i32_0 = arith.constant 0 : i32
    return %arg0, %c0_i32 : i32, i32
  }
  func.func @transform_1(%arg0: i32) -> (i32, i32) {
    %c0_i32 = arith.constant 0 : i32
    %c0_i32_0 = arith.constant 0 : i32
    %c0_i32_1 = arith.constant 0 : i32
    return %c0_i32, %c0_i32_0 : i32, i32
  }
  func.func @transform_2(%arg0: i32) -> (i32, i32) {
    %c0_i32 = arith.constant 0 : i32
    %c0_i32_0 = arith.constant 0 : i32
    return %arg0, %c0_i32 : i32, i32
  }
}

</mosaic_0001>

<bundles_post_ra>
// kernel: tpu_custom_call.1
= control target key start
LH: loop header
LB: loop body
LE: loop exit
PB: predicated region body
PF: predicated region fallthrough
CT: control target
= control target key end

     0   :  { %7 = vsyncpa [#allocation3], 0  ;;  %s5928_s0 = inlined_call_operand.vmem [shape: f32[256,4], index: 0, kind: input, shape index: {}]   ;;  %s5929_s1 = inlined_call_operand.vmem [shape: f32[216,128], index: 1, kind: input, shape index: {}]   ;;  %s5930_s2 = inlined_call_operand.hbm [shape: f32[16,128], index: 2, kind: output, shape index: {}]  }
   0x1   :  { %9 = vsyncpa [#allocation3 + $0x1], 0  ;;  %s3973_s9 = smov 0   ;;  %s3975_s10 = smov 0  }
   0x2   :  { %s3977_s11 = smov 0   ;;  %s3979_s12 = smov 0  }
   0x3 LB: > { %s3994_s13 = sadd.s32 4294967295, %s3948_s12   ;;  %s3153_s14 = sadd.s32 4294967294, %s3948_s12   ;;  %s3948_s12 = sphi %s3979_s12, %s6406_s12   ;;  %s3944_s11 = sphi %s3977_s11, %s6405_s11   ;;  %s3940_s10 = sphi %s3975_s10, %s6404_s10   ;;  %s3936_s9 = sphi %s3973_s9, %s6403_s9  }
   0x4   : > { %s3998_s15 = sadd.s32 1, %s3948_s12   ;;  %s69_s16 = sadd.s32 1, %s3944_s11 }
   0x5   : > { %s66_s17 = ssub.s32 %s3948_s12, %s3998_s15  ;;  %p79_p0 = scmp.ne.s32.totalorder %s3944_s11, %s3940_s10 }
   0x6   : > { %p67_p1 = scmp.eq.s32.totalorder %s66_s17, 0  ;;  %p80_p2 = scmp.eq.s32.totalorder %s3994_s13, 1 }
   0x7   : > { %p85_p3 = scmp.ne.s32.totalorder %s3940_s10, %s3936_s9  ;;  %p86_p4 = scmp.eq.s32.totalorder %s3153_s14, 1 }
   0x8   : > { %s4009_s18 = scalar_select %p67_p1, %s3944_s11, %s69_s16  }
   0x9   : > { %p4011_p5 = por %p80_p2, %p79_p0  ;;  %p4015_p6 = por %p86_p4, %p85_p3 }
   0xa   : > { %p3156_p7 = scmp.ge.s32.totalorder %s3948_s12, 1  ;;  %p116_p8 = scmp.lt.s32.totalorder %s3948_s12, 3 }
   0xc   : > { %p117_p9 = pnand %p3156_p7, %p116_p8 }
   0xe   : > { %120 = sbr.rel (%p117_p9) target bundleno = 2231 (0x8b7), region = 28 }
  0x13   : > { %s3158_s21 = sshll.u32 %s3994_s13, 4  ;;  %v5948_v0 = vlaneseq  ;;  %s3950_s26 = smov 4   ;;  %v6004_v33 = vmov 0  ;;  %v544_v54 = vld [vmem:[%s5929_s1] sm:$0xff]  ;;  %v545_v55 = vld [vmem:[%s5929_s1 + $0x8] sm:$0xf] }
  0x14   : > { %p139_p10 = scmp.lt.s32.totalorder %s3158_s21, 31  ;;  %s3951_s27 = smov 8   ;;  %vm909_vm9 = vcmask 1045504   ;;  %vm5936_vm12 = vcmask 31744   ;;  %vm5939_vm15 = vcmask 64512  }
  0x15   : > { %v4023_v1 = vshrl.u32 %v5948_v0, 7  ;;  %s3229_s3 = sshll.u32 %s3994_s13, 7  ;;  %s3957_s13 = smov [#allocation2]  }
  0x16   : > { %s6408_s21 = smov (!%p139_p10, %s3158_s21), 31  ;;  %s5887_s8 = scalar_lea.hbm %s5930_s2, %s3229_s3 }
  0x17   : > { %v4026_v2 = vadd.s32 8, %v4023_v1  ;;  %v4029_v3 = vadd.s32 24, %v4023_v1  ;;  %s3159_s22 = sshll.u32 %s6408_s21, 3  ;;  %v4032_v4 = vadd.s32 40, %v4023_v1  ;;  %vm5932_vm0 = vcmp.lt.s32.totalorder %v4023_v1, 7  ;;  %s3952_s21 = smov 16  }
  0x18   : > { %s4037_s25 = scalar_lea.vmem %s5928_s0, %s3159_s22  ;;  %v4078_v22 = vadd.s32 56, %v4023_v1  ;;  %v171_v25 = vadd.s32 72, %v4023_v1  ;;  %v4097_v30 = vadd.s32 88, %v4023_v1  ;;  %v175_v59 = vadd.s32 104, %v4023_v1 }
  0x19   : > { %5996 = vst [vmem:[#allocation5_spill] sm:$0xff] %v4026_v2  ;;  %5997 = vst [vmem:[#allocation6_spill] sm:$0xff] %v4029_v3  ;;  %v189_v5 = vand.u32 15, %v4026_v2  ;;  %v4041_v6 = vld [vmem:[%s4037_s25] sm:$0xff]  ;;  %v4044_v7 = vld [vmem:[%s4037_s25 + $0x8] sm:$0xff]  ;;  %v203_v13 = vand.u32 15, %v4029_v3 }
  0x1a   : > { %5998 = vst [vmem:[#allocation7_spill] sm:$0xff] %v4032_v4  ;;  %v4047_v8 = vld [vmem:[%s4037_s25 + $0x10] sm:$0xff]  ;;  %v630_v9 = vrot.slane %v4044_v7, 1  ;;  %v3528_v10 = vpack.i.bf16 %v4044_v7, %v4041_v6  ;;  %v4053_v11 = vld [vmem:[%s4037_s25 + $0x18] sm:$0xff]  ;;  %v4057_v12 = vld [vmem:[%s4037_s25 + $0x28] sm:$0xff]  ;;  %v629_v14 = vrot.slane %v4041_v6, 1 }
  0x1b   : > { %v632_v15 = vrot.slane %v4053_v11, 1  ;;  %v4063_v16 = vld [vmem:[%s4037_s25 + $0x20] sm:$0xff]  ;;  %v217_v17 = vand.u32 15, %v4032_v4  ;;  %v3533_v18 = vpack.i.bf16 %v4053_v11, %v4047_v8  ;;  %vm4069_vm1 = vcmp.eq.s32.totalorder %v189_v5, 15  ;;  %v4075_v21 = vld [vmem:[%s4037_s25 + $0x30] sm:$0xff]  ;;  %6001 = vst [vmem:[#allocation8_spill] sm:$0xff] %v4078_v22 }
  0x1c   : > { %3529 = vrot.lane.b32.xlu0 %v3528_v10, %s3950_s26  ;;  %v631_v20 = vrot.slane %v4047_v8, 1  ;;  %v660_v23 = vsel %vm5932_vm0, %v629_v14, %v630_v9  ;;  %v634_v24 = vrot.slane %v4057_v12, 1  ;;  %v633_v27 = vrot.slane %v4063_v16, 1  ;;  %v4094_v29 = vld [vmem:[%s4037_s25 + $0x38] sm:$0xff]  ;;  %v4109_v35 = vld [vmem:[%s4037_s25 + $0x48] sm:$0xff]  ;;  %v4117_v39 = vld [vmem:[%s4037_s25 + $0x40] sm:$0xff] }
  0x1d   : > { %vm4089_vm2 = vcmp.eq.s32.totalorder %v203_v13, 15  ;;  %vm4103_vm3 = vcmp.eq.s32.totalorder %v217_v17, 15  ;;  %v635_v34 = vrot.slane %v4075_v21, 1  ;;  %v3538_v37 = vpack.i.bf16 %v4057_v12, %v4063_v16  ;;  %v4128_v45 = vld [vmem:[%s4037_s25 + $0x50] sm:$0xff]  ;;  %v4150_v57 = vld [vmem:[%s4037_s25 + $0x58] sm:$0xff]  ;;  %v4153_v58 = vld [vmem:[%s4037_s25 + $0x60] sm:$0xff] }
  0x1e   : > { %v659_v26 = vsel %vm5932_vm0, %v630_v9, %v631_v20  ;;  %v658_v32 = vsel %vm5932_vm0, %v631_v20, %v632_v15  ;;  %v6005_v33 = vsel %vm4103_vm3, 4294967295, %v6004_v33  ;;  %v657_v38 = vsel %vm5932_vm0, %v632_v15, %v633_v27  ;;  %v4175_v15 = vld [vmem:[%s4037_s25 + $0x68] sm:$0xff]  ;;  %v4178_v17 = vld [vmem:[%s4037_s25 + $0x70] sm:$0xff] }
  0x1f   : > { %v695_v31 = vsel %vm4069_vm1, 0.0, %v659_v26  ;;  %6006 = vst [vmem:[#allocation9_spill] sm:$0xff] %v6005_v33  ;;  %v231_v40 = vand.u32 15, %v4078_v22  ;;  %v697_v41 = vsel %vm4089_vm2, 0.0, %v657_v38  ;;  %v655_v42 = vsel %vm5932_vm0, %v634_v24, %v635_v34 }
  0x20   : > { %3534 = vrot.lane.b32.xlu0 %v3533_v18, %s3950_s26  ;;  %v3543_v36 = vpack.i.bf16 %v695_v31, %v660_v23  ;;  %v656_v43 = vsel %vm5932_vm0, %v633_v27, %v634_v24  ;;  %v636_v44 = vrot.slane %v4094_v29, 1  ;;  %v3548_v46 = vpack.i.bf16 %v697_v41, %v658_v32 }
  0x21   : > { %v699_v47 = vsel %vm4103_vm3, 0.0, %v655_v42  ;;  %v638_v48 = vrot.slane %v4109_v35, 1  ;;  %v245_v49 = vand.u32 15, %v171_v25  ;;  %v637_v50 = vrot.slane %v4117_v39, 1 }
  0x22   : > { %3544 = vrot.lane.b32.xlu1 %v3543_v36, %s3951_s27  ;;  %v3558_v51 = vpack.i.bf16 %v699_v47, %v656_v43  ;;  %vm4136_vm4 = vcmp.eq.s32.totalorder %v231_v40, 15  ;;  %v639_v53 = vrot.slane %v4128_v45, 1  ;;  %v4157_v60 = vadd.s32 120, %v4023_v1 }
  0x23   : > { %v653_v56 = vsel %vm5932_vm0, %v636_v44, %v637_v50  ;;  %v3553_v61 = vpack.i.bf16 %v4094_v29, %v4075_v21  ;;  %vm4162_vm5 = vcmp.eq.s32.totalorder %v245_v49, 15  ;;  %v259_v5 = vand.u32 15, %v4097_v30 }
  0x24   : > { %3539 = vrot.lane.b32.xlu0 %v3538_v37, %s3950_s26  ;;  %v651_v63 = vsel %vm5932_vm0, %v638_v48, %v639_v53  ;;  %v549_v9 = vrot.slane %v4044_v7, 7  ;;  %v654_v10 = vsel %vm5932_vm0, %v635_v34, %v636_v44  ;;  %v701_v13 = vsel %vm4136_vm4, 0.0, %v653_v56  ;;  %v160_v44 = vld [vmem:[%s4037_s25 + $0x78] sm:$0xff] }
  0x25   : > { %v546_v18 = vpack.c.bf16 %v545_v55, %v544_v54  ;;  %v548_v20 = vrot.slane %v4041_v6, 7  ;;  %v3563_v23 = vpack.i.bf16 %v4109_v35, %v4117_v39  ;;  %v640_v7 = vrot.slane %v4150_v57, 1 }
  0x26   : > { %3549 = vrot.lane.b32.xlu1 %v3548_v46, %s3951_s27  ;;  %v641_v24 = vrot.slane %v4153_v58, 1  ;;  %v551_v25 = vrot.slane %v4053_v11, 7  ;;  %v550_v26 = vrot.slane %v4047_v8, 7  ;;  %v652_v27 = vsel %vm5932_vm0, %v637_v50, %v638_v48 }
  0x27   : > { %v703_v30 = vsel %vm4162_vm5, 0.0, %v651_v63  ;;  %v3568_v31 = vpack.i.bf16 %v701_v13, %v654_v10  ;;  %v642_v32 = vrot.slane %v4175_v15, 1  ;;  %v273_v34 = vand.u32 15, %v175_v59  ;;  %3477 = vmatprep.subr.msk.bf16.mxu0 %vm909_vm9, %v546_v18 }
  0x28   : > { %3559 = vrot.lane.b32.xlu0 %v3558_v51, %s3951_s27  ;;  %v643_v36 = vrot.slane %v4178_v17, 1  ;;  %v553_v37 = vrot.slane %v4057_v12, 7  ;;  %v552_v11 = vrot.slane %v4063_v16, 7  ;;  %v555_v8 = vrot.slane %v4094_v29, 7 }
  0x29   : > { %v557_v38 = vrot.slane %v4109_v35, 7  ;;  %v556_v40 = vrot.slane %v4117_v39, 7  ;;  %v3578_v41 = vpack.i.bf16 %v703_v30, %v652_v27  ;;  %vm4201_vm6 = vcmp.eq.s32.totalorder %v259_v5, 15 }
  0x2a   : > { %3554 = vrot.lane.b32.xlu1 %v3553_v61, %s3950_s26  ;;  %v649_v43 = vsel %vm5932_vm0, %v640_v7, %v641_v24  ;;  %v3573_v12 = vpack.i.bf16 %v4150_v57, %v4128_v45  ;;  %v650_v16 = vsel %vm5932_vm0, %v639_v53, %v640_v7  ;;  %v563_v29 = vrot.slane %v160_v44, 7 }
  0x2b   : > { %vm5931_vm7 = vcmp.lt.s32.totalorder %v4023_v1, 1  ;;  %vm4214_vm8 = vcmp.eq.s32.totalorder %v273_v34, 15  ;;  %v647_v39 = vsel %vm5932_vm0, %v642_v32, %v643_v36  ;;  %v705_v48 = vsel %vm4201_vm6, 0.0, %v649_v43 }
  0x2c   : > { %3564 = vrot.lane.b32.xlu0 %v3563_v23, %s3950_s26  ;;  %v4222_v46 = vsel %vm5931_vm7, %v550_v26, %v551_v25  ;;  %v4226_v47 = vsel %vm5931_vm7, %v549_v9, %v550_v26  ;;  %v287_v49 = vand.u32 15, %v4157_v60  ;;  %v4233_v50 = vsel %vm5931_vm7, %v552_v11, %v553_v37 }
  0x2d   : > { %v4237_v51 = vsel %vm5931_vm7, %v551_v25, %v552_v11  ;;  %v3588_v53 = vpack.i.bf16 %v4175_v15, %v4153_v58  ;;  %v644_v54 = vrot.slane %v160_v44, 1  ;;  %v579_v55 = vsel %vm5931_vm7, %v548_v20, %v549_v9 }
  0x2e   : > { %3569 = vrot.lane.b32.xlu1 %v3568_v31, %s3951_s27  ;;  %v648_v56 = vsel %vm5932_vm0, %v641_v24, %v642_v32  ;;  %v707_v59 = vsel %vm4214_vm8, 0.0, %v647_v39  ;;  %v580_v60 = vsel %vm5931_vm7, %v563_v29, %v548_v20  ;;  %v911_v61 = vsel %vm909_vm9, %v546_v18, 0 }
  0x2f   : > { %v561_v63 = vrot.slane %v4175_v15, 7  ;;  %v560_v5 = vrot.slane %v4153_v58, 7  ;;  %v3583_v10 = vpack.i.bf16 %v705_v48, %v650_v16  ;;  %3314 = vmatpush3.bf16.msra.mxu0 %v911_v61  ;;  %v559_v9 = vrot.slane %v4150_v57, 7 }
  0x30   : > { %3579 = vrot.lane.b32.xlu0 %v3578_v41, %s3951_s27  ;;  %vm4254_vm10 = vcmp.eq.s32.totalorder %v287_v49, 15  ;;  %v6015_v13 = vmov 0  ;;  %v554_v23 = vrot.slane %v4075_v21, 7  ;;  %v3598_v20 = vpack.i.bf16 %v707_v59, %v648_v56 }
  0x31   : > { %v6016_v13 = vsel %vm4254_vm10, 4294967295, %v6015_v13  ;;  %v661_v15 = vsel %vm5932_vm0, %v644_v54, %v629_v14  ;;  %v4266_v58 = vsel %vm5931_vm7, %v556_v40, %v557_v38  ;;  %v4270_v57 = vsel %vm5931_vm7, %v555_v8, %v556_v40 }
  0x32   : > { %3574 = vrot.lane.b32.xlu1 %v3573_v12, %s3950_s26  ;;  %v4274_v18 = vsel %vm5931_vm7, %v554_v23, %v555_v8  ;;  %v4278_v21 = vsel %vm5931_vm7, %v553_v37, %v554_v23  ;;  %v558_v6 = vrot.slane %v4128_v45, 7  ;;  %v3593_v14 = vpack.i.bf16 %v160_v44, %v4178_v17 }
  0x33   : > { %v4285_v7 = vsel %vm5931_vm7, %v560_v5, %v561_v63  ;;  %v646_v24 = vsel %vm5932_vm0, %v643_v36, %v644_v54  ;;  %v709_v25 = vsel %vm4254_vm10, 0.0, %v661_v15  ;;  %v4302_v27 = vsel %vm5931_vm7, %v559_v9, %v560_v5 }
  0x34   : > { %3589 = vrot.lane.b32.xlu0 %v3588_v53, %s3950_s26  ;;  %v4293_v26 = vsel %vm5931_vm7, %v558_v6, %v559_v9  ;;  %v4297_v45 = vsel %vm5931_vm7, %v557_v38, %v558_v6  ;;  %v562_v30 = vrot.slane %v4178_v17, 7  ;;  %v3603_v31 = vpack.i.bf16 %v709_v25, %v646_v24 }
  0x35   : > { %v4316_v36 = vadd.s32 16, %v4023_v1  ;;  %v182_v37 = vand.u32 15, %v4023_v1  ;;  %v4320_v17 = vadd.s32 32, %v4023_v1  ;;  %v6019_v38 = vmov 0 }
  0x36   : > { %3584 = vrot.lane.b32.xlu1 %v3583_v10, %s3951_s27  ;;  %v4308_v32 = vsel %vm5931_vm7, %v562_v30, %v563_v29  ;;  %v4312_v34 = vsel %vm5931_vm7, %v561_v63, %v562_v30  ;;  %v6021_v12 = vmov 0  ;;  %v4335_v29 = vadd.s32 48, %v4023_v1 }
  0x37   : > { %6017 = vst [vmem:[#allocation10_spill] sm:$0xff] %v4316_v36  ;;  %6018 = vst [vmem:[#allocation11_spill] sm:$0xff] %v4320_v17  ;;  %v196_v8 = vand.u32 15, %v4316_v36  ;;  %vm4323_vm11 = vcmp.eq.s32.totalorder %v182_v37, 0  ;;  %v210_v40 = vand.u32 15, %v4320_v17  ;;  %v6024_v39 = vmov 0 }
  0x38   : > { %3599 = vrot.lane.b32.xlu0 %v3598_v20, %s3951_s27  ;;  %v6020_v38 = vsel %vm4323_vm11, 4294967295, %v6019_v38  ;;  %v613_v44 = vsel %vm4323_vm11, 0.0, %v580_v60  ;;  %6023 = vst [vmem:[#allocation12_spill] sm:$0xff] %v4335_v29  ;;  %v170_v48 = vadd.s32 64, %v4023_v1  ;;  %vm5933_vm9 = vcmask 97280  }
  0x39   : > { %vm4330_vm13 = vcmp.eq.s32.totalorder %v196_v8, 0  ;;  %vm4337_vm14 = vcmp.eq.s32.totalorder %v210_v40, 0  ;;  %v224_v9 = vand.u32 15, %v4335_v29  ;;  %v172_v8 = vadd.s32 80, %v4023_v1 }
  0x3a   : > { %3594 = vrot.lane.b32.xlu1 %v3593_v14, %s3950_s26  ;;  %v6022_v12 = vsel %vm4330_vm13, 4294967295, %v6021_v12  ;;  %v6025_v39 = vsel %vm4337_vm14, 4294967295, %v6024_v39  ;;  %v615_v60 = vsel %vm4330_vm13, 0.0, %v4226_v47  ;;  %v617_v5 = vsel %vm4337_vm14, 0.0, %v4237_v51  ;;  %s135_s26 = sand.u32 1, %s3940_s10  }
  0x3b   : > { %v238_v25 = vand.u32 15, %v170_v48  ;;  %vm4363_vm7 = vcmp.eq.s32.totalorder %v224_v9, 0  ;;  %s3157_s28 = sshll.u32 %s135_s26, 3  ;;  %s3081_s14 = scalar_lea.sflag [#allocation3], %s135_s26 }
  0x3c   : > { %s137_s4 = scalar_lea.vmem [#allocation2], %s3157_s28 }
  0x3d   : > { %vm4367_vm0 = vcmp.eq.s32.totalorder %v238_v25, 0  ;;  %s3094_s5 = sshll.u32 %s137_s4, 4  ;;  %s5889_s5 = int_to_ptr.vmem [resolvable:$true] %s3094_s5 }
  0x3e   : > { %3604 = vrot.lane.b32.xlu1 %v3603_v31, %s3951_s27  ;;  %s3888_s16 = scalar_lea.vmem %s5889_s5, 128 }
  0x3f   : > { %p3889_p11 = scmp.ne.s32.totalorder %s5889_s5, %s3888_s16 }
  0x41   : > { %p3890_p12 = pnand %p3889_p11, %p4011_p5 }
  0x43   : > { %p3891_p13 = pneg %p3890_p12 }
  0x8e   : > { %v3530_v11 = vpop.permute.xlu0 %3529 }
  0x8f   : > { %v3532_v41 = vunpack.i.h.bf16 %v3530_v11  ;;  %v3531_v43 = vunpack.i.l.bf16 %v3530_v11 }
  0x91   : > { %v839_v56 = vsel %vm5936_vm12, %v613_v44, %v3531_v43  ;;  %v840_v59 = vsel %vm5936_vm12, %v579_v55, %v3532_v41 }
  0x92   : > { %v3535_v16 = vpop.permute.xlu0 %3534 }
  0x93   : > { %v3537_v49 = vunpack.i.h.bf16 %v3535_v16  ;;  %v3536_v53 = vunpack.i.l.bf16 %v3535_v16  ;;  %v6026_v16 = vmov 0 }
  0x94   : > { %v3545_v54 = vpop.permute.xlu1 %3544  ;;  %v6027_v16 = vsel %vm4363_vm7, 4294967295, %v6026_v16 }
  0x95   : > { %v3547_v61 = vunpack.i.h.bf16 %v3545_v54  ;;  %v3546_v63 = vunpack.i.l.bf16 %v3545_v54  ;;  %v842_v6 = vsel %vm5936_vm12, %v4222_v46, %v3537_v49  ;;  %v841_v47 = vsel %vm5936_vm12, %v615_v60, %v3536_v53 }
  0x96   : > { %v3540_v10 = vpop.permute.xlu0 %3539  ;;  %v174_v49 = vadd.s32 96, %v4023_v1 }
  0x97   : > { %v3542_v23 = vunpack.i.h.bf16 %v3540_v10  ;;  %v3541_v20 = vunpack.i.l.bf16 %v3540_v10  ;;  %v856_v15 = vsel %vm5939_vm15, %v839_v56, %v3546_v63  ;;  %v857_v55 = vsel %vm5939_vm15, %v840_v59, %v3547_v61 }
  0x98   : > { %v3550_v14 = vpop.permute.xlu1 %3549  ;;  %v872_v24 = vpack.c.bf16 %v857_v55, %v856_v15  ;;  %v619_v63 = vsel %vm4363_vm7, 0.0, %v4278_v21  ;;  %v266_v15 = vand.u32 15, %v174_v49 }
  0x99   : > { %v3552_v30 = vunpack.i.h.bf16 %v3550_v14  ;;  %v3551_v51 = vunpack.i.l.bf16 %v3550_v14  ;;  %v844_v31 = vsel %vm5936_vm12, %v4233_v50, %v3542_v23  ;;  %v843_v37 = vsel %vm5936_vm12, %v617_v5, %v3541_v20 }
  0x9a   : > { %3315 = vmatprep.mubr.msk.bf16.mxu0 %vm5933_vm9, %v872_v24  ;;  %v3560_v11 = vpop.permute.xlu0 %3559  ;;  %v6028_v50 = vmov 0  ;;  %v621_v5 = vsel %vm4367_vm0, 0.0, %v4270_v57  ;;  %v252_v20 = vand.u32 15, %v172_v8  ;;  %v6032_v8 = vmov 0 }
  0x9b   : > { %v859_v40 = vsel %vm5939_vm15, %v842_v6, %v3552_v30  ;;  %v858_v46 = vsel %vm5939_vm15, %v841_v47, %v3551_v51  ;;  %v3562_v41 = vunpack.i.h.bf16 %v3560_v11  ;;  %v3561_v43 = vunpack.i.l.bf16 %v3560_v11 }
  0x9c   : > { %v873_v44 = vpack.c.bf16 %v859_v40, %v858_v46  ;;  %v3555_v48 = vpop.permute.xlu1 %3554  ;;  %v6029_v50 = vsel %vm4367_vm0, 4294967295, %v6028_v50  ;;  %v6030_v11 = vmov 0  ;;  %vm4394_vm0 = vcmp.eq.s32.totalorder %v266_v15, 0 }
  0x9d   : > { %v860_v53 = vsel %vm5939_vm15, %v843_v37, %v3561_v43  ;;  %v861_v54 = vsel %vm5939_vm15, %v844_v31, %v3562_v41  ;;  %v3557_v59 = vunpack.i.h.bf16 %v3555_v48  ;;  %v3556_v60 = vunpack.i.l.bf16 %v3555_v48 }
  0x9e   : > { %v874_v56 = vpack.c.bf16 %v861_v54, %v860_v53  ;;  %3316 = vmatmul.mubr.msk.bf16.vlgmr.msra.gmra.mxu0 %vm5933_vm9, %v873_v44  ;;  %v3565_v61 = vpop.permute.xlu0 %3564  ;;  %v6033_v8 = vsel %vm4394_vm0, 4294967295, %v6032_v8  ;;  %v625_v53 = vsel %vm4394_vm0, 0.0, %v4302_v27  ;;  %vm6040_vm0 = vcmask 64512  }
  0x9f   : > { %v3567_v10 = vunpack.i.h.bf16 %v3565_v61  ;;  %v3566_v9 = vunpack.i.l.bf16 %v3565_v61  ;;  %v846_v47 = vsel %vm5936_vm12, %v4274_v18, %v3557_v59  ;;  %v845_v14 = vsel %vm5936_vm12, %v619_v63, %v3556_v60  ;;  %vm6041_vm13 = vmmov %vm6040_vm0 }
  0xa0   : > { %v3570_v23 = vpop.permute.xlu1 %3569  ;;  %3319 = vmatprep.mubr.msk.bf16.mxu0 %vm5933_vm9, %v874_v56  ;;  %vm4390_vm9 = vcmp.eq.s32.totalorder %v252_v20, 0 }
  0xa1   : > { %v3572_v55 = vunpack.i.h.bf16 %v3570_v23  ;;  %v3571_v6 = vunpack.i.l.bf16 %v3570_v23  ;;  %v848_v21 = vsel %vm5936_vm12, %v4266_v58, %v3567_v10  ;;  %v847_v24 = vsel %vm5936_vm12, %v621_v5, %v3566_v9 }
  0xa2   : > { %v3580_v57 = vpop.permute.xlu0 %3579  ;;  %v6031_v11 = vsel %vm4390_vm9, 4294967295, %v6030_v11  ;;  %v176_v58 = vadd.s32 112, %v4023_v1  ;;  %vm6034_vm12 = vcmask 97280   ;;  %v623_v49 = vsel %vm4390_vm9, 0.0, %v4297_v45 }
  0xa3   : > { %v862_v25 = vsel %vm5939_vm15, %v845_v14, %v3571_v6  ;;  %v863_v30 = vsel %vm5939_vm15, %v846_v47, %v3572_v55  ;;  %v3582_v51 = vunpack.i.h.bf16 %v3580_v57  ;;  %v3581_v31 = vunpack.i.l.bf16 %v3580_v57  ;;  %vm6035_vm7 = vmmov %vm6034_vm12 }
  0xa4   : > { %v875_v37 = vpack.c.bf16 %v863_v30, %v862_v25  ;;  %v3575_v18 = vpop.permute.xlu1 %3574  ;;  %v280_v60 = vand.u32 15, %v176_v58  ;;  %v516_v47 = vmul.u32 2, %v4023_v1 }
  0xa5   : > { %v864_v40 = vsel %vm5939_vm15, %v847_v24, %v3581_v31  ;;  %v865_v46 = vsel %vm5939_vm15, %v848_v21, %v3582_v51  ;;  %v3577_v43 = vunpack.i.h.bf16 %v3575_v18  ;;  %v3576_v44 = vunpack.i.l.bf16 %v3575_v18 }
  0xa6   : > { %v876_v41 = vpack.c.bf16 %v865_v46, %v864_v40  ;;  %3320 = vmatmul.mubr.msk.bf16.gmra.mxu0 %vm6034_vm12, %v875_v37  ;;  %v3590_v48 = vpop.permute.xlu0 %3589  ;;  %vm6036_vm15 = vcmask 31744  }
  0xa7   : > { %v3592_v54 = vunpack.i.h.bf16 %v3590_v48  ;;  %v3591_v56 = vunpack.i.l.bf16 %v3590_v48  ;;  %v850_v5 = vsel %vm6036_vm15, %v4293_v26, %v3577_v43  ;;  %vm6037_vm12 = vmmov %vm6036_vm15 }
  0xa8   : > { %v3585_v59 = vpop.permute.xlu1 %3584  ;;  %3323 = vmatprep.mubr.msk.bf16.mxu0 %vm6035_vm7, %v876_v41  ;;  %v849_v10 = vsel %vm6037_vm12, %v623_v49, %v3576_v44  ;;  %vm6038_vm14 = vmmov %vm6037_vm12  ;;  %vm4417_vm7 = vcmp.eq.s32.totalorder %v280_v60, 0 }
  0xa9   : > { %v3587_v61 = vunpack.i.h.bf16 %v3585_v59  ;;  %v3586_v63 = vunpack.i.l.bf16 %v3585_v59  ;;  %v852_v45 = vsel %vm6038_vm14, %v4285_v7, %v3592_v54  ;;  %vm6039_vm9 = vmmov %vm6037_vm12  ;;  %vm6046_vm14 = vcmask 97280  }
  0xaa   : > { %v851_v9 = vsel %vm6039_vm9, %v625_v53, %v3591_v56  ;;  %v3600_v23 = vpop.permute.xlu0 %3599  ;;  %vm6044_vm15 = vmmov %vm6040_vm0  ;;  %v627_v25 = vsel %vm4417_vm7, 0.0, %v4312_v34  ;;  %v4437_v34 = vld [vmem:[%s5929_s1 + $0x10] ss:$0 sm:$0xff]  ;;  %v1028_v53 = vld [vmem:[%s5929_s1 + $0x28] sm:$0xff] }
  0xab   : > { %v866_v27 = vsel %vm6040_vm0, %v849_v10, %v3586_v63  ;;  %v867_v20 = vsel %vm6041_vm13, %v850_v5, %v3587_v61  ;;  %v3602_v15 = vunpack.i.h.bf16 %v3600_v23  ;;  %v3601_v55 = vunpack.i.l.bf16 %v3600_v23  ;;  %vm6045_vm12 = vmmov %vm6040_vm0 }
  0xac   : > { %v877_v6 = vpack.c.bf16 %v867_v20, %v866_v27  ;;  %v3595_v26 = vpop.permute.xlu1 %3594  ;;  %vm6047_vm0 = vmmov %vm6046_vm14  ;;  %v1030_v56 = vpack.c.bf16 %v1028_v53, %v1028_v53 }
  0xad   : > { %v868_v14 = vsel %vm6044_vm15, %v851_v9, %v3601_v55  ;;  %v869_v21 = vsel %vm6045_vm12, %v852_v45, %v3602_v15  ;;  %v3597_v24 = vunpack.i.h.bf16 %v3595_v26  ;;  %v3596_v57 = vunpack.i.l.bf16 %v3595_v26  ;;  %vm6048_vm13 = vmmov %vm6039_vm9  ;;  %v1026_v45 = vld [vmem:[%s5929_s1 + $0x18] sm:$0xff]  ;;  %v1027_v9 = vld [vmem:[%s5929_s1 + $0x20] sm:$0xff] }
  0xae   : > { %v878_v7 = vpack.c.bf16 %v869_v21, %v868_v14  ;;  %3324 = vmatmul.mubr.msk.bf16.gmra.mxu0 %vm6046_vm14, %v877_v6  ;;  %vm6049_vm15 = vmmov %vm6045_vm12  ;;  %v1029_v15 = vpack.c.bf16 %v1027_v9, %v1026_v45 }
  0xaf   : > { %v854_v37 = vsel %vm6048_vm13, %v4308_v32, %v3597_v24  ;;  %v853_v18 = vsel %vm6039_vm9, %v627_v25, %v3596_v57  ;;  %vm6050_vm14 = vmmov %vm6047_vm0  ;;  %vm6051_vm13 = vcmp.lt.s32.totalorder %v4023_v1, 7 }
  0xb0   : > { %v3605_v30 = vpop.permute.xlu1 %3604  ;;  %3327 = vmatprep.mubr.msk.bf16.mxu0 %vm6047_vm0, %v878_v7  ;;  %vm5949_vm0 = vcmask 1043456   ;;  %vm6052_vm9 = vmmov %vm6051_vm13 }
  0xb1   : > { %v3607_v51 = vunpack.i.h.bf16 %v3605_v30  ;;  %v3606_v31 = vunpack.i.l.bf16 %v3605_v30  ;;  %3478 = vmatprep.subr.msk.bf16.mxu1 %vm5949_vm0, %v1030_v56  ;;  %v1328_v20 = vsel %vm5949_vm0, %v1030_v56, 0  ;;  %vm6075_vm0 = vnez %v6022_v12 }
  0xb2   : > { %3332 = vmatpush3.bf16.msra.mxu1 %v1328_v20 }
  0xb3   : > { %v870_v58 = vsel %vm6049_vm15, %v853_v18, %v3606_v31  ;;  %v871_v40 = vsel %vm6045_vm12, %v854_v37, %v3607_v51  ;;  %3333 = vmatprep.subr.bf16.mxu1 %v1029_v15  ;;  %vm6053_vm15 = vmmov %vm6052_vm9 }
  0xb4   : > { %v879_v46 = vpack.c.bf16 %v871_v40, %v870_v58  ;;  %vm6054_vm12 = vmmov %vm6052_vm9 }
  0xb6   : > { %3328 = vmatmul.mubr.msk.bf16.gmra.mxu0 %vm6050_vm14, %v879_v46  ;;  %3334 = vmatpush3.bf16.msra.mxu1 %v1029_v15  ;;  %vm6055_vm14 = vmmov %vm6052_vm9 }
 0x15e   : > { %v3317_v41 = vpop.f32.mrf.mxu0 }
 0x15f   : > { %v956_v44 = vadd.f32 %v3317_v41, %v4437_v34 }
 0x160   : > { %v947_v43 = vpop.f32.mrf.mxu0 }
 0x161   : > { %v948_v32 = vadd.f32 %v4437_v34, %v947_v43  ;;  %v4448_v61 = vmax.f32 %v956_v44, 0.0 }
 0x162   : > { %v3318_v48 = vpop.f32.mrf.mxu0 }
 0x163   : > { %v959_v49 = vadd.f32 %v3318_v48, %v4437_v34  ;;  %v4450_v5 = vmax.f32 %v948_v32, 0.0  ;;  %v1082_v14 = vrot.slane %v4448_v61, 1 }
 0x164   : > { %v950_v54 = vpop.f32.mrf.mxu0 }
 0x165   : > { %v4445_v59 = vmax.f32 %v959_v49, 0.0  ;;  %v951_v60 = vadd.f32 %v4437_v34, %v950_v54  ;;  %v1080_v24 = vrot.slane %v4450_v5, 1 }
 0x166   : > { %v3321_v63 = vpop.f32.mrf.mxu0 }
 0x167   : > { %v4452_v10 = vmax.f32 %v951_v60, 0.0  ;;  %v3608_v27 = vpack.i.bf16 %v4445_v59, %v4448_v61  ;;  %v972_v6 = vadd.f32 %v3321_v63, %v4437_v34  ;;  %v1083_v58 = vrot.slane %v4445_v59, 1 }
 0x168   : > { %v963_v23 = vpop.f32.mrf.mxu0 }
 0x169   : > { %v1081_v55 = vrot.slane %v4452_v10, 1  ;;  %v964_v26 = vadd.f32 %v4437_v34, %v963_v23  ;;  %3609 = vrot.lane.b32.xlu1 %v3608_v27, %s3951_s27  ;;  %v3613_v7 = vpack.i.bf16 %v4452_v10, %v4450_v5  ;;  %v4477_v51 = vmax.f32 %v972_v6, 0.0 }
 0x16a   : > { %v3322_v21 = vpop.f32.mrf.mxu0  ;;  %v1108_v27 = vsel %vm6054_vm12, %v1082_v14, %v1083_v58  ;;  %vm6060_vm12 = vmmov %vm6052_vm9 }
 0x16b   : > { %v4472_v57 = vmax.f32 %v964_v26, 0.0  ;;  %3614 = vrot.lane.b32.xlu0 %v3613_v7, %s3951_s27  ;;  %v1109_v30 = vsel %vm6051_vm13, %v1081_v55, %v1082_v14  ;;  %v1110_v18 = vsel %vm6052_vm9, %v1080_v24, %v1081_v55  ;;  %v975_v40 = vadd.f32 %v3322_v21, %v4437_v34  ;;  %vm6056_vm13 = vmmov %vm6052_vm9 }
 0x16c   : > { %v966_v25 = vpop.f32.mrf.mxu0  ;;  %v1113_v41 = vsel %vm4069_vm1, 0.0, %v1109_v30  ;;  %v1086_v49 = vrot.slane %v4477_v51, 1 }
 0x16d   : > { %v1084_v31 = vrot.slane %v4472_v57, 1  ;;  %v967_v37 = vadd.f32 %v4437_v34, %v966_v25  ;;  %v3618_v44 = vpack.i.bf16 %v1113_v41, %v1110_v18  ;;  %v4496_v56 = vmax.f32 %v975_v40, 0.0 }
 0x16e   : > { %v3325_v46 = vpop.f32.mrf.mxu0 }
 0x16f   : > { %v4489_v43 = vmax.f32 %v967_v37, 0.0  ;;  %v1107_v32 = vsel %vm6053_vm15, %v1083_v58, %v1084_v31  ;;  %v988_v60 = vadd.f32 %v3325_v46, %v4437_v34  ;;  %3619 = vrot.lane.b32.xlu0 %v3618_v44, %s3952_s21  ;;  %v1087_v25 = vrot.slane %v4496_v56, 1  ;;  %vm6059_vm15 = vmmov %vm6052_vm9 }
 0x170   : > { %v979_v48 = vpop.f32.mrf.mxu0  ;;  %v1115_v45 = vsel %vm4089_vm2, 0.0, %v1107_v32  ;;  %v3628_v58 = vpack.i.bf16 %v4496_v56, %v4477_v51 }
 0x171   : > { %v1085_v53 = vrot.slane %v4489_v43, 1  ;;  %v980_v54 = vadd.f32 %v4437_v34, %v979_v48  ;;  %v3633_v9 = vpack.i.bf16 %v4489_v43, %v4472_v57  ;;  %v3623_v20 = vpack.i.bf16 %v1115_v45, %v1108_v27 }
 0x172   : > { %v3326_v63 = vpop.f32.mrf.mxu0  ;;  %v4516_v30 = vmax.f32 %v988_v60, 0.0  ;;  %v1104_v27 = vsel %vm6059_vm15, %v1086_v49, %v1087_v25  ;;  %vm6066_vm15 = vmmov %vm6052_vm9 }
 0x173   : > { %v4504_v23 = vmax.f32 %v980_v54, 0.0  ;;  %v1105_v55 = vsel %vm6055_vm14, %v1085_v53, %v1086_v49  ;;  %v991_v26 = vadd.f32 %v3326_v63, %v4437_v34  ;;  %v1106_v7 = vsel %vm6056_vm13, %v1084_v31, %v1085_v53  ;;  %3624 = vrot.lane.b32.xlu1 %v3623_v20, %s3952_s21  ;;  %3634 = vrot.lane.b32.xlu0 %v3633_v9, %s3951_s27  ;;  %vm6061_vm14 = vmmov %vm6052_vm9 }
 0x174   : > { %v982_v15 = vpop.f32.mrf.mxu0  ;;  %v1117_v37 = vsel %vm4103_vm3, 0.0, %v1105_v55  ;;  %v1090_v53 = vrot.slane %v4516_v30, 1  ;;  %vm6065_vm13 = vmmov %vm6052_vm9 }
 0x175   : > { %v1088_v6 = vrot.slane %v4504_v23, 1  ;;  %v983_v21 = vadd.f32 %v4437_v34, %v982_v15  ;;  %v3638_v40 = vpack.i.bf16 %v1117_v37, %v1106_v7  ;;  %v4528_v41 = vmax.f32 %v991_v26, 0.0 }
 0x176   : > { %v3329_v14 = vpop.f32.mrf.mxu0 }
 0x177   : > { %v4522_v18 = vmax.f32 %v983_v21, 0.0  ;;  %v1103_v31 = vsel %vm6052_vm9, %v1087_v25, %v1088_v6  ;;  %v1004_v48 = vadd.f32 %v3329_v14, %v4437_v34  ;;  %3629 = vrot.lane.b32.xlu1 %v3628_v58, %s3951_s27  ;;  %3639 = vrot.lane.b32.xlu0 %v3638_v40, %s3952_s21  ;;  %v1091_v21 = vrot.slane %v4528_v41, 1 }
 0x178   : > { %v995_v46 = vpop.f32.mrf.mxu0  ;;  %v1119_v60 = vsel %vm4136_vm4, 0.0, %v1103_v31  ;;  %v3648_v40 = vpack.i.bf16 %v4528_v41, %v4516_v30 }
 0x179   : > { %6057 = vst [vmem:[#allocation13_spill] sm:$0xff] %v4522_v18  ;;  %v1089_v44 = vrot.slane %v4522_v18, 1  ;;  %v996_v32 = vadd.f32 %v4437_v34, %v995_v46  ;;  %v3653_v63 = vpack.i.bf16 %v4522_v18, %v4504_v23  ;;  %v3643_v20 = vpack.i.bf16 %v1119_v60, %v1104_v27 }
 0x17a   : > { %v3330_v54 = vpop.f32.mrf.mxu0  ;;  %v4550_v7 = vmax.f32 %v1004_v48, 0.0 }
 0x17b   : > { %v4540_v45 = vmax.f32 %v996_v32, 0.0  ;;  %v1007_v9 = vadd.f32 %v3330_v54, %v4437_v34  ;;  %v1101_v55 = vsel %vm6060_vm12, %v1089_v44, %v1090_v53  ;;  %v1102_v26 = vsel %vm6061_vm14, %v1088_v6, %v1089_v44  ;;  %3644 = vrot.lane.b32.xlu1 %v3643_v20, %s3952_s21  ;;  %3654 = vrot.lane.b32.xlu0 %v3653_v63, %s3951_s27  ;;  %vm6067_vm12 = vmmov %vm6052_vm9 }
 0x17c   : > { %v998_v15 = vpop.f32.mrf.mxu0  ;;  %6062 = vst [vmem:[#allocation15_spill] sm:$0xff] %v4550_v7  ;;  %v1121_v49 = vsel %vm4162_vm5, 0.0, %v1101_v55  ;;  %v1100_v44 = vsel %vm6052_vm9, %v1090_v53, %v1091_v21  ;;  %vm6068_vm14 = vmmov %vm6052_vm9 }
 0x17d   : > { %6058 = vst [vmem:[#allocation14_spill] sm:$0xff] %v4540_v45  ;;  %v1092_v14 = vrot.slane %v4540_v45, 1  ;;  %v999_v37 = vadd.f32 %v4437_v34, %v998_v15  ;;  %v4554_v58 = vmax.f32 %v1007_v9, 0.0  ;;  %v3658_v6 = vpack.i.bf16 %v1121_v49, %v1102_v26 }
 0x17e   : > { %v1094_v34 = vrot.slane %v4550_v7, 1  ;;  %v1033_v49 = vrot.slane %v4452_v10, 7 }
 0x17f   : > { %6063 = vst [vmem:[#allocation16_spill] sm:$0xff] %v4554_v58  ;;  %v4560_v25 = vmax.f32 %v999_v37, 0.0  ;;  %v1099_v46 = vsel %vm6065_vm13, %v1091_v21, %v1092_v14  ;;  %v1095_v32 = vrot.slane %v4554_v58, 1  ;;  %3649 = vrot.lane.b32.xlu1 %v3648_v40, %s3951_s27  ;;  %3659 = vrot.lane.b32.xlu0 %v3658_v6, %s3952_s21  ;;  %v3668_v15 = vpack.i.bf16 %v4554_v58, %v4550_v7  ;;  %vm6069_vm13 = vmmov %vm6052_vm9 }
 0x180   : > { %v1123_v48 = vsel %vm4201_vm6, 0.0, %v1099_v46  ;;  %v1034_v6 = vrot.slane %v4448_v61, 7  ;;  %vm6070_vm9 = vcmp.lt.s32.totalorder %v4023_v1, 1 }
 0x181   : > { %6064 = vst [vmem:[#allocation17_spill] sm:$0xff] %v4560_v25  ;;  %v1093_v31 = vrot.slane %v4560_v25, 1  ;;  %v3663_v54 = vpack.i.bf16 %v1123_v48, %v1100_v44  ;;  %v3673_v60 = vpack.i.bf16 %v4560_v25, %v4540_v45  ;;  %v1111_v20 = vsel %vm6068_vm14, %v1095_v32, %v1080_v24  ;;  %vm6072_vm14 = vmmov %vm6070_vm9 }
 0x182   : > { %v1096_v55 = vsel %vm6069_vm13, %v1094_v34, %v1095_v32  ;;  %v1127_v26 = vsel %vm4254_vm10, 0.0, %v1111_v20  ;;  %v1032_v24 = vrot.slane %v4450_v5, 7  ;;  %v1035_v44 = vrot.slane %v4445_v59, 7 }
 0x183   : > { %v1097_v63 = vsel %vm6066_vm15, %v1093_v31, %v1094_v34  ;;  %v1098_v9 = vsel %vm6067_vm12, %v1092_v14, %v1093_v31  ;;  %3664 = vrot.lane.b32.xlu1 %v3663_v54, %s3952_s21  ;;  %3674 = vrot.lane.b32.xlu0 %v3673_v60, %s3951_s27  ;;  %v3683_v21 = vpack.i.bf16 %v1127_v26, %v1096_v55  ;;  %v1047_v14 = vrot.slane %v4554_v58, 7  ;;  %vm6071_vm15 = vmmov %vm6070_vm9 }
 0x184   : > { %v1125_v53 = vsel %vm4214_vm8, 0.0, %v1097_v63  ;;  %v1061_v48 = vsel %vm6071_vm15, %v1033_v49, %v1034_v6  ;;  %vm5950_vm12 = vcmask 130048   ;;  %v1062_v54 = vsel %vm6072_vm14, %v1032_v24, %v1033_v49 }
 0x185   : > { %v3678_v27 = vpack.i.bf16 %v1125_v53, %v1098_v9  ;;  %v1063_v34 = vsel %vm6070_vm9, %v1047_v14, %v1032_v24  ;;  %v1036_v60 = vrot.slane %v4472_v57, 7  ;;  %vm6073_vm13 = vcmask 64512  }
 0x186   : > { %v1064_v53 = vsel %vm4323_vm11, 0.0, %v1063_v34  ;;  %vm6074_vm9 = vmmov %vm6073_vm13  ;;  %vm5955_vm15 = vcmask 195584   ;;  %v1060_v24 = vsel %vm6072_vm14, %v1034_v6, %v1035_v44  ;;  %v1066_v34 = vsel %vm6075_vm0, 0.0, %v1061_v48 }
 0x187   : > { %3669 = vrot.lane.b32.xlu1 %v3668_v15, %s3951_s27  ;;  %3679 = vrot.lane.b32.xlu0 %v3678_v27, %s3952_s21  ;;  %v1038_v6 = vrot.slane %v4477_v51, 7  ;;  %v1039_v48 = vrot.slane %v4496_v56, 7 }
 0x18b   : > { %3684 = vrot.lane.b32.xlu1 %v3683_v21, %s3952_s21 }
 0x1db   : > { %v3610_v31 = vpop.permute.xlu1 %3609 }
 0x1dc   : > { %v3612_v27 = vunpack.i.h.bf16 %v3610_v31  ;;  %v3611_v20 = vunpack.i.l.bf16 %v3610_v31 }
 0x1dd   : > { %v3615_v37 = vpop.permute.xlu0 %3614 }
 0x1de   : > { %v3617_v40 = vunpack.i.h.bf16 %v3615_v37  ;;  %v3616_v46 = vunpack.i.l.bf16 %v3615_v37  ;;  %v1037_v37 = vrot.slane %v4489_v43, 7 }
 0x1e0   : > { %v1256_v15 = vsel %vm6073_vm13, %v1064_v53, %v3616_v46  ;;  %v1257_v55 = vsel %vm6074_vm9, %v1062_v54, %v3617_v40  ;;  %vm6076_vm13 = vmmov %vm6072_vm14  ;;  %v1258_v54 = vsel %vm6074_vm9, %v1066_v34, %v3611_v20  ;;  %vm6078_vm14 = vcmask 130048  }
 0x1e1   : > { %v3620_v32 = vpop.permute.xlu0 %3619  ;;  %v1059_v40 = vsel %vm6076_vm13, %v1035_v44, %v1036_v60  ;;  %vm6079_vm11 = vmmov %vm6078_vm14 }
 0x1e2   : > { %v3622_v63 = vunpack.i.h.bf16 %v3620_v32  ;;  %v3621_v9 = vunpack.i.l.bf16 %v3620_v32  ;;  %vm6080_vm0 = vmmov %vm6076_vm13  ;;  %vm6081_vm13 = vnez %v6025_v39 }
 0x1e3   : > { %v1058_v44 = vsel %vm6080_vm0, %v1036_v60, %v1037_v37  ;;  %v1068_v20 = vsel %vm6081_vm13, 0.0, %v1059_v40 }
 0x1e4   : > { %v1273_v26 = vsel %vm5950_vm12, %v1256_v15, %v3621_v9  ;;  %v1274_v21 = vsel %vm5950_vm12, %v1257_v55, %v3622_v63  ;;  %vm6077_vm12 = vmmov %vm6074_vm9 }
 0x1e5   : > { %v3625_v49 = vpop.permute.xlu1 %3624  ;;  %v3635_v32 = vpop.permute.xlu0 %3634  ;;  %v1289_v0 = vpack.c.bf16 %v1274_v21, %v1273_v26  ;;  %v1259_v63 = vsel %vm6077_vm12, %v1060_v24, %v3612_v27  ;;  %v1040_v24 = vrot.slane %v4504_v23, 7  ;;  %vm6082_vm12 = vmmov %vm6080_vm0 }
 0x1e6   : > { %v3627_v31 = vunpack.i.h.bf16 %v3625_v49  ;;  %v3626_v46 = vunpack.i.l.bf16 %v3625_v49  ;;  %v3637_v9 = vunpack.i.h.bf16 %v3635_v32  ;;  %v3636_v53 = vunpack.i.l.bf16 %v3635_v32  ;;  %vm6084_vm0 = vmmov %vm6078_vm14 }
 0x1e7   : > { %3335 = vmatprep.mubr.msk.bf16.mxu1 %vm5955_vm15, %v1289_v0  ;;  %v1057_v0 = vsel %vm6082_vm12, %v1037_v37, %v1038_v6  ;;  %vm6086_vm13 = vmmov %vm6082_vm12  ;;  %vm6087_vm12 = vnez %v6027_v16 }
 0x1e8   : > { %v1276_v15 = vsel %vm6078_vm14, %v1259_v63, %v3627_v31  ;;  %v1275_v55 = vsel %vm6079_vm11, %v1258_v54, %v3626_v46  ;;  %v1261_v34 = vsel %vm6074_vm9, %v1058_v44, %v3637_v9  ;;  %vm6083_vm11 = vmmov %vm6074_vm9  ;;  %v1041_v63 = vrot.slane %v4522_v18, 7 }
 0x1e9   : > { %v1290_v26 = vpack.c.bf16 %v1276_v15, %v1275_v55  ;;  %v3630_v27 = vpop.permute.xlu1 %3629  ;;  %v3640_v21 = vpop.permute.xlu0 %3639  ;;  %v1260_v31 = vsel %vm6083_vm11, %v1068_v20, %v3636_v53  ;;  %vm6085_vm14 = vmmov %vm6084_vm0  ;;  %v1056_v15 = vsel %vm6086_vm13, %v1038_v6, %v1039_v48  ;;  %v1070_v9 = vsel %vm6087_vm12, 0.0, %v1057_v0 }
 0x1ea   : > { %v3642_v49 = vunpack.i.h.bf16 %v3640_v21  ;;  %v3641_v32 = vunpack.i.l.bf16 %v3640_v21  ;;  %v3632_v46 = vunpack.i.h.bf16 %v3630_v27  ;;  %v3631_v54 = vunpack.i.l.bf16 %v3630_v27  ;;  %vm6088_vm9 = vmmov %vm6086_vm13 }
 0x1eb   : > { %3336 = vmatmul.mubr.msk.bf16.vlgmr.msra.gmra.mxu1 %vm5955_vm15, %v1290_v26  ;;  %v1055_v26 = vsel %vm6088_vm9, %v1039_v48, %v1040_v24  ;;  %v1042_v6 = vrot.slane %v4516_v30, 7  ;;  %vm6090_vm13 = vmmov %vm6085_vm14  ;;  %v1043_v0 = vrot.slane %v4528_v41, 7  ;;  %v1054_v48 = vsel %vm6088_vm9, %v1040_v24, %v1041_v63 }
 0x1ec   : > { %v1277_v60 = vsel %vm6084_vm0, %v1260_v31, %v3641_v32  ;;  %v1278_v40 = vsel %vm6085_vm14, %v1261_v34, %v3642_v49  ;;  %v1263_v20 = vsel %vm6083_vm11, %v1056_v15, %v3632_v46  ;;  %vm6089_vm0 = vmmov %vm6083_vm11  ;;  %vm6092_vm11 = vnez %v6029_v50 }
 0x1ed   : > { %v1291_v37 = vpack.c.bf16 %v1278_v40, %v1277_v60  ;;  %v3645_v55 = vpop.permute.xlu1 %3644  ;;  %v3655_v21 = vpop.permute.xlu0 %3654  ;;  %v1262_v27 = vsel %vm6089_vm0, %v1070_v9, %v3631_v54  ;;  %vm6091_vm14 = vmmov %vm6090_vm13  ;;  %v1044_v60 = vrot.slane %v4540_v45, 7  ;;  %v1072_v15 = vsel %vm6092_vm11, 0.0, %v1055_v26 }
 0x1ee   : > { %v3647_v53 = vunpack.i.h.bf16 %v3645_v55  ;;  %v3646_v44 = vunpack.i.l.bf16 %v3645_v55  ;;  %v3657_v49 = vunpack.i.h.bf16 %v3655_v21  ;;  %v3656_v32 = vunpack.i.l.bf16 %v3655_v21  ;;  %vm6093_vm0 = vmmov %vm6088_vm9 }
 0x1ef   : > { %3339 = vmatprep.mubr.msk.bf16.mxu1 %vm5955_vm15, %v1291_v37  ;;  %v1053_v37 = vsel %vm6093_vm0, %v1041_v63, %v1042_v6  ;;  %vm6096_vm12 = vcmask 130048   ;;  %vm6098_vm10 = vmmov %vm6093_vm0  ;;  %vm6099_vm11 = vnez %v6031_v11 }
 0x1f0   : > { %v1279_v34 = vsel %vm6090_vm13, %v1262_v27, %v3646_v44  ;;  %v1280_v31 = vsel %vm6091_vm14, %v1263_v20, %v3647_v53  ;;  %vm6094_vm13 = vcmask 64512   ;;  %vm6097_vm9 = vmmov %vm6096_vm12  ;;  %v1052_v26 = vsel %vm6098_vm10, %v1042_v6, %v1043_v0 }
 0x1f1   : > { %v1292_v40 = vpack.c.bf16 %v1280_v31, %v1279_v34  ;;  %v3650_v46 = vpop.permute.xlu1 %3649  ;;  %v3660_v54 = vpop.permute.xlu0 %3659  ;;  %v1265_v9 = vsel %vm6094_vm13, %v1054_v48, %v3657_v49  ;;  %vm6095_vm14 = vmmov %vm6094_vm13  ;;  %v1074_v63 = vsel %vm6099_vm11, 0.0, %v1053_v37  ;;  %v1045_v49 = vrot.slane %v4560_v25, 7 }
 0x1f2   : > { %v3662_v55 = vunpack.i.h.bf16 %v3660_v54  ;;  %v3661_v21 = vunpack.i.l.bf16 %v3660_v54  ;;  %v1264_v53 = vsel %vm6095_vm14, %v1072_v15, %v3656_v32  ;;  %v3652_v44 = vunpack.i.h.bf16 %v3650_v46  ;;  %vm6101_vm10 = vmmov %vm6097_vm9 }
 0x1f3   : > { %v3651_v20 = vunpack.i.l.bf16 %v3650_v46  ;;  %3340 = vmatmul.mubr.msk.bf16.gmra.mxu1 %vm5955_vm15, %v1292_v40  ;;  %v1051_v40 = vsel %vm6093_vm0, %v1043_v0, %v1044_v60  ;;  %v1046_v6 = vrot.slane %v4550_v7, 7  ;;  %vm6102_vm14 = vmmov %vm6097_vm9 }
 0x1f4   : > { %v1281_v24 = vsel %vm6096_vm12, %v1264_v53, %v3661_v21  ;;  %v1282_v27 = vsel %vm6097_vm9, %v1265_v9, %v3662_v55  ;;  %v1267_v46 = vsel %vm6094_vm13, %v1052_v26, %v3652_v44  ;;  %vm6100_vm12 = vmmov %vm6094_vm13  ;;  %vm6103_vm9 = vnez %v6033_v8 }
 0x1f5   : > { %v1293_v34 = vpack.c.bf16 %v1282_v27, %v1281_v24  ;;  %v3665_v31 = vpop.permute.xlu1 %3664  ;;  %v3675_v54 = vpop.permute.xlu0 %3674  ;;  %v1266_v15 = vsel %vm6100_vm12, %v1074_v63, %v3651_v20  ;;  %v1076_v24 = vsel %vm6103_vm9, 0.0, %v1051_v40  ;;  %v1050_v44 = vsel %vm6093_vm0, %v1044_v60, %v1045_v49  ;;  %vm6104_vm13 = vmmov %vm6093_vm0 }
 0x1f6   : > { %v3667_v32 = vunpack.i.h.bf16 %v3665_v31  ;;  %v3666_v48 = vunpack.i.l.bf16 %v3665_v31  ;;  %v3677_v55 = vunpack.i.h.bf16 %v3675_v54  ;;  %v3676_v21 = vunpack.i.l.bf16 %v3675_v54  ;;  %vm6107_vm9 = vmmov %vm6102_vm14 }
 0x1f7   : > { %3343 = vmatprep.mubr.msk.bf16.mxu1 %vm5955_vm15, %v1293_v34  ;;  %v1049_v20 = vsel %vm6104_vm13, %v1045_v49, %v1046_v6  ;;  %vm6105_vm15 = vmmov %vm6100_vm12  ;;  %v1048_v60 = vsel %vm6093_vm0, %v1046_v6, %v1047_v14  ;;  %v1445_v14 = vld [vmem:[%s5929_s1 + $0x48] sm:$0xff]  ;;  %v1443_v6 = vld [vmem:[%s5929_s1 + $0x38] sm:$0xff]  ;;  %vm6113_vm0 = vcmask 1043456  }
 0x1f8   : > { %v1283_v37 = vsel %vm6101_vm10, %v1266_v15, %v3666_v48  ;;  %v1284_v9 = vsel %vm6102_vm14, %v1267_v46, %v3667_v32  ;;  %v1269_v34 = vsel %vm6100_vm12, %v1050_v44, %v3677_v55  ;;  %v1268_v31 = vsel %vm6105_vm15, %v1076_v24, %v3676_v21  ;;  %vm6108_vm15 = vmmov %vm6100_vm12 }
 0x1f9   : > { %v1294_v53 = vpack.c.bf16 %v1284_v9, %v1283_v37  ;;  %v3670_v27 = vpop.permute.xlu1 %3669  ;;  %v3680_v0 = vpop.permute.xlu0 %3679  ;;  %vm6106_vm10 = vcmask 195584   ;;  %v1078_v49 = vsel %vm4417_vm7, 0.0, %v1049_v20  ;;  %vm6109_vm13 = vmmov %vm6100_vm12  ;;  %v1447_v44 = vpack.c.bf16 %v1445_v14, %v1445_v14 }
 0x1fa   : > { %v3682_v26 = vunpack.i.h.bf16 %v3680_v0  ;;  %v3681_v63 = vunpack.i.l.bf16 %v3680_v0  ;;  %v3672_v54 = vunpack.i.h.bf16 %v3670_v27  ;;  %v3671_v32 = vunpack.i.l.bf16 %v3670_v27  ;;  %vm6110_vm12 = vmmov %vm6106_vm10  ;;  %v1444_v0 = vld [vmem:[%s5929_s1 + $0x40] sm:$0xff] }
 0x1fb   : > { %3344 = vmatmul.mubr.msk.bf16.gmra.mxu1 %vm6106_vm10, %v1294_v53  ;;  %vm6111_vm10 = vmmov %vm6107_vm9  ;;  %v1446_v20 = vpack.c.bf16 %v1444_v0, %v1443_v6  ;;  %3479 = vmatprep.subr.msk.bf16.mxu0 %vm6113_vm0, %v1447_v44 }
 0x1fc   : > { %v1285_v48 = vsel %vm6102_vm14, %v1268_v31, %v3681_v63  ;;  %v1286_v40 = vsel %vm6107_vm9, %v1269_v34, %v3682_v26  ;;  %v1271_v37 = vsel %vm6108_vm15, %v1048_v60, %v3672_v54  ;;  %v1270_v9 = vsel %vm6109_vm13, %v1078_v49, %v3671_v32  ;;  %vm6112_vm14 = vmmov %vm6110_vm12  ;;  %v4720_v63 = vld [vmem:[%s5929_s1 + $0x30] ss:$0 sm:$0xff] }
 0x1fd   : > { %v1295_v46 = vpack.c.bf16 %v1286_v40, %v1285_v48  ;;  %v3685_v15 = vpop.permute.xlu1 %3684  ;;  %vm6114_vm15 = vmmov %vm6113_vm0  ;;  %vm6115_vm13 = vcmp.lt.s32.totalorder %v4023_v1, 1 }
 0x1fe   : > { %v3687_v55 = vunpack.i.h.bf16 %v3685_v15  ;;  %v3686_v21 = vunpack.i.l.bf16 %v3685_v15  ;;  %v1742_v26 = vsel %vm6114_vm15, %v1447_v44, 0 }
 0x1ff   : > { %3347 = vmatprep.mubr.msk.bf16.mxu1 %vm6110_vm12, %v1295_v46  ;;  %3352 = vmatpush3.bf16.msra.mxu0 %v1742_v26  ;;  %vm6116_vm12 = vcmp.lt.s32.totalorder %v4023_v1, 7 }
 0x200   : > { %v1288_v53 = vsel %vm6111_vm10, %v1271_v37, %v3687_v55  ;;  %v1287_v24 = vsel %vm6107_vm9, %v1270_v9, %v3686_v21  ;;  %3353 = vmatprep.subr.bf16.mxu0 %v1446_v20  ;;  %vm6117_vm10 = vmmov %vm6115_vm13 }
 0x201   : > { %v1296_v27 = vpack.c.bf16 %v1288_v53, %v1287_v24  ;;  %vm6118_vm9 = vmmov %vm6117_vm10 }
 0x202   : > { %vm6120_vm0 = vmmov %vm6116_vm12 }
 0x203   : > { %3348 = vmatmul.mubr.msk.bf16.gmra.mxu1 %vm6112_vm14, %v1296_v27  ;;  %3354 = vmatpush3.bf16.msra.mxu0 %v1446_v20  ;;  %vm6119_vm14 = vmmov %vm6116_vm12 }
 0x204   : > { %vm6121_vm15 = vmmov %vm6118_vm9 }
 0x2ab   : > { %v3337_v34 = vpop.f32.mrf.mxu1 }
 0x2ac   : > { %v1373_v31 = vadd.f32 %v3337_v34, %v4720_v63 }
 0x2ad   : > { %v1364_v54 = vpop.f32.mrf.mxu1 }
 0x2ae   : > { %v1365_v32 = vadd.f32 %v4720_v63, %v1364_v54  ;;  %v1429_v46 = vmax.f32 %v1373_v31, 0.0 }
 0x2af   : > { %v3338_v48 = vpop.f32.mrf.mxu1 }
 0x2b0   : > { %v1376_v40 = vadd.f32 %v3338_v48, %v4720_v63  ;;  %v4726_v55 = vmax.f32 %v1365_v32, 0.0  ;;  %v1451_v53 = vrot.slane %v1429_v46, 7  ;;  %v1499_v14 = vrot.slane %v1429_v46, 1 }
 0x2b1   : > { %v1367_v15 = vpop.f32.mrf.mxu1 }
 0x2b2   : > { %v1430_v60 = vmax.f32 %v1376_v40, 0.0  ;;  %v1368_v49 = vadd.f32 %v4720_v63, %v1367_v15  ;;  %v5962_v20 = vrot.slane %v4726_v55, 7  ;;  %v5967_v32 = vrot.slane %v4726_v55, 1 }
 0x2b3   : > { %v3341_v21 = vpop.f32.mrf.mxu1 }
 0x2b4   : > { %v1452_v37 = vrot.slane %v1430_v60, 7  ;;  %v1428_v9 = vmax.f32 %v1368_v49, 0.0  ;;  %v3688_v27 = vpack.i.bf16 %v1430_v60, %v1429_v46  ;;  %v1389_v26 = vadd.f32 %v3341_v21, %v4720_v63 }
 0x2b5   : > { %v1380_v24 = vpop.f32.mrf.mxu1  ;;  %v1500_v46 = vrot.slane %v1430_v60, 1 }
 0x2b6   : > { %v1450_v6 = vrot.slane %v1428_v9, 7  ;;  %v1498_v0 = vrot.slane %v1428_v9, 1  ;;  %v1381_v44 = vadd.f32 %v4720_v63, %v1380_v24  ;;  %3689 = vrot.lane.b32.xlu1 %v3688_v27, %s3951_s27  ;;  %v3693_v31 = vpack.i.bf16 %v1428_v9, %v4726_v55 }
 0x2b7   : > { %v3342_v34 = vpop.f32.mrf.mxu1  ;;  %v4735_v54 = vsel %vm6115_vm13, %v1451_v53, %v1452_v37  ;;  %vm6122_vm13 = vmmov %vm6120_vm0 }
 0x2b8   : > { %v1431_v48 = vmax.f32 %v1381_v44, 0.0  ;;  %v1392_v40 = vadd.f32 %v3342_v34, %v4720_v63  ;;  %3694 = vrot.lane.b32.xlu0 %v3693_v31, %s3951_s27  ;;  %v1526_v49 = vsel %vm6116_vm12, %v1498_v0, %v1499_v14  ;;  %v4744_v21 = vsel %vm6117_vm10, %v1450_v6, %v1451_v53  ;;  %vm6123_vm12 = vmmov %vm6120_vm0 }
 0x2b9   : > { %v1383_v15 = vpop.f32.mrf.mxu1  ;;  %v4750_v9 = vsel %vm6118_vm9, %v5962_v20, %v1450_v6  ;;  %v1527_v44 = vsel %vm6119_vm14, %v5967_v32, %v1498_v0  ;;  %v1433_v34 = vmax.f32 %v1389_v26, 0.0  ;;  %v1530_v53 = vsel %vm4069_vm1, 0.0, %v1526_v49  ;;  %vm6124_vm10 = vmmov %vm6118_vm9 }
 0x2ba   : > { %v1453_v24 = vrot.slane %v1431_v48, 7  ;;  %v1501_v27 = vrot.slane %v1431_v48, 1  ;;  %v1384_v60 = vadd.f32 %v4720_v63, %v1383_v15  ;;  %v1434_v31 = vmax.f32 %v1392_v40, 0.0  ;;  %vm6125_vm9 = vmmov %vm6120_vm0 }
 0x2bb   : > { %v3345_v22 = vpop.f32.mrf.mxu1  ;;  %v3698_v6 = vpack.i.bf16 %v1530_v53, %v1527_v44  ;;  %v1525_v40 = vsel %vm6122_vm13, %v1499_v14, %v1500_v46  ;;  %v1503_v49 = vrot.slane %v1433_v34, 1  ;;  %v1455_v32 = vrot.slane %v1433_v34, 7  ;;  %vm6126_vm14 = vmmov %vm6124_vm10 }
 0x2bc   : > { %v1432_v29 = vmax.f32 %v1384_v60, 0.0  ;;  %v1405_v4 = vadd.f32 %v3345_v22, %v4720_v63  ;;  %v1524_v17 = vsel %vm6120_vm0, %v1500_v46, %v1501_v27  ;;  %v4764_v15 = vsel %vm6121_vm15, %v1452_v37, %v1453_v24  ;;  %vm6127_vm0 = vmmov %vm6124_vm10 }
 0x2bd   : > { %v1396_v20 = vpop.f32.mrf.mxu1  ;;  %v1456_v60 = vrot.slane %v1434_v31, 7  ;;  %3699 = vrot.lane.b32.xlu0 %v3698_v6, %s3952_s21  ;;  %v1532_v44 = vsel %vm4089_vm2, 0.0, %v1524_v17  ;;  %v1504_v36 = vrot.slane %v1434_v31, 1  ;;  %vm6128_vm15 = vmmov %vm6125_vm9 }
 0x2be   : > { %v1454_v3 = vrot.slane %v1432_v29, 7  ;;  %v1502_v0 = vrot.slane %v1432_v29, 1  ;;  %v1397_v26 = vadd.f32 %v4720_v63, %v1396_v20  ;;  %v3713_v53 = vpack.i.bf16 %v1432_v29, %v1431_v48  ;;  %vm6129_vm13 = vmmov %vm6125_vm9 }
 0x2bf   : > { %v3346_v22 = vpop.f32.mrf.mxu1  ;;  %v4773_v25 = vmax.f32 %v1405_v4, 0.0  ;;  %v3703_v20 = vpack.i.bf16 %v1532_v44, %v1525_v40 }
 0x2c0   : > { %v1435_v37 = vmax.f32 %v1397_v26, 0.0  ;;  %v1408_v2 = vadd.f32 %v3346_v22, %v4720_v63  ;;  %v1522_v14 = vsel %vm6123_vm12, %v1502_v0, %v1503_v49  ;;  %v4779_v46 = vsel %vm6124_vm10, %v1453_v24, %v1454_v3  ;;  %vm6130_vm12 = vmmov %vm6127_vm0 }
 0x2c1   : > { %v1399_v58 = vpop.f32.mrf.mxu1  ;;  %v1523_v29 = vsel %vm6125_vm9, %v1501_v27, %v1502_v0  ;;  %3704 = vrot.lane.b32.xlu1 %v3703_v20, %s3952_s21  ;;  %3714 = vrot.lane.b32.xlu0 %v3713_v53, %s3951_s27  ;;  %v1534_v26 = vsel %vm4103_vm3, 0.0, %v1522_v14  ;;  %v4790_v24 = vsel %vm6126_vm14, %v1455_v32, %v1456_v60  ;;  %v4794_v40 = vsel %vm6127_vm0, %v1454_v3, %v1455_v32  ;;  %vm6131_vm10 = vmmov %vm6125_vm9 }
 0x2c2   : > { %v1457_v6 = vrot.slane %v1435_v37, 7  ;;  %v1505_v45 = vrot.slane %v1435_v37, 1  ;;  %v1400_v17 = vadd.f32 %v4720_v63, %v1399_v58  ;;  %v1438_v48 = vmax.f32 %v1408_v2, 0.0  ;;  %vm6132_vm14 = vmmov %vm6127_vm0 }
 0x2c3   : > { %v3349_v4 = vpop.f32.mrf.mxu1  ;;  %v3708_v2 = vpack.i.bf16 %v1434_v31, %v1433_v34  ;;  %v1459_v0 = vrot.slane %v4773_v25, 7  ;;  %v3718_v22 = vpack.i.bf16 %v1534_v26, %v1523_v29  ;;  %v1521_v20 = vsel %vm6129_vm13, %v1503_v49, %v1504_v36  ;;  %vm6134_vm13 = vmmov %vm6125_vm9 }
 0x2c4   : > { %v1436_v58 = vmax.f32 %v1400_v17, 0.0  ;;  %v1421_v27 = vadd.f32 %v3349_v4, %v4720_v63  ;;  %v1520_v53 = vsel %vm6128_vm15, %v1504_v36, %v1505_v45  ;;  %v1507_v14 = vrot.slane %v4773_v25, 1  ;;  %vm6133_vm15 = vmmov %vm6127_vm0 }
 0x2c5   : > { %v1412_v44 = vpop.f32.mrf.mxu1  ;;  %v1460_v32 = vrot.slane %v1438_v48, 7  ;;  %3709 = vrot.lane.b32.xlu1 %v3708_v2, %s3951_s27  ;;  %3719 = vrot.lane.b32.xlu0 %v3718_v22, %s3952_s21  ;;  %v1536_v31 = vsel %vm4136_vm4, 0.0, %v1520_v53  ;;  %v4810_v29 = vsel %vm6130_vm12, %v1456_v60, %v1457_v6  ;;  %v1508_v36 = vrot.slane %v1438_v48, 1  ;;  %vm6135_vm12 = vmmov %vm6125_vm9 }
 0x2c6   : > { %v1458_v7 = vrot.slane %v1436_v58, 7  ;;  %v1506_v33 = vrot.slane %v1436_v58, 1  ;;  %v1413_v3 = vadd.f32 %v4720_v63, %v1412_v44  ;;  %v3733_v17 = vpack.i.bf16 %v1436_v58, %v1435_v37 }
 0x2c7   : > { %v3350_v34 = vpop.f32.mrf.mxu1  ;;  %v1441_v49 = vmax.f32 %v1421_v27, 0.0  ;;  %v3723_v44 = vpack.i.bf16 %v1536_v31, %v1521_v20  ;;  %v1517_v31 = vsel %vm6135_vm12, %v1507_v14, %v1508_v36  ;;  %vm6141_vm12 = vmmov %vm6127_vm0 }
 0x2c8   : > { %v1439_v4 = vmax.f32 %v1413_v3, 0.0  ;;  %v1424_v26 = vadd.f32 %v3350_v34, %v4720_v63  ;;  %v1518_v2 = vsel %vm6131_vm10, %v1506_v33, %v1507_v14  ;;  %v1519_v22 = vsel %vm6125_vm9, %v1505_v45, %v1506_v33  ;;  %vm6136_vm10 = vmmov %vm6127_vm0 }
 0x2c9   : > { %v1415_v18 = vpop.f32.mrf.mxu1  ;;  %v4819_v37 = vsel %vm6132_vm14, %v1457_v6, %v1458_v7  ;;  %3724 = vrot.lane.b32.xlu1 %v3723_v44, %s3952_s21  ;;  %3734 = vrot.lane.b32.xlu0 %v3733_v17, %s3951_s27  ;;  %v1538_v20 = vsel %vm4162_vm5, 0.0, %v1518_v2  ;;  %v4828_v3 = vsel %vm6127_vm0, %v1459_v0, %v1460_v32  ;;  %v4832_v33 = vsel %vm6133_vm15, %v1458_v7, %v1459_v0  ;;  %vm6137_vm14 = vmmov %vm6125_vm9 }
 0x2ca   : > { %v1461_v58 = vrot.slane %v1439_v4, 7  ;;  %v1509_v60 = vrot.slane %v1439_v4, 1  ;;  %v1442_v53 = vmax.f32 %v1424_v26, 0.0  ;;  %v1416_v27 = vadd.f32 %v4720_v63, %v1415_v18  ;;  %vm6139_vm15 = vmmov %vm6127_vm0 }
 0x2cb   : > { %v3738_v34 = vpack.i.bf16 %v1538_v20, %v1519_v22  ;;  %v3728_v18 = vpack.i.bf16 %v1438_v48, %v4773_v25  ;;  %v1511_v26 = vrot.slane %v1441_v49, 1  ;;  %v1463_v22 = vrot.slane %v1441_v49, 7 }
 0x2cc   : > { %v1464_v45 = vrot.slane %v1442_v53, 7  ;;  %v1440_v6 = vmax.f32 %v1416_v27, 0.0  ;;  %v1516_v63 = vsel %vm6134_vm13, %v1508_v36, %v1509_v60  ;;  %v4841_v17 = vsel %vm6136_vm10, %v1460_v32, %v1461_v58  ;;  %vm6140_vm13 = vmmov %vm6127_vm0 }
 0x2cd   : > { %v1540_v7 = vsel %vm4201_vm6, 0.0, %v1516_v63  ;;  %v1512_v0 = vrot.slane %v1442_v53, 1  ;;  %3729 = vrot.lane.b32.xlu1 %v3728_v18, %s3951_s27  ;;  %3739 = vrot.lane.b32.xlu0 %v3738_v34, %s3952_s21  ;;  %v6138_v36 = vrot.slane %v4726_v55, 7  ;;  %v6142_v18 = vrot.slane %v4726_v55, 1  ;;  %vm6143_vm10 = vmmov %vm6125_vm9 }
 0x2ce   : > { %v1462_v44 = vrot.slane %v1440_v6, 7  ;;  %v1510_v2 = vrot.slane %v1440_v6, 1  ;;  %v3743_v25 = vpack.i.bf16 %v1540_v7, %v1517_v31  ;;  %v3753_v48 = vpack.i.bf16 %v1440_v6, %v1439_v4 }
 0x2cf   : > { %v1480_v27 = vsel %vm6127_vm0, %v1464_v45, %v6138_v36  ;;  %v4863_v4 = vsel %vm6140_vm13, %v1463_v22, %v1464_v45  ;;  %v1528_v63 = vsel %vm6143_vm10, %v1512_v0, %v6142_v18  ;;  %v1513_v31 = vsel %vm6125_vm9, %v1511_v26, %v1512_v0 }
 0x2d0   : > { %v1514_v14 = vsel %vm6125_vm9, %v1510_v2, %v1511_v26  ;;  %v1515_v32 = vsel %vm6137_vm14, %v1509_v60, %v1510_v2  ;;  %v4859_v34 = vsel %vm6139_vm15, %v1461_v58, %v1462_v44  ;;  %v4867_v6 = vsel %vm6141_vm12, %v1462_v44, %v1463_v22 }
 0x2d1   : > { %v1542_v20 = vsel %vm4214_vm8, 0.0, %v1514_v14  ;;  %3744 = vrot.lane.b32.xlu1 %v3743_v25, %s3952_s21  ;;  %3754 = vrot.lane.b32.xlu0 %v3753_v48, %s3951_s27  ;;  %v3748_v58 = vpack.i.bf16 %v1442_v53, %v1441_v49  ;;  %vm6144_vm14 = vnez %v6016_v13  ;;  %vm6145_vm0 = vnez %v6020_v38 }
 0x2d2   : > { %v3758_v60 = vpack.i.bf16 %v1542_v20, %v1515_v32  ;;  %v1544_v45 = vsel %vm6144_vm14, 0.0, %v1528_v63  ;;  %v1481_v49 = vsel %vm6145_vm0, 0.0, %v1480_v27  ;;  %vm6146_vm15 = vcmask 64512  }
 0x2d3   : > { %v3763_v44 = vpack.i.bf16 %v1544_v45, %v1513_v31  ;;  %vm6147_vm13 = vmmov %vm6146_vm15  ;;  %vm6148_vm12 = vcmask 130048   ;;  %vm6150_vm9 = vnez %v6022_v12 }
 0x2d4   : > { %vm6149_vm10 = vmmov %vm6148_vm12  ;;  %v1483_v27 = vsel %vm6150_vm9, 0.0, %v4744_v21  ;;  %vm6155_vm9 = vnez %v6025_v39 }
 0x2d5   : > { %3749 = vrot.lane.b32.xlu1 %v3748_v58, %s3951_s27  ;;  %3759 = vrot.lane.b32.xlu0 %v3758_v60, %s3952_s21  ;;  %vm6151_vm0 = vmmov %vm6147_vm13  ;;  %v1485_v21 = vsel %vm6155_vm9, 0.0, %v4764_v15  ;;  %vm6158_vm9 = vnez %v6027_v16 }
 0x2d6   : > { %v1487_v15 = vsel %vm6158_vm9, 0.0, %v4794_v40  ;;  %vm6161_vm9 = vnez %v6029_v50 }
 0x2d7   : > { %v1489_v40 = vsel %vm6161_vm9, 0.0, %v4810_v29  ;;  %v1491_v29 = vsel %vm6099_vm11, 0.0, %v4832_v33  ;;  %vm6166_vm11 = vnez %v6033_v8 }
 0x2d8   : > { %v1493_v33 = vsel %vm6166_vm11, 0.0, %v4841_v17  ;;  %v1495_v17 = vsel %vm4417_vm7, 0.0, %v4867_v6  ;;  %v1875_v6 = vld [vmem:[%s5929_s1 + $0x68] sm:$0xff] }
 0x2d9   : > { %3764 = vrot.lane.b32.xlu1 %v3763_v44, %s3952_s21 }
 0x328   : > { %v3690_v25 = vpop.permute.xlu1 %3689 }
 0x329   : > { %v3692_v0 = vunpack.i.h.bf16 %v3690_v25  ;;  %v3691_v22 = vunpack.i.l.bf16 %v3690_v25 }
 0x32a   : > { %v3695_v2 = vpop.permute.xlu0 %3694 }
 0x32b   : > { %v3697_v7 = vunpack.i.h.bf16 %v3695_v2  ;;  %v3696_v55 = vunpack.i.l.bf16 %v3695_v2  ;;  %v1675_v45 = vsel %vm6151_vm0, %v1483_v27, %v3691_v22 }
 0x32d   : > { %v1673_v14 = vsel %vm6146_vm15, %v1481_v49, %v3696_v55  ;;  %v1674_v32 = vsel %vm6147_vm13, %v4750_v9, %v3697_v7  ;;  %vm6152_vm15 = vmmov %vm6151_vm0  ;;  %vm6153_vm13 = vcmask 195584  }
 0x32e   : > { %v1676_v44 = vsel %vm6152_vm15, %v4735_v54, %v3692_v0  ;;  %vm6156_vm15 = vmmov %vm6151_vm0 }
 0x32f   : > { %v3700_v48 = vpop.permute.xlu0 %3699  ;;  %vm6170_vm11 = vmmov %vm6153_vm13 }
 0x330   : > { %v3702_v53 = vunpack.i.h.bf16 %v3700_v48  ;;  %v3701_v26 = vunpack.i.l.bf16 %v3700_v48 }
 0x332   : > { %v1689_v36 = vsel %vm6148_vm12, %v1673_v14, %v3701_v26  ;;  %v1690_v20 = vsel %vm6149_vm10, %v1674_v32, %v3702_v53  ;;  %vm6154_vm12 = vmmov %vm6149_vm10 }
 0x333   : > { %v1705_v60 = vpack.c.bf16 %v1690_v20, %v1689_v36  ;;  %v3705_v18 = vpop.permute.xlu1 %3704  ;;  %v3715_v63 = vpop.permute.xlu0 %3714 }
 0x334   : > { %v3707_v58 = vunpack.i.h.bf16 %v3705_v18  ;;  %v3706_v31 = vunpack.i.l.bf16 %v3705_v18  ;;  %v3717_v2 = vunpack.i.h.bf16 %v3715_v63  ;;  %v3716_v9 = vunpack.i.l.bf16 %v3715_v63 }
 0x335   : > { %3355 = vmatprep.mubr.msk.bf16.mxu0 %vm6153_vm13, %v1705_v60 }
 0x336   : > { %v1692_v7 = vsel %vm6154_vm12, %v1676_v44, %v3707_v58  ;;  %v1691_v55 = vsel %vm6149_vm10, %v1675_v45, %v3706_v31  ;;  %v1678_v54 = vsel %vm6151_vm0, %v4779_v46, %v3717_v2  ;;  %v1677_v0 = vsel %vm6156_vm15, %v1485_v21, %v3716_v9  ;;  %vm6157_vm12 = vmmov %vm6149_vm10 }
 0x337   : > { %v1706_v25 = vpack.c.bf16 %v1692_v7, %v1691_v55  ;;  %v3710_v48 = vpop.permute.xlu1 %3709  ;;  %v3720_v49 = vpop.permute.xlu0 %3719  ;;  %vm6159_vm15 = vmmov %vm6151_vm0 }
 0x338   : > { %v3722_v53 = vunpack.i.h.bf16 %v3720_v49  ;;  %v3721_v26 = vunpack.i.l.bf16 %v3720_v49  ;;  %v3712_v22 = vunpack.i.h.bf16 %v3710_v48  ;;  %v3711_v14 = vunpack.i.l.bf16 %v3710_v48 }
 0x339   : > { %3356 = vmatmul.mubr.msk.bf16.vlgmr.msra.gmra.mxu0 %vm6153_vm13, %v1706_v25 }
 0x33a   : > { %v1693_v32 = vsel %vm6157_vm12, %v1677_v0, %v3721_v26  ;;  %v1694_v36 = vsel %vm6149_vm10, %v1678_v54, %v3722_v53  ;;  %v1680_v46 = vsel %vm6151_vm0, %v4790_v24, %v3712_v22  ;;  %v1679_v58 = vsel %vm6159_vm15, %v1487_v15, %v3711_v14  ;;  %vm6160_vm12 = vmmov %vm6149_vm10 }
 0x33b   : > { %v1707_v20 = vpack.c.bf16 %v1694_v36, %v1693_v32  ;;  %v3725_v60 = vpop.permute.xlu1 %3724  ;;  %v3735_v18 = vpop.permute.xlu0 %3734  ;;  %vm6162_vm15 = vmmov %vm6151_vm0 }
 0x33c   : > { %v3727_v63 = vunpack.i.h.bf16 %v3725_v60  ;;  %v3726_v27 = vunpack.i.l.bf16 %v3725_v60  ;;  %v3737_v31 = vunpack.i.h.bf16 %v3735_v18  ;;  %v3736_v45 = vunpack.i.l.bf16 %v3735_v18 }
 0x33d   : > { %3359 = vmatprep.mubr.msk.bf16.mxu0 %vm6153_vm13, %v1707_v20 }
 0x33e   : > { %v1695_v44 = vsel %vm6160_vm12, %v1679_v58, %v3726_v27  ;;  %v1696_v2 = vsel %vm6149_vm10, %v1680_v46, %v3727_v63  ;;  %v1682_v24 = vsel %vm6151_vm0, %v4819_v37, %v3737_v31  ;;  %v1681_v49 = vsel %vm6162_vm15, %v1489_v40, %v3736_v45  ;;  %vm6163_vm12 = vmmov %vm6149_vm10 }
 0x33f   : > { %v1708_v9 = vpack.c.bf16 %v1696_v2, %v1695_v44  ;;  %v3730_v7 = vpop.permute.xlu1 %3729  ;;  %v3740_v55 = vpop.permute.xlu0 %3739  ;;  %vm6164_vm15 = vmmov %vm6151_vm0 }
 0x340   : > { %v3742_v25 = vunpack.i.h.bf16 %v3740_v55  ;;  %v3741_v48 = vunpack.i.l.bf16 %v3740_v55  ;;  %v3732_v21 = vunpack.i.h.bf16 %v3730_v7  ;;  %v3731_v53 = vunpack.i.l.bf16 %v3730_v7 }
 0x341   : > { %3360 = vmatmul.mubr.msk.bf16.gmra.mxu0 %vm6153_vm13, %v1708_v9 }
 0x342   : > { %v1697_v26 = vsel %vm6163_vm12, %v1681_v49, %v3741_v48  ;;  %v1698_v54 = vsel %vm6149_vm10, %v1682_v24, %v3742_v25  ;;  %v1684_v37 = vsel %vm6151_vm0, %v4828_v3, %v3732_v21  ;;  %v1683_v20 = vsel %vm6164_vm15, %v1491_v29, %v3731_v53  ;;  %vm6165_vm12 = vmmov %vm6149_vm10  ;;  %v4967_v29 = vld [vmem:[%s5929_s1 + $0x50] ss:$0 sm:$0xff] }
 0x343   : > { %v1709_v0 = vpack.c.bf16 %v1698_v54, %v1697_v26  ;;  %v3745_v22 = vpop.permute.xlu1 %3744  ;;  %v3755_v14 = vpop.permute.xlu0 %3754  ;;  %vm6167_vm15 = vmmov %vm6151_vm0  ;;  %v1873_v54 = vld [vmem:[%s5929_s1 + $0x58] sm:$0xff] }
 0x344   : > { %v3747_v32 = vunpack.i.h.bf16 %v3745_v22  ;;  %v3746_v36 = vunpack.i.l.bf16 %v3745_v22  ;;  %v3757_v60 = vunpack.i.h.bf16 %v3755_v14  ;;  %v3756_v18 = vunpack.i.l.bf16 %v3755_v14 }
 0x345   : > { %3363 = vmatprep.mubr.msk.bf16.mxu0 %vm6153_vm13, %v1709_v0  ;;  %v1877_v0 = vpack.c.bf16 %v1875_v6, %v1875_v6 }
 0x346   : > { %v1699_v15 = vsel %vm6165_vm12, %v1683_v20, %v3746_v36  ;;  %v1700_v63 = vsel %vm6149_vm10, %v1684_v37, %v3747_v32  ;;  %v1686_v3 = vsel %vm6151_vm0, %v4859_v34, %v3757_v60  ;;  %v1685_v44 = vsel %vm6167_vm15, %v1493_v33, %v3756_v18  ;;  %vm6168_vm12 = vmmov %vm6149_vm10 }
 0x347   : > { %v1710_v27 = vpack.c.bf16 %v1700_v63, %v1699_v15  ;;  %v3750_v46 = vpop.permute.xlu1 %3749  ;;  %v3760_v58 = vpop.permute.xlu0 %3759  ;;  %vm6169_vm15 = vmmov %vm6151_vm0 }
 0x348   : > { %v3762_v31 = vunpack.i.h.bf16 %v3760_v58  ;;  %v3761_v45 = vunpack.i.l.bf16 %v3760_v58  ;;  %v3752_v2 = vunpack.i.h.bf16 %v3750_v46  ;;  %v3751_v9 = vunpack.i.l.bf16 %v3750_v46 }
 0x349   : > { %3364 = vmatmul.mubr.msk.bf16.gmra.mxu0 %vm6153_vm13, %v1710_v27  ;;  %vm6171_vm13 = vmmov %vm6149_vm10 }
 0x34a   : > { %v1701_v7 = vsel %vm6168_vm12, %v1685_v44, %v3761_v45  ;;  %v1702_v55 = vsel %vm6149_vm10, %v1686_v3, %v3762_v31  ;;  %v1688_v34 = vsel %vm6151_vm0, %v4863_v4, %v3752_v2  ;;  %v1687_v49 = vsel %vm6169_vm15, %v1495_v17, %v3751_v9  ;;  %vm6172_vm12 = vmmov %vm6149_vm10  ;;  %v1874_v4 = vld [vmem:[%s5929_s1 + $0x60] sm:$0xff] }
 0x34b   : > { %v1711_v40 = vpack.c.bf16 %v1702_v55, %v1701_v7  ;;  %v3765_v25 = vpop.permute.xlu1 %3764  ;;  %vm6173_vm10 = vmmov %vm6170_vm11  ;;  %v1876_v22 = vpack.c.bf16 %v1874_v4, %v1873_v54  ;;  %vm6176_vm15 = vcmp.lt.s32.totalorder %v4023_v1, 1 }
 0x34c   : > { %v3767_v48 = vunpack.i.h.bf16 %v3765_v25  ;;  %v3766_v24 = vunpack.i.l.bf16 %v3765_v25 }
 0x34d   : > { %3367 = vmatprep.mubr.msk.bf16.mxu0 %vm6170_vm11, %v1711_v40  ;;  %vm6174_vm11 = vcmask 1043456  }
 0x34e   : > { %v1704_v21 = vsel %vm6171_vm13, %v1688_v34, %v3767_v48  ;;  %v1703_v53 = vsel %vm6172_vm12, %v1687_v49, %v3766_v24  ;;  %3480 = vmatprep.subr.msk.bf16.mxu1 %vm6174_vm11, %v1877_v0  ;;  %vm6175_vm0 = vmmov %vm6174_vm11  ;;  %vm6177_vm13 = vcmp.lt.s32.totalorder %v4023_v1, 7 }
 0x34f   : > { %v1712_v26 = vpack.c.bf16 %v1704_v21, %v1703_v53  ;;  %v2172_v14 = vsel %vm6175_vm0, %v1877_v0, 0  ;;  %vm6178_vm12 = vmmov %vm6177_vm13 }
 0x350   : > { %3372 = vmatpush3.bf16.msra.mxu1 %v2172_v14  ;;  %vm6180_vm11 = vmmov %vm6178_vm12 }
 0x351   : > { %3368 = vmatmul.mubr.msk.bf16.gmra.mxu0 %vm6173_vm10, %v1712_v26  ;;  %3373 = vmatprep.subr.bf16.mxu1 %v1876_v22  ;;  %vm6179_vm10 = vmmov %vm6176_vm15 }
 0x352   : > { %vm6182_vm0 = vmmov %vm6179_vm10 }
 0x354   : > { %3374 = vmatpush3.bf16.msra.mxu1 %v1876_v22 }
 0x3f9   : > { %v3357_v32 = vpop.f32.mrf.mxu0 }
 0x3fa   : > { %v1787_v36 = vadd.f32 %v3357_v32, %v4967_v29 }
 0x3fb   : > { %v1778_v37 = vpop.f32.mrf.mxu0 }
 0x3fc   : > { %v1779_v20 = vadd.f32 %v4967_v29, %v1778_v37  ;;  %v1843_v60 = vadd.f32 %v1787_v36, %v4448_v61 }
 0x3fd   : > { %v3358_v18 = vpop.f32.mrf.mxu0 }
 0x3fe   : > { %v1790_v15 = vadd.f32 %v3358_v18, %v4967_v29  ;;  %v1841_v63 = vadd.f32 %v1779_v20, %v4450_v5  ;;  %v4976_v33 = vmax.f32 %v1843_v60, 0.0 }
 0x3ff   : > { %v1781_v27 = vpop.f32.mrf.mxu0 }
 0x400   : > { %v1844_v46 = vadd.f32 %v1790_v15, %v4445_v59  ;;  %v1782_v58 = vadd.f32 %v4967_v29, %v1781_v27  ;;  %v4982_v61 = vmax.f32 %v1841_v63, 0.0  ;;  %v1881_v7 = vrot.slane %v4976_v33, 7 }
 0x401   : > { %v3361_v31 = vpop.f32.mrf.mxu0  ;;  %v1929_v25 = vrot.slane %v4976_v33, 1 }
 0x402   : > { %v4978_v45 = vmax.f32 %v1844_v46, 0.0  ;;  %v1842_v3 = vadd.f32 %v1782_v58, %v4452_v10  ;;  %v1803_v44 = vadd.f32 %v3361_v31, %v4967_v29  ;;  %v1927_v53 = vrot.slane %v4982_v61, 1 }
 0x403   : > { %v1794_v2 = vpop.f32.mrf.mxu0  ;;  %v1879_v60 = vrot.slane %v4982_v61, 7 }
 0x404   : > { %v1882_v9 = vrot.slane %v4978_v45, 7  ;;  %v2661_v5 = vpack.c.bf16 %v4978_v45, %v4976_v33  ;;  %v4987_v59 = vmax.f32 %v1842_v3, 0.0  ;;  %v1795_v55 = vadd.f32 %v4967_v29, %v1794_v2 }
 0x405   : > { %v3362_v40 = vpop.f32.mrf.mxu0  ;;  %v3768_v10 = vpack.i.bf16 %v4978_v45, %v4976_v33  ;;  %v1847_v48 = vadd.f32 %v1803_v44, %v4477_v51 }
 0x406   : > { %v1880_v17 = vrot.slane %v4987_v59, 7  ;;  %v1806_v24 = vadd.f32 %v3362_v40, %v4967_v29  ;;  %v3773_v34 = vpack.i.bf16 %v4987_v59, %v4982_v61  ;;  %v1845_v49 = vadd.f32 %v1795_v55, %v4472_v57 }
 0x407   : > { %3769 = vrot.lane.b32.xlu1 %v3768_v10, %s3951_s27  ;;  %v1797_v21 = vpop.f32.mrf.mxu0  ;;  %v1928_v26 = vrot.slane %v4987_v59, 1  ;;  %v5007_v6 = vsel %vm6176_vm15, %v1881_v7, %v1882_v9  ;;  %v1930_v57 = vrot.slane %v4978_v45, 1  ;;  %v5025_v32 = vmax.f32 %v1847_v48, 0.0 }
 0x408   : > { %v1848_v51 = vadd.f32 %v1806_v24, %v4496_v56  ;;  %v1798_v54 = vadd.f32 %v4967_v29, %v1797_v21  ;;  %3774 = vrot.lane.b32.xlu0 %v3773_v34, %s3951_s27  ;;  %v5013_v4 = vmax.f32 %v1845_v49, 0.0  ;;  %v5023_v56 = vsel %vm6179_vm10, %v1880_v17, %v1881_v7 }
 0x409   : > { %v3365_v0 = vpop.f32.mrf.mxu0  ;;  %v1956_v22 = vsel %vm6177_vm13, %v1928_v26, %v1929_v25  ;;  %v1957_v14 = vsel %vm6178_vm12, %v1927_v53, %v1928_v26  ;;  %v1955_v58 = vsel %vm6180_vm11, %v1929_v25, %v1930_v57  ;;  %v5048_v44 = vsel %vm6182_vm0, %v1879_v60, %v1880_v17  ;;  %vm6187_vm13 = vmmov %vm6182_vm0 }
 0x40a   : > { %v1846_v36 = vadd.f32 %v1798_v54, %v4489_v43  ;;  %v1819_v37 = vadd.f32 %v3365_v0, %v4967_v29  ;;  %v1960_v20 = vsel %vm4069_vm1, 0.0, %v1956_v22  ;;  %v1931_v63 = vrot.slane %v5013_v4, 1  ;;  %vm6181_vm1 = vmmov %vm6180_vm11  ;;  %v6184_v0 = vld [vmem:[#allocation13_spill] sm:$0xff] }
 0x40b   : > { %v1810_v18 = vpop.f32.mrf.mxu0  ;;  %v3778_v15 = vpack.i.bf16 %v1960_v20, %v1957_v14  ;;  %v5038_v31 = vmax.f32 %v1848_v51, 0.0  ;;  %v1883_v2 = vrot.slane %v5013_v4, 7  ;;  %v1885_v24 = vrot.slane %v5025_v32, 7  ;;  %vm6185_vm15 = vmmov %vm6181_vm1 }
 0x40c   : > { %v5033_v27 = vmax.f32 %v1846_v36, 0.0  ;;  %v1811_v46 = vadd.f32 %v4967_v29, %v1810_v18  ;;  %v1851_v43 = vadd.f32 %v1819_v37, %v4516_v30  ;;  %v1954_v3 = vsel %vm6181_vm1, %v1930_v57, %v1931_v63  ;;  %vm6188_vm12 = vmmov %vm6182_vm0 }
 0x40d   : > { %3779 = vrot.lane.b32.xlu0 %v3778_v15, %s3952_s21  ;;  %v3366_v19 = vpop.f32.mrf.mxu0  ;;  %v1933_v30 = vrot.slane %v5025_v32, 1  ;;  %v1962_v25 = vsel %vm4089_vm2, 0.0, %v1954_v3  ;;  %vm6183_vm2 = vmmov %vm6181_vm1  ;;  %v1934_v54 = vrot.slane %v5038_v31, 1 }
 0x40e   : > { %v1849_v7 = vadd.f32 %v1811_v46, %v4504_v23  ;;  %v1822_v55 = vadd.f32 %v3366_v19, %v4967_v29  ;;  %v1884_v40 = vrot.slane %v5033_v27, 7  ;;  %v3793_v48 = vpack.i.bf16 %v5033_v27, %v5013_v4  ;;  %vm6190_vm10 = vmmov %vm6181_vm1 }
 0x40f   : > { %v1813_v10 = vpop.f32.mrf.mxu0  ;;  %v1932_v17 = vrot.slane %v5033_v27, 1  ;;  %v5065_v21 = vmax.f32 %v1851_v43, 0.0  ;;  %v3783_v26 = vpack.i.bf16 %v1962_v25, %v1955_v58  ;;  %v5091_v46 = vsel %vm6188_vm12, %v1882_v9, %v1883_v2  ;;  %v6191_v25 = vld [vmem:[#allocation15_spill] sm:$0xff]  ;;  %vm6194_vm11 = vmmov %vm6181_vm1 }
 0x410   : > { %v5061_v34 = vmax.f32 %v1849_v7, 0.0  ;;  %v1852_v23 = vadd.f32 %v1822_v55, %v4528_v41  ;;  %v1814_v49 = vadd.f32 %v4967_v29, %v1813_v10  ;;  %v5085_v15 = vsel %vm6187_vm13, %v1883_v2, %v1884_v40 }
 0x411   : > { %3794 = vrot.lane.b32.xlu0 %v3793_v48, %s3951_s27  ;;  %v3369_v28 = vpop.f32.mrf.mxu0  ;;  %v1952_v51 = vsel %vm6183_vm2, %v1932_v17, %v1933_v30  ;;  %v1953_v41 = vsel %vm6185_vm15, %v1931_v63, %v1932_v17  ;;  %3784 = vrot.lane.b32.xlu1 %v3783_v26, %s3952_s21  ;;  %v1886_v63 = vrot.slane %v5038_v31, 7  ;;  %v3788_v19 = vpack.i.bf16 %v5038_v31, %v5025_v32  ;;  %v6192_v17 = vld [vmem:[#allocation14_spill] sm:$0xff] }
 0x412   : > { %v5071_v57 = vmax.f32 %v1852_v23, 0.0  ;;  %v1850_v22 = vadd.f32 %v1814_v49, %v6184_v0  ;;  %v1835_v14 = vadd.f32 %v3369_v28, %v4967_v29  ;;  %v1964_v20 = vsel %vm4103_vm3, 0.0, %v1952_v51  ;;  %vm6189_vm3 = vmmov %vm6181_vm1 }
 0x413   : > { %v1826_v36 = vpop.f32.mrf.mxu0  ;;  %v1935_v18 = vrot.slane %v5061_v34, 1  ;;  %v3798_v3 = vpack.i.bf16 %v1964_v20, %v1953_v41  ;;  %v1951_v10 = vsel %vm6190_vm10, %v1933_v30, %v1934_v54  ;;  %v1937_v9 = vrot.slane %v5065_v21, 1 }
 0x414   : > { %v5094_v58 = vmax.f32 %v1850_v22, 0.0  ;;  %v1827_v43 = vadd.f32 %v4967_v29, %v1826_v36  ;;  %v1887_v2 = vrot.slane %v5061_v34, 7  ;;  %v1855_v48 = vadd.f32 %v1835_v14, %v6191_v25  ;;  %v6193_v22 = vld [vmem:[#allocation16_spill] sm:$0xff] }
 0x415   : > { %v3370_v7 = vpop.f32.mrf.mxu0  ;;  %v1950_v55 = vsel %vm6189_vm3, %v1934_v54, %v1935_v18  ;;  %v1890_v26 = vrot.slane %v5071_v57, 7  ;;  %3789 = vrot.lane.b32.xlu1 %v3788_v19, %s3951_s27  ;;  %3799 = vrot.lane.b32.xlu0 %v3798_v3, %s3952_s21  ;;  %v1938_v36 = vrot.slane %v5071_v57, 1  ;;  %v6306_v33 = vpack.c.bf16 %v5071_v57, %v5065_v21 }
 0x416   : > { %v1853_v23 = vadd.f32 %v1827_v43, %v6192_v17  ;;  %v1838_v49 = vadd.f32 %v3370_v7, %v4967_v29  ;;  %v1966_v30 = vsel %vm4136_vm4, 0.0, %v1950_v55  ;;  %v3813_v51 = vpack.i.bf16 %v5094_v58, %v5061_v34  ;;  %vm6195_vm4 = vmmov %vm6181_vm1  ;;  %v6196_v7 = vld [vmem:[#allocation17_spill] sm:$0xff] }
 0x417   : > { %v1829_v28 = vpop.f32.mrf.mxu0  ;;  %v1936_v54 = vrot.slane %v5094_v58, 1  ;;  %v1888_v37 = vrot.slane %v5094_v58, 7  ;;  %v3803_v20 = vpack.i.bf16 %v1966_v30, %v1951_v10  ;;  %v5126_v19 = vmax.f32 %v1855_v48, 0.0  ;;  %vm6197_vm1 = vmmov %vm6182_vm0 }
 0x418   : > { %v5116_v0 = vmax.f32 %v1853_v23, 0.0  ;;  %v1856_v14 = vadd.f32 %v1838_v49, %v6193_v22  ;;  %v1830_v41 = vadd.f32 %v4967_v29, %v1829_v28  ;;  %v3808_v10 = vpack.i.bf16 %v5071_v57, %v5065_v21  ;;  %vm6199_vm0 = vmmov %vm6183_vm2 }
 0x419   : > { %v1948_v52 = vsel %vm6194_vm11, %v1936_v54, %v1937_v9  ;;  %v1949_v43 = vsel %vm6195_vm4, %v1935_v18, %v1936_v54  ;;  %3804 = vrot.lane.b32.xlu1 %v3803_v20, %s3952_s21  ;;  %3814 = vrot.lane.b32.xlu0 %v3813_v51, %s3951_s27  ;;  %v5142_v18 = vsel %vm6197_vm1, %v1885_v24, %v1886_v63  ;;  %vm6201_vm15 = vmmov %vm6197_vm1 }
 0x41a   : > { %v5128_v3 = vmax.f32 %v1856_v14, 0.0  ;;  %v1854_v55 = vadd.f32 %v1830_v41, %v6196_v7  ;;  %v1968_v29 = vsel %vm4162_vm5, 0.0, %v1948_v52  ;;  %v1939_v17 = vrot.slane %v5116_v0, 1  ;;  %vm6198_vm5 = vmmov %vm6183_vm2 }
 0x41b   : > { %v3818_v25 = vpack.i.bf16 %v1968_v29, %v1949_v43  ;;  %v1947_v23 = vsel %vm6198_vm5, %v1937_v9, %v1938_v36  ;;  %vm6200_vm2 = vmmov %vm6197_vm1  ;;  %v5162_v51 = vsel %vm6201_vm15, %v1887_v2, %v1888_v37  ;;  %v1941_v41 = vrot.slane %v5126_v19, 1 }
 0x41c   : > { %v1894_v48 = vrot.slane %v5128_v3, 7  ;;  %v5145_v62 = vmax.f32 %v1854_v55, 0.0  ;;  %v1942_v49 = vrot.slane %v5128_v3, 1  ;;  %v1946_v28 = vsel %vm6199_vm0, %v1938_v36, %v1939_v17  ;;  %vm6202_vm13 = vmmov %vm6197_vm1 }
 0x41d   : > { %v5158_v30 = vsel %vm6200_vm2, %v1884_v40, %v1885_v24  ;;  %v5166_v9 = vsel %vm6202_vm13, %v1886_v63, %v1887_v2  ;;  %v1970_v22 = vsel %vm4201_vm6, 0.0, %v1946_v28  ;;  %v1891_v40 = vrot.slane %v5116_v0, 7  ;;  %3809 = vrot.lane.b32.xlu1 %v3808_v10, %s3951_s27  ;;  %3819 = vrot.lane.b32.xlu0 %v3818_v25, %s3952_s21  ;;  %vm6203_vm12 = vmmov %vm6199_vm0 }
 0x41e   : > { %v1892_v54 = vrot.slane %v5145_v62, 7  ;;  %v1940_v14 = vrot.slane %v5145_v62, 1  ;;  %v3823_v24 = vpack.i.bf16 %v1970_v22, %v1947_v23  ;;  %v3833_v63 = vpack.i.bf16 %v5145_v62, %v5116_v0  ;;  %vm6204_vm6 = vmmov %vm6199_vm0 }
 0x41f   : > { %v1889_v2 = vrot.slane %v5065_v21, 7  ;;  %vm6205_vm3 = vmmov %vm6197_vm1  ;;  %v1893_v52 = vrot.slane %v5126_v19, 7  ;;  %v3828_v25 = vpack.i.bf16 %v5128_v3, %v5126_v19  ;;  %v2662_v23 = vpack.c.bf16 %v5033_v27, %v5013_v4  ;;  %v2403_v27 = vld [vmem:[%s5929_s1 + $0x90] sm:$0xff]  ;;  %v2401_v21 = vld [vmem:[%s5929_s1 + $0x80] sm:$0xff] }
 0x420   : > { %v1944_v42 = vsel %vm6203_vm12, %v1940_v14, %v1941_v41  ;;  %v1945_v36 = vsel %vm6204_vm6, %v1939_v17, %v1940_v14  ;;  %v1910_v20 = vsel %vm6205_vm3, %v1894_v48, %v1879_v60  ;;  %vm6206_vm10 = vmmov %vm6199_vm0  ;;  %v5204_v60 = vsel %vm6197_vm1, %v1891_v40, %v1892_v54 }
 0x421   : > { %v1972_v43 = vsel %vm4214_vm8, 0.0, %v1944_v42  ;;  %v1958_v7 = vsel %vm6206_vm10, %v1942_v49, %v1927_v53  ;;  %vm6207_vm11 = vmmov %vm6197_vm1  ;;  %3824 = vrot.lane.b32.xlu1 %v3823_v24, %s3952_s21  ;;  %3834 = vrot.lane.b32.xlu0 %v3833_v63, %s3951_s27  ;;  %v2660_v17 = vpack.c.bf16 %v4987_v59, %v4982_v61  ;;  %vm6213_vm15 = vnez %v6020_v38  ;;  %v2405_v59 = vld [vmem:[%s5929_s1 + $0xa0] sm:$0xff] }
 0x422   : > { %v3838_v55 = vpack.i.bf16 %v1972_v43, %v1945_v36  ;;  %v5196_v29 = vsel %vm6207_vm11, %v1889_v2, %v1890_v26  ;;  %vm6208_vm4 = vmmov %vm6197_vm1  ;;  %v1974_v14 = vsel %vm6144_vm14, 0.0, %v1958_v7  ;;  %vm6214_vm14 = vcmask 64512  }
 0x423   : > { %v5200_v10 = vsel %vm6208_vm4, %v1888_v37, %v1889_v2  ;;  %vm6209_vm8 = vmmov %vm6197_vm1  ;;  %vm6216_vm12 = vcmask 130048   ;;  %vm6218_vm3 = vcmask 195584   ;;  %vm6219_vm10 = vnez %v6022_v12 }
 0x424   : > { %v5210_v35 = vsel %vm6209_vm8, %v1890_v26, %v1891_v40  ;;  %vm6210_vm5 = vmmov %vm6197_vm1  ;;  %v2663_v26 = vpack.c.bf16 %v5038_v31, %v5025_v32  ;;  %v1913_v38 = vsel %vm6219_vm10, 0.0, %v5023_v56  ;;  %v6308_v45 = vpack.c.bf16 %v5145_v62, %v5116_v0  ;;  %v2402_v32 = vld [vmem:[%s5929_s1 + $0x88] sm:$0xff]  ;;  %v2400_v31 = vld [vmem:[%s5929_s1 + $0x78] sm:$0xff] }
 0x425   : > { %v5214_v53 = vsel %vm6210_vm5, %v1893_v52, %v1894_v48  ;;  %vm6211_vm0 = vmmov %vm6197_vm1  ;;  %v2664_v48 = vpack.c.bf16 %v5094_v58, %v5061_v34  ;;  %3829 = vrot.lane.b32.xlu1 %v3828_v25, %s3951_s27  ;;  %3839 = vrot.lane.b32.xlu0 %v3838_v55, %s3952_s21  ;;  %vm6224_vm5 = vnez %v6025_v39  ;;  %v6310_v61 = vpack.c.bf16 %v5128_v3, %v5126_v19  ;;  %s3954_s27 = smov 32  }
 0x426   : > { %v5218_v37 = vsel %vm6211_vm0, %v1892_v54, %v1893_v52  ;;  %vm6212_vm2 = vmmov %vm6204_vm6  ;;  %v1915_v12 = vsel %vm6224_vm5, 0.0, %v5091_v46  ;;  %v2407_v34 = vpack.c.bf16 %v2403_v27, %v2402_v32  ;;  %v2406_v57 = vpack.c.bf16 %v2401_v21, %v2400_v31 }
 0x427   : > { %v1943_v22 = vsel %vm6212_vm2, %v1941_v41, %v1942_v49  ;;  %v1911_v49 = vsel %vm6213_vm15, 0.0, %v1910_v20  ;;  %vm6215_vm13 = vmmov %vm6214_vm14  ;;  %v406_v0 = vand.u32 7, %v4023_v1 }
 0x428   : > { %v3843_v24 = vpack.i.bf16 %v1974_v14, %v1943_v22  ;;  %vm6217_vm6 = vmmov %vm6216_vm12 }
 0x429   : > { %vm6220_vm11 = vmmov %vm6215_vm13 }
 0x42a   : > { %3844 = vrot.lane.b32.xlu1 %v3843_v24, %s3952_s21  ;;  %vm6221_vm4 = vmmov %vm6220_vm11 }
 0x42b   : > { %vm6222_vm1 = vmmov %vm6217_vm6 }
 0x42c   : > { %vm6223_vm8 = vmmov %vm6222_vm1 }
 0x42d   : > { %vm6225_vm0 = vmmov %vm6221_vm4 }
 0x42e   : > { %vm6226_vm2 = vmmov %vm6225_vm0 }
 0x42f   : > { %vm6227_vm15 = vmmov %vm6218_vm3 }
 0x430   : > { %vm6233_vm10 = vmmov %vm6227_vm15 }
 0x431   : > { %vm6238_vm5 = vmmov %vm6233_vm10 }
 0x479   : > { %v3770_v52 = vpop.permute.xlu1 %3769 }
 0x47a   : > { %v3775_v63 = vpop.permute.xlu0 %3774  ;;  %v3772_v22 = vunpack.i.h.bf16 %v3770_v52  ;;  %v3771_v14 = vunpack.i.l.bf16 %v3770_v52 }
 0x47b   : > { %v3777_v2 = vunpack.i.h.bf16 %v3775_v63  ;;  %v3776_v42 = vunpack.i.l.bf16 %v3775_v63 }
 0x47d   : > { %v2103_v43 = vsel %vm6214_vm14, %v1911_v49, %v3776_v42  ;;  %v2104_v7 = vsel %vm6215_vm13, %v5048_v44, %v3777_v2  ;;  %v2106_v44 = vsel %vm6221_vm4, %v5007_v6, %v3772_v22  ;;  %vm6228_vm14 = vmmov %vm6222_vm1 }
 0x47e   : > { %vm6229_vm13 = vmmov %vm6222_vm1 }
 0x47f   : > { %v3780_v36 = vpop.permute.xlu0 %3779  ;;  %vm6235_vm4 = vmmov %vm6222_vm1 }
 0x480   : > { %v3782_v13 = vunpack.i.h.bf16 %v3780_v36  ;;  %v3781_v41 = vunpack.i.l.bf16 %v3780_v36  ;;  %v2105_v36 = vsel %vm6220_vm11, %v1913_v38, %v3771_v14  ;;  %vm6234_vm11 = vmmov %vm6222_vm1 }
 0x482   : > { %v2119_v55 = vsel %vm6216_vm12, %v2103_v43, %v3781_v41  ;;  %v2120_v25 = vsel %vm6217_vm6, %v2104_v7, %v3782_v13  ;;  %vm6230_vm12 = vnez %v6027_v16  ;;  %vm6231_vm6 = vmmov %vm6225_vm0  ;;  %v1919_v16 = vsel %vm6161_vm9, 0.0, %v5166_v9 }
 0x483   : > { %v2135_v24 = vpack.c.bf16 %v2120_v25, %v2119_v55  ;;  %v3795_v63 = vpop.permute.xlu0 %3794  ;;  %v3785_v40 = vpop.permute.xlu1 %3784  ;;  %v1917_v39 = vsel %vm6230_vm12, 0.0, %v5158_v30  ;;  %vm6241_vm9 = vnez %v6031_v11 }
 0x484   : > { %v3787_v20 = vunpack.i.h.bf16 %v3785_v40  ;;  %v3786_v42 = vunpack.i.l.bf16 %v3785_v40  ;;  %v3797_v2 = vunpack.i.h.bf16 %v3795_v63  ;;  %v3796_v49 = vunpack.i.l.bf16 %v3795_v63 }
 0x485   : > { %3375 = vmatprep.mubr.msk.bf16.mxu1 %vm6218_vm3, %v2135_v24  ;;  %vm6232_vm3 = vmmov %vm6225_vm0  ;;  %v1921_v50 = vsel %vm6241_vm9, 0.0, %v5200_v10 }
 0x486   : > { %v2122_v52 = vsel %vm6222_vm1, %v2106_v44, %v3787_v20  ;;  %v2121_v13 = vsel %vm6223_vm8, %v2105_v36, %v3786_v42  ;;  %v2108_v55 = vsel %vm6225_vm0, %v5085_v15, %v3797_v2  ;;  %v2107_v6 = vsel %vm6226_vm2, %v1915_v12, %v3796_v49  ;;  %vm6236_vm1 = vmmov %vm6225_vm0 }
 0x487   : > { %v2136_v41 = vpack.c.bf16 %v2122_v52, %v2121_v13  ;;  %v3790_v43 = vpop.permute.xlu1 %3789  ;;  %v3800_v7 = vpop.permute.xlu0 %3799  ;;  %vm6237_vm8 = vmmov %vm6225_vm0 }
 0x488   : > { %v3802_v56 = vunpack.i.h.bf16 %v3800_v7  ;;  %v3801_v40 = vunpack.i.l.bf16 %v3800_v7  ;;  %v3792_v25 = vunpack.i.h.bf16 %v3790_v43  ;;  %v3791_v22 = vunpack.i.l.bf16 %v3790_v43  ;;  %vm6239_vm0 = vmmov %vm6235_vm4 }
 0x489   : > { %3376 = vmatmul.mubr.msk.bf16.vlgmr.msra.gmra.mxu1 %vm6227_vm15, %v2136_v41  ;;  %vm6240_vm2 = vmmov %vm6239_vm0 }
 0x48a   : > { %v2123_v14 = vsel %vm6228_vm14, %v2107_v6, %v3801_v40  ;;  %v2124_v24 = vsel %vm6229_vm13, %v2108_v55, %v3802_v56  ;;  %v2110_v15 = vsel %vm6231_vm6, %v5142_v18, %v3792_v25  ;;  %v2109_v36 = vsel %vm6232_vm3, %v1917_v39, %v3791_v22  ;;  %vm6242_vm15 = vmmov %vm6236_vm1 }
 0x48b   : > { %v2137_v63 = vpack.c.bf16 %v2124_v24, %v2123_v14  ;;  %v3805_v38 = vpop.permute.xlu1 %3804  ;;  %v3815_v20 = vpop.permute.xlu0 %3814  ;;  %vm6243_vm14 = vmmov %vm6236_vm1  ;;  %vm6247_vm3 = vnez %v6033_v8  ;;  %v1925_v8 = vsel %vm4417_vm7, 0.0, %v5218_v37  ;;  %v6260_v37 = vld [vmem:[#allocation5_spill] sm:$0xff] }
 0x48c   : > { %v3807_v46 = vunpack.i.h.bf16 %v3805_v38  ;;  %v3806_v42 = vunpack.i.l.bf16 %v3805_v38  ;;  %v3817_v44 = vunpack.i.h.bf16 %v3815_v20  ;;  %v3816_v2 = vunpack.i.l.bf16 %v3815_v20  ;;  %vm6244_vm13 = vmmov %vm6238_vm5 }
 0x48d   : > { %3379 = vmatprep.mubr.msk.bf16.mxu1 %vm6233_vm10, %v2137_v63  ;;  %vm6245_vm12 = vmmov %vm6239_vm0  ;;  %v1923_v11 = vsel %vm6247_vm3, 0.0, %v5210_v35  ;;  %v413_v19 = vand.u32 7, %v6260_v37 }
 0x48e   : > { %v2125_v49 = vsel %vm6234_vm11, %v2109_v36, %v3806_v42  ;;  %v2126_v52 = vsel %vm6235_vm4, %v2110_v15, %v3807_v46  ;;  %v2112_v18 = vsel %vm6236_vm1, %v5162_v51, %v3817_v44  ;;  %v2111_v12 = vsel %vm6237_vm8, %v1919_v16, %v3816_v2  ;;  %vm6246_vm6 = vmmov %vm6239_vm0 }
 0x48f   : > { %v2138_v13 = vpack.c.bf16 %v2126_v52, %v2125_v49  ;;  %v3810_v41 = vpop.permute.xlu1 %3809  ;;  %v3820_v43 = vpop.permute.xlu0 %3819  ;;  %vm6248_vm10 = vmmov %vm6236_vm1 }
 0x490   : > { %v3822_v30 = vunpack.i.h.bf16 %v3820_v43  ;;  %v3821_v7 = vunpack.i.l.bf16 %v3820_v43  ;;  %v3812_v56 = vunpack.i.h.bf16 %v3810_v41  ;;  %v3811_v40 = vunpack.i.l.bf16 %v3810_v41  ;;  %vm6249_vm11 = vmmov %vm6236_vm1 }
 0x491   : > { %3380 = vmatmul.mubr.msk.bf16.gmra.mxu1 %vm6238_vm5, %v2138_v13  ;;  %vm6250_vm4 = vmmov %vm6238_vm5 }
 0x492   : > { %v2127_v55 = vsel %vm6239_vm0, %v2111_v12, %v3821_v7  ;;  %v2128_v6 = vsel %vm6240_vm2, %v2112_v18, %v3822_v30  ;;  %v2114_v51 = vsel %vm6242_vm15, %v5196_v29, %v3812_v56  ;;  %v2113_v63 = vsel %vm6243_vm14, %v1921_v50, %v3811_v40  ;;  %vm6251_vm1 = vmmov %vm6239_vm0 }
 0x493   : > { %v2139_v25 = vpack.c.bf16 %v2128_v6, %v2127_v55  ;;  %v3825_v22 = vpop.permute.xlu1 %3824  ;;  %v3835_v14 = vpop.permute.xlu0 %3834  ;;  %vm6252_vm8 = vmmov %vm6239_vm0  ;;  %v6259_v40 = vlaneseq  ;;  %v517_v6 = vmul.u32 2, %v6260_v37 }
 0x494   : > { %v3827_v9 = vunpack.i.h.bf16 %v3825_v22  ;;  %v3826_v24 = vunpack.i.l.bf16 %v3825_v22  ;;  %v3837_v38 = vunpack.i.h.bf16 %v3835_v14  ;;  %v3836_v20 = vunpack.i.l.bf16 %v3835_v14  ;;  %vm6253_vm5 = vmmov %vm6248_vm10 }
 0x495   : > { %3383 = vmatprep.mubr.msk.bf16.mxu1 %vm6244_vm13, %v2139_v25  ;;  %vm6254_vm0 = vmmov %vm6253_vm5  ;;  %v5315_v55 = vand.u32 127, %v6259_v40  ;;  %v6263_v25 = vmov 0  ;;  %v5992_v22 = vmov 1.0|1.0  }
 0x496   : > { %v2129_v39 = vsel %vm6245_vm12, %v2113_v63, %v3826_v24  ;;  %v2130_v46 = vsel %vm6246_vm6, %v2114_v51, %v3827_v9  ;;  %v2116_v29 = vsel %vm6248_vm10, %v5204_v60, %v3837_v38  ;;  %v2115_v2 = vsel %vm6249_vm11, %v1923_v11, %v3836_v20  ;;  %vm6255_vm2 = vmmov %vm6250_vm4  ;;  %v3187_v11 = vld [vmem:[%s5929_s1 + $0x70] ss:$0 sm:$0xff] }
 0x497   : > { %v2140_v42 = vpack.c.bf16 %v2130_v46, %v2129_v39  ;;  %v3830_v15 = vpop.permute.xlu1 %3829  ;;  %v3840_v36 = vpop.permute.xlu0 %3839  ;;  %vm6256_vm9 = vmmov %vm6251_vm1  ;;  %vm5320_vm7 = vcmp.eq.s32.totalorder %v5315_v55, %v516_v47  ;;  %vm5325_vm13 = vcmp.eq.s32.totalorder %v5315_v55, %v517_v6  ;;  %vm6265_vm6 = vcmp.lt.s32.totalorder %v4023_v1, 7 }
 0x498   : > { %v3842_v10 = vunpack.i.h.bf16 %v3840_v36  ;;  %v3841_v44 = vunpack.i.l.bf16 %v3840_v36  ;;  %v3832_v49 = vunpack.i.h.bf16 %v3830_v15  ;;  %v3831_v52 = vunpack.i.l.bf16 %v3830_v15  ;;  %vm6257_vm15 = vmmov %vm6251_vm1 }
 0x499   : > { %3384 = vmatmul.mubr.msk.bf16.gmra.mxu1 %vm6250_vm4, %v2140_v42  ;;  %vm6258_vm14 = vmmov %vm6255_vm2  ;;  %v6264_v25 = vsel %vm5325_vm13, 4294967295, %v6263_v25 }
 0x49a   : > { %v2131_v13 = vsel %vm6251_vm1, %v2115_v2, %v3841_v44  ;;  %v2132_v41 = vsel %vm6252_vm8, %v2116_v29, %v3842_v10  ;;  %v2118_v60 = vsel %vm6253_vm5, %v5214_v53, %v3832_v49  ;;  %v2117_v7 = vsel %vm6254_vm0, %v1925_v8, %v3831_v52  ;;  %vm5982_vm12 = vmpackc.low %vm5325_vm13, %vm5320_vm7 }
 0x49b   : > { %v2141_v43 = vpack.c.bf16 %v2132_v41, %v2131_v13  ;;  %v6261_v53 = vmov 0  ;;  %3407 = vmatprep.mubr.msk.bf16.mxu0 %vm5982_vm12, %v5992_v22  ;;  %vm6266_vm3 = vmmov %vm6265_vm6 }
 0x49c   : > { %v3845_v16 = vpop.permute.xlu1 %3844  ;;  %v6262_v53 = vsel %vm5320_vm7, 4294967295, %v6261_v53  ;;  %vm6267_vm10 = vmmov %vm6266_vm3  ;;  %vm5588_vm7 = vcmp.eq.s32.totalorder %v406_v0, 0 }
 0x49d   : > { %v3847_v35 = vunpack.i.h.bf16 %v3845_v16  ;;  %v3846_v30 = vunpack.i.l.bf16 %v3845_v16  ;;  %3387 = vmatprep.mubr.msk.bf16.mxu1 %vm6255_vm2, %v2141_v43  ;;  %vm6268_vm11 = vmmov %vm6266_vm3 }
 0x49e   : > { %vm6269_vm4 = vmmov %vm6266_vm3 }
 0x49f   : > { %v2134_v18 = vsel %vm6256_vm9, %v2118_v60, %v3847_v35  ;;  %v2133_v12 = vsel %vm6257_vm15, %v2117_v7, %v3846_v30  ;;  %vm6270_vm1 = vmmov %vm6266_vm3 }
 0x4a0   : > { %v2142_v56 = vpack.c.bf16 %v2134_v18, %v2133_v12  ;;  %vm6271_vm8 = vmmov %vm6270_vm1 }
 0x4a1   : > { %vm6272_vm5 = vmmov %vm6270_vm1 }
 0x4a2   : > { %3388 = vmatmul.mubr.msk.bf16.gmra.mxu1 %vm6258_vm14, %v2142_v56  ;;  %vm6273_vm0 = vmmov %vm6270_vm1 }
 0x4a3   : > { %vm6274_vm2 = vmmov %vm6273_vm0 }
 0x4a4   : > { %vm6275_vm9 = vmmov %vm6273_vm0 }
 0x4a5   : > { %vm6276_vm15 = vmmov %vm6273_vm0 }
 0x4a6   : > { %vm6277_vm14 = vmmov %vm6273_vm0 }
 0x549   : > { %v5339_v14 = vpop.f32.mrf.mxu1 }
 0x54b   : > { %v2208_v50 = vpop.f32.mrf.mxu1 }
 0x54c   : > { %v5348_v10 = vadd.f32 %v3187_v11, %v2208_v50 }
 0x54d   : > { %v5341_v9 = vpop.f32.mrf.mxu1 }
 0x54e   : > { %v2271_v41 = vrot.slane %v5348_v10, 1 }
 0x54f   : > { %v5343_v24 = vpop.f32.mrf.mxu1 }
 0x551   : > { %v3381_v51 = vpop.f32.mrf.mxu1 }
 0x553   : > { %v2224_v63 = vpop.f32.mrf.mxu1 }
 0x555   : > { %v3382_v38 = vpop.f32.mrf.mxu1 }
 0x556   : > { %v2236_v54 = vadd.f32 %v3382_v38, %v3187_v11 }
 0x557   : > { %v2227_v20 = vpop.f32.mrf.mxu1 }
 0x558   : > { %v2278_v38 = vrot.slane %v2236_v54, 1 }
 0x559   : > { %v3385_v39 = vpop.f32.mrf.mxu1 }
 0x55a   : > { %v2249_v43 = vadd.f32 %v3385_v39, %v3187_v11 }
 0x55b   : > { %v2240_v46 = vpop.f32.mrf.mxu1 }
 0x55c   : > { %v2241_v18 = vadd.f32 %v3187_v11, %v2240_v46  ;;  %v2281_v6 = vrot.slane %v2249_v43, 1 }
 0x55d   : > { %v3386_v42 = vpop.f32.mrf.mxu1 }
 0x55e   : > { %v2252_v52 = vadd.f32 %v3386_v42, %v3187_v11  ;;  %v2279_v28 = vrot.slane %v2241_v18, 1 }
 0x55f   : > { %v2243_v15 = vpop.f32.mrf.mxu1 }
 0x560   : > { %v2244_v16 = vadd.f32 %v3187_v11, %v2243_v15  ;;  %v2282_v12 = vrot.slane %v2252_v52, 1 }
 0x562   : > { %v3389_v36 = vpop.f32.mrf.mxu1  ;;  %v2280_v42 = vrot.slane %v2244_v16, 1 }
 0x563   : > { %v2265_v29 = vadd.f32 %v3389_v36, %v3187_v11 }
 0x564   : > { %v2256_v44 = vpop.f32.mrf.mxu1 }
 0x565   : > { %v2257_v2 = vadd.f32 %v3187_v11, %v2256_v44  ;;  %v2285_v35 = vrot.slane %v2265_v29, 1 }
 0x566   : > { %v3390_v49 = vpop.f32.mrf.mxu1 }
 0x567   : > { %v2268_v13 = vadd.f32 %v3390_v49, %v3187_v11  ;;  %v2283_v30 = vrot.slane %v2257_v2, 1 }
 0x568   : > { %v2259_v8 = vpop.f32.mrf.mxu1 }
 0x569   : > { %v2286_v60 = vrot.slane %v2268_v13, 1  ;;  %v2260_v7 = vadd.f32 %v3187_v11, %v2259_v8  ;;  %v2290_v36 = vsel %vm6269_vm4, %v2282_v12, %v2283_v30 }
 0x56b   : > { %v2302_v56 = vsel %vm6265_vm6, %v2286_v60, %v2271_v41  ;;  %v2284_v40 = vrot.slane %v2260_v7, 1  ;;  %v2287_v47 = vsel %vm6266_vm3, %v2285_v35, %v2286_v60  ;;  %v2291_v60 = vsel %vm6270_vm1, %v2281_v6, %v2282_v12  ;;  %vm6278_vm6 = vmmov %vm6273_vm0 }
 0x56c   : > { %v2318_v50 = vmax.f32 %v2268_v13, %v2302_v56  ;;  %v2317_v39 = vmax.f32 %v2265_v29, %v2287_v47  ;;  %v2314_v13 = vmax.f32 %v2252_v52, %v2290_v36  ;;  %v2233_v56 = vadd.f32 %v3381_v51, %v3187_v11  ;;  %vm6279_vm3 = vmmov %vm6273_vm0 }
 0x56d   : > { %v2288_v15 = vsel %vm6267_vm10, %v2284_v40, %v2285_v35  ;;  %v2289_v46 = vsel %vm6268_vm11, %v2283_v30, %v2284_v40  ;;  %v2228_v47 = vadd.f32 %v3187_v11, %v2227_v20  ;;  %v2292_v35 = vsel %vm6271_vm8, %v2280_v42, %v2281_v6  ;;  %vm6280_vm10 = vmmov %vm6273_vm0 }
 0x56e   : > { %v2316_v44 = vmax.f32 %v2260_v7, %v2288_v15  ;;  %v2326_v49 = vpack.c.bf16 %v2318_v50, %v2317_v39  ;;  %v2315_v8 = vmax.f32 %v2257_v2, %v2289_v46  ;;  %v2293_v30 = vsel %vm6272_vm5, %v2279_v28, %v2280_v42 }
 0x56f   : > { %v2313_v7 = vmax.f32 %v2249_v43, %v2291_v60  ;;  %v2225_v2 = vadd.f32 %v3187_v11, %v2224_v63  ;;  %v2312_v40 = vmax.f32 %v2244_v16, %v2292_v35  ;;  %v2311_v39 = vmax.f32 %v2241_v18, %v2293_v30 }
 0x570   : > { %3391 = vmatprep.subr.bf16.mxu0 %v2326_v49  ;;  %v2325_v29 = vpack.c.bf16 %v2316_v44, %v2315_v8  ;;  %v2277_v12 = vrot.slane %v2233_v56, 1  ;;  %v2276_v15 = vrot.slane %v2228_v47, 1  ;;  %v2294_v51 = vsel %vm6273_vm0, %v2278_v38, %v2279_v28 }
 0x571   : > { %3392 = vmatpush3.bf16.msra.mxu0 %v2326_v49  ;;  %v2324_v50 = vpack.c.bf16 %v2314_v13, %v2313_v7  ;;  %v2220_v20 = vadd.f32 %v5341_v9, %v3187_v11  ;;  %v2275_v52 = vrot.slane %v2225_v2, 1  ;;  %v2323_v42 = vpack.c.bf16 %v2312_v40, %v2311_v39  ;;  %v6281_v7 = vld [vmem:[#allocation10_spill] sm:$0xff] }
 0x572   : > { %3393 = vmatprep.subr.bf16.mxu0 %v2325_v29  ;;  %v2295_v6 = vsel %vm6274_vm2, %v2277_v12, %v2278_v38  ;;  %v2310_v43 = vmax.f32 %v2236_v54, %v2294_v51  ;;  %v2217_v63 = vadd.f32 %v5339_v14, %v3187_v11  ;;  %v2212_v16 = vadd.f32 %v3187_v11, %v5343_v24  ;;  %v6282_v38 = vld [vmem:[#allocation6_spill] sm:$0xff] }
 0x573   : > { %v2296_v18 = vsel %vm6275_vm9, %v2276_v15, %v2277_v12  ;;  %v2297_v28 = vsel %vm6276_vm15, %v2275_v52, %v2276_v15  ;;  %v2309_v46 = vmax.f32 %v2233_v56, %v2295_v6  ;;  %v2274_v9 = vrot.slane %v2220_v20, 1  ;;  %v6284_v12 = vld [vmem:[#allocation7_spill] sm:$0xff] }
 0x574   : > { %v2308_v36 = vmax.f32 %v2228_v47, %v2296_v18  ;;  %v2307_v49 = vmax.f32 %v2225_v2, %v2297_v28  ;;  %v2273_v8 = vrot.slane %v2217_v63, 1  ;;  %v2272_v60 = vrot.slane %v2212_v16, 1 }
 0x575   : > { %3394 = vmatpush3.bf16.msra.mxu0 %v2325_v29  ;;  %v2322_v44 = vpack.c.bf16 %v2310_v43, %v2309_v46  ;;  %v2298_v54 = vsel %vm6277_vm14, %v2274_v9, %v2275_v52  ;;  %v518_v2 = vmul.u32 2, %v6281_v7  ;;  %v519_v40 = vmul.u32 2, %v6282_v38  ;;  %v6293_v43 = vld [vmem:[#allocation12_spill] sm:$0xff] }
 0x576   : > { %3395 = vmatprep.subr.bf16.mxu0 %v2324_v50  ;;  %v2299_v14 = vsel %vm6278_vm6, %v2273_v8, %v2274_v9  ;;  %v2321_v24 = vpack.c.bf16 %v2308_v36, %v2307_v49  ;;  %v2306_v11 = vmax.f32 %v2220_v20, %v2298_v54  ;;  %v2300_v29 = vsel %vm6279_vm3, %v2272_v60, %v2273_v8 }
 0x577   : > { %v2301_v13 = vsel %vm6280_vm10, %v2271_v41, %v2272_v60  ;;  %v2305_v56 = vmax.f32 %v2217_v63, %v2299_v14  ;;  %v2304_v47 = vmax.f32 %v2212_v16, %v2300_v29  ;;  %v521_v15 = vmul.u32 2, %v6284_v12  ;;  %v2657_v41 = vld [vmem:[%s5929_s1 + $0xb0] sm:$0xff]  ;;  %v6294_v16 = vld [vmem:[#allocation8_spill] sm:$0xff] }
 0x578   : > { %v2303_v30 = vmax.f32 %v5348_v10, %v2301_v13  ;;  %vm5399_vm11 = vcmp.eq.s32.totalorder %v5315_v55, %v518_v2  ;;  %v6285_v10 = vmov 0  ;;  %vm5404_vm4 = vcmp.eq.s32.totalorder %v5315_v55, %v519_v40 }
 0x579   : > { %3396 = vmatpush3.bf16.msra.mxu0 %v2324_v50  ;;  %v2320_v35 = vpack.c.bf16 %v2306_v11, %v2305_v56  ;;  %v6283_v50 = vld [vmem:[#allocation11_spill] sm:$0xff]  ;;  %v6286_v10 = vsel %vm5399_vm11, 4294967295, %v6285_v10  ;;  %v6287_v20 = vmov 0  ;;  %v2658_v52 = vpack.c.bf16 %v2657_v41, %v2657_v41  ;;  %vm5981_vm5 = vmpackc.low %vm5404_vm4, %vm5399_vm11 }
 0x57a   : > { %3397 = vmatprep.subr.bf16.mxu0 %v2323_v42  ;;  %v520_v39 = vmul.u32 2, %v6283_v50  ;;  %v2319_v51 = vpack.c.bf16 %v2304_v47, %v2303_v30  ;;  %v6288_v20 = vsel %vm5404_vm4, 4294967295, %v6287_v20  ;;  %v6289_v6 = vmov 0 }
 0x57b   : > { %vm5414_vm8 = vcmp.eq.s32.totalorder %v5315_v55, %v521_v15  ;;  %v522_v63 = vmul.u32 2, %v6293_v43  ;;  %v523_v18 = vmul.u32 2, %v6294_v16  ;;  %vm6295_vm2 = vcmask 1043456  }
 0x57c   : > { %vm5409_vm1 = vcmp.eq.s32.totalorder %v5315_v55, %v520_v39  ;;  %vm6296_vm9 = vmmov %vm6295_vm2  ;;  %v6297_v46 = vmov 0  ;;  %v6299_v9 = vmov 0  ;;  %vm6301_vm3 = vcmask 64512  }
 0x57d   : > { %3398 = vmatpush3.bf16.msra.mxu0 %v2323_v42  ;;  %v6290_v6 = vsel %vm5409_vm1, 4294967295, %v6289_v6  ;;  %v6291_v42 = vmov 0  ;;  %vm5980_vm0 = vmpackc.low %vm5414_vm8, %vm5409_vm1  ;;  %v2697_v28 = vsel %vm6296_vm9, %v2658_v52, 0  ;;  %vm5443_vm15 = vcmp.eq.s32.totalorder %v5315_v55, %v522_v63 }
 0x57e   : > { %3399 = vmatprep.subr.bf16.mxu0 %v2322_v44  ;;  %v6292_v42 = vsel %vm5414_vm8, 4294967295, %v6291_v42  ;;  %v6298_v46 = vsel %vm5443_vm15, 4294967295, %v6297_v46  ;;  %vm5448_vm14 = vcmp.eq.s32.totalorder %v5315_v55, %v523_v18  ;;  %vm6302_vm10 = vmmov %vm6301_vm3  ;;  %v420_v3 = vand.u32 7, %v6281_v7 }
 0x57f   : > { %v6300_v9 = vsel %vm5448_vm14, 4294967295, %v6299_v9  ;;  %vm5979_vm6 = vmpackc.low %vm5448_vm14, %vm5443_vm15  ;;  %v441_v37 = vand.u32 7, %v6284_v12  ;;  %v434_v60 = vand.u32 7, %v6283_v50  ;;  %v448_v54 = vand.u32 7, %v6293_v43 }
 0x580   : > { %v455_v14 = vand.u32 7, %v6294_v16  ;;  %vm5568_vm14 = vcmp.eq.s32.totalorder %v420_v3, 0  ;;  %vm6331_vm1 = vcmp.lt.s32.totalorder %v4023_v1, 1  ;;  %vm5576_vm8 = vcmp.eq.s32.totalorder %v413_v19, 0 }
 0x581   : > { %3400 = vmatpush3.bf16.msra.mxu0 %v2322_v44  ;;  %vm5560_vm12 = vcmp.eq.s32.totalorder %v448_v54, 7  ;;  %vm6334_vm11 = vcmp.lt.s32.totalorder %v4023_v1, 7 }
 0x582   : > { %3401 = vmatprep.subr.bf16.mxu0 %v2321_v24  ;;  %vm5564_vm15 = vcmp.eq.s32.totalorder %v455_v14, 7  ;;  %vm6335_vm4 = vmmov %vm6334_vm11 }
 0x583   : > { %vm6340_vm13 = vmmov %vm6335_vm4 }
 0x585   : > { %3402 = vmatpush3.bf16.msra.mxu0 %v2321_v24 }
 0x586   : > { %3403 = vmatprep.subr.bf16.mxu0 %v2320_v35 }
 0x589   : > { %3404 = vmatpush3.bf16.msra.mxu0 %v2320_v35 }
 0x58a   : > { %3405 = vmatprep.subr.bf16.mxu0 %v2319_v51 }
 0x58d   : > { %3406 = vmatpush3.bf16.msra.mxu0 %v2319_v51 }
 0x58e   : > { %3481 = vmatprep.subr.msk.bf16.mxu0 %vm6295_vm2, %v2658_v52  ;;  %vm6303_vm2 = vmmov %vm6301_vm3 }
 0x58f   : > { %vm6304_vm9 = vmmov %vm6303_vm2 }
 0x590   : > { %3408 = vmatmul.mubr.msk.bf16.vlgmr.msra.gmra.mxu0 %vm5981_vm5, %v5992_v22  ;;  %vm5555_vm5 = vcmp.eq.s32.totalorder %v441_v37, 7 }
 0x591   : > { %3411 = vmatprep.mubr.msk.bf16.mxu0 %vm5980_vm0, %v5992_v22  ;;  %3430 = vmatpush3.bf16.msra.mxu0 %v2697_v28  ;;  %vm5551_vm0 = vcmp.eq.s32.totalorder %v434_v60, 7 }
 0x598   : > { %3412 = vmatmul.mubr.msk.bf16.gmra.mxu0 %vm5979_vm6, %v5992_v22  ;;  %vm6305_vm6 = vmmov %vm6303_vm2 }
 0x599   : > { %3431 = vmatprep.mubr.msk.bf16.mxu0 %vm6301_vm3, %v2660_v17  ;;  %vm6307_vm3 = vmmov %vm6303_vm2 }
 0x5a0   : > { %3432 = vmatmul.mubr.msk.bf16.vlgmr.msra.gmra.mxu0 %vm6302_vm10, %v2661_v5  ;;  %vm6309_vm10 = vmmov %vm6303_vm2  ;;  %v2404_v5 = vld [vmem:[%s5929_s1 + $0x98] sm:$0xff] }
 0x5a1   : > { %3435 = vmatprep.mubr.msk.bf16.mxu0 %vm6303_vm2, %v2662_v23  ;;  %v2408_v4 = vpack.c.bf16 %v2405_v59, %v2404_v5 }
 0x5a3   : > { %3415 = vmatprep.subr.bf16.mxu1 %v2408_v4 }
 0x5a4   : > { %3416 = vmatpush3.bf16.msra.mxu1 %v2408_v4 }
 0x5a5   : > { %3417 = vmatprep.subr.bf16.mxu1 %v2407_v34 }
 0x5a8   : > { %3436 = vmatmul.mubr.msk.bf16.gmra.mxu0 %vm6304_vm9, %v2663_v26  ;;  %3418 = vmatpush3.bf16.msra.mxu1 %v2407_v34  ;;  %vm5522_vm9 = vcmp.eq.s32.totalorder %v413_v19, 7  ;;  %v6382_v19 = vmov 1.0|1.0  }
 0x5a9   : > { %3439 = vmatprep.mubr.msk.bf16.mxu0 %vm6305_vm6, %v2664_v48  ;;  %3419 = vmatprep.subr.bf16.mxu1 %v2406_v57  ;;  %vm5515_vm6 = vcmp.eq.s32.totalorder %v406_v0, 7  ;;  %v427_v48 = vand.u32 7, %v6282_v38 }
 0x5ac   : > { %3420 = vmatpush3.bf16.msra.mxu1 %v2406_v57 }
 0x5b0   : > { %3440 = vmatmul.mubr.msk.bf16.gmra.mxu0 %vm6307_vm3, %v6306_v33  ;;  %vm5526_vm3 = vcmp.eq.s32.totalorder %v420_v3, 7 }
 0x5b1   : > { %3443 = vmatprep.mubr.msk.bf16.mxu0 %vm6309_vm10, %v6308_v45  ;;  %vm5539_vm10 = vcmp.eq.s32.totalorder %v427_v48, 7 }
 0x5b8   : > { %3444 = vmatmul.mubr.msk.bf16.gmra.mxu0 %vm6303_vm2, %v6310_v61  ;;  %vm5543_vm2 = vcmp.eq.s32.totalorder %v427_v48, 0 }
 0x650   : > { %v3409_v58 = vpop.f32.mrf.mxu0 }
 0x651   : > { %v2394_v17 = vmax.f32 %v3409_v58, 0.0 }
 0x652   : > { %v2361_v62 = vpop.f32.mrf.mxu0 }
 0x653   : > { %v5531_v49 = vmax.f32 %v2361_v62, 0.0  ;;  %v2412_v56 = vrot.slane %v2394_v17, 7  ;;  %v2452_v47 = vrot.slane %v2394_v17, 1 }
 0x654   : > { %v3410_v23 = vpop.f32.mrf.mxu0 }
 0x655   : > { %v5520_v55 = vmax.f32 %v3410_v23, 0.0  ;;  %v2450_v15 = vrot.slane %v5531_v49, 1  ;;  %v2410_v18 = vrot.slane %v5531_v49, 7  ;;  %v5624_v23 = vld [vmem:[%s5929_s1 + $0xb8] ss:$0 sm:$0xff] }
 0x656   : > { %v2364_v8 = vpop.f32.mrf.mxu0 }
 0x657   : > { %v2413_v24 = vrot.slane %v5520_v55, 7  ;;  %v2453_v11 = vrot.slane %v5520_v55, 1  ;;  %v2393_v29 = vmax.f32 %v2364_v8, 0.0  ;;  %v3848_v13 = vpack.i.bf16 %v5520_v55, %v2394_v17 }
 0x658   : > { %v3413_v35 = vpop.f32.mrf.mxu0 }
 0x659   : > { %v2411_v2 = vrot.slane %v2393_v29, 7  ;;  %v2451_v38 = vrot.slane %v2393_v29, 1  ;;  %v5547_v40 = vmax.f32 %v3413_v35, 0.0  ;;  %3849 = vrot.lane.b32.xlu1 %v3848_v13, %s3952_s21  ;;  %v3853_v50 = vpack.i.bf16 %v2393_v29, %v5531_v49 }
 0x65a   : > { %v2377_v41 = vpop.f32.mrf.mxu0  ;;  %v5574_v63 = vsel %vm6331_vm1, %v2412_v56, %v2413_v24  ;;  %v2462_v45 = vsel %vm6335_vm4, %v2452_v47, %v2453_v11  ;;  %vm5592_vm1 = vcmp.eq.s32.totalorder %v434_v60, 0  ;;  %vm5605_vm4 = vcmp.eq.s32.totalorder %v441_v37, 0 }
 0x65b   : > { %v5581_v28 = vmax.f32 %v2377_v41, 0.0  ;;  %3854 = vrot.lane.b32.xlu0 %v3853_v50, %s3952_s21  ;;  %v2463_v33 = vsel %vm6334_vm11, %v2451_v38, %v2452_v47  ;;  %v2456_v59 = vrot.slane %v5547_v40, 1  ;;  %v2464_v32 = vsel %vm6340_vm13, %v2450_v15, %v2451_v38 }
 0x65c   : > { %v3414_v4 = vpop.f32.mrf.mxu0  ;;  %v2483_v27 = vsel %vm5522_vm9, 0.0, %v2463_v33  ;;  %vm6341_vm11 = vcmp.lt.s32.totalorder %v4023_v1, 1  ;;  %v2482_v0 = vsel %vm5515_vm6, 0.0, %v2464_v32  ;;  %vm5613_vm13 = vcmp.eq.s32.totalorder %v448_v54, 0 }
 0x65d   : > { %v5603_v31 = vsel %vm6341_vm11, %v2411_v2, %v2412_v56  ;;  %v2414_v21 = vrot.slane %v5581_v28, 7  ;;  %v2454_v57 = vrot.slane %v5581_v28, 1  ;;  %v2399_v58 = vmax.f32 %v3414_v4, 0.0  ;;  %vm6348_vm6 = vmmov %vm6341_vm11 }
 0x65e   : > { %vm5617_vm9 = vcmp.eq.s32.totalorder %v455_v14, 0  ;;  %v2380_v62 = vpop.f32.mrf.mxu0  ;;  %v3858_v17 = vpack.i.bf16 %v2483_v27, %v2482_v0  ;;  %v2444_v26 = vsel %vm5568_vm14, 0.0, %v5603_v31  ;;  %v2445_v48 = vsel %vm5543_vm2, 0.0, %v5574_v63 }
 0x65f   : > { %v5634_v55 = vsel %vm6348_vm6, %v2410_v18, %v2411_v2  ;;  %v2417_v36 = vrot.slane %v2399_v58, 7  ;;  %v2457_v37 = vrot.slane %v2399_v58, 1  ;;  %v2397_v49 = vmax.f32 %v2380_v62, 0.0 }
 0x660   : > { %vm6349_vm11 = vcmp.lt.s32.totalorder %v4023_v1, 7  ;;  %3859 = vrot.lane.b32.xlu0 %v3858_v17, %s3954_s27  ;;  %v3433_v60 = vpop.f32.mrf.mxu0  ;;  %v2484_v54 = vsel %vm5526_vm3, 0.0, %v2462_v45  ;;  %v2443_v29 = vsel %vm5576_vm8, 0.0, %v5634_v55  ;;  %v5648_v13 = vsel %vm6348_vm6, %v2413_v24, %v2414_v21 }
 0x661   : > { %v2461_v8 = vsel %vm6349_vm11, %v2453_v11, %v2454_v57  ;;  %v2415_v56 = vrot.slane %v2397_v49, 7  ;;  %v2455_v11 = vrot.slane %v2397_v49, 1  ;;  %v5651_v47 = vadd.f32 %v3433_v60, %v5624_v23  ;;  %vm6350_vm3 = vmmov %vm6349_vm11 }
 0x662   : > { %v2485_v14 = vsel %vm5539_vm10, 0.0, %v2461_v8  ;;  %v2733_v2 = vpop.f32.mrf.mxu0  ;;  %v3873_v44 = vpack.i.bf16 %v2397_v49, %v5581_v28  ;;  %v2458_v30 = vsel %vm6350_vm3, %v2456_v59, %v2457_v37  ;;  %vm6351_vm10 = vmmov %vm6350_vm3  ;;  %v2416_v24 = vrot.slane %v5547_v40, 7 }
 0x663   : > { %v3863_v35 = vpack.i.bf16 %v2485_v14, %v2484_v54  ;;  %v2465_v38 = vsel %vm6351_vm10, %v2457_v37, %v2450_v15  ;;  %vm6352_vm11 = vmmov %vm6348_vm6  ;;  %v3868_v41 = vpack.i.bf16 %v2399_v58, %v5547_v40  ;;  %v2798_v45 = vrot.slane %v5651_v47, 1 }
 0x664   : > { %v5660_v50 = vsel %vm6352_vm11, %v2417_v36, %v2410_v18  ;;  %vm6353_vm6 = vmmov %vm6350_vm3  ;;  %v5671_v15 = vadd.f32 %v5624_v23, %v2733_v2  ;;  %3874 = vrot.lane.b32.xlu0 %v3873_v44, %s3952_s21  ;;  %v3434_v18 = vpop.f32.mrf.mxu0  ;;  %v2488_v27 = vsel %vm5560_vm12, 0.0, %v2458_v30  ;;  %v2446_v39 = vsel %vm5592_vm1, 0.0, %v5648_v13 }
 0x665   : > { %3864 = vrot.lane.b32.xlu1 %v3863_v35, %s3954_s27  ;;  %v2459_v33 = vsel %vm6353_vm6, %v2455_v11, %v2456_v59  ;;  %vm6354_vm2 = vmmov %vm6350_vm3  ;;  %v2745_v32 = vadd.f32 %v3434_v18, %v5624_v23  ;;  %v2442_v0 = vsel %vm5588_vm7, 0.0, %v5660_v50  ;;  %vm6393_vm8 = vnez %v6298_v46 }
 0x666   : > { %v2460_v28 = vsel %vm6354_vm2, %v2454_v57, %v2455_v11  ;;  %v2487_v40 = vsel %vm5555_vm5, 0.0, %v2459_v33  ;;  %v2489_v57 = vsel %vm5564_vm15, 0.0, %v2465_v38  ;;  %v2736_v58 = vpop.f32.mrf.mxu0  ;;  %vm6355_vm5 = vmmov %vm6352_vm11 }
 0x667   : > { %v2486_v4 = vsel %vm5551_vm0, 0.0, %v2460_v28  ;;  %v5691_v12 = vsel %vm6355_vm5, %v2414_v21, %v2415_v56  ;;  %vm6356_vm0 = vmmov %vm6355_vm5  ;;  %v2799_v62 = vrot.slane %v2745_v32, 1  ;;  %v2737_v52 = vadd.f32 %v5624_v23, %v2736_v58 }
 0x668   : > { %v3878_v59 = vpack.i.bf16 %v2487_v40, %v2486_v4  ;;  %v5695_v51 = vsel %vm6356_vm0, %v2416_v24, %v2417_v36  ;;  %v2447_v17 = vsel %vm5605_vm4, 0.0, %v5691_v12  ;;  %vm6357_vm12 = vmmov %vm6356_vm0  ;;  %v2796_v21 = vrot.slane %v5671_v15, 1  ;;  %v3437_v49 = vpop.f32.mrf.mxu0 }
 0x669   : > { %3869 = vrot.lane.b32.xlu1 %v3868_v41, %s3952_s21  ;;  %v5704_v37 = vsel %vm6357_vm12, %v2415_v56, %v2416_v24  ;;  %v2449_v8 = vsel %vm5617_vm9, 0.0, %v5695_v51  ;;  %v2797_v60 = vrot.slane %v2737_v52, 1  ;;  %v2758_v54 = vadd.f32 %v3437_v49, %v5624_v23  ;;  %vm6358_vm15 = vmmov %vm6354_vm2 }
 0x66a   : > { %3879 = vrot.lane.b32.xlu0 %v3878_v59, %s3954_s27  ;;  %v2448_v36 = vsel %vm5613_vm13, 0.0, %v5704_v37  ;;  %v3883_v14 = vpack.i.bf16 %v2489_v57, %v2488_v27  ;;  %v2824_v56 = vsel %vm6358_vm15, %v2798_v45, %v2799_v62  ;;  %v2749_v11 = vpop.f32.mrf.mxu0  ;;  %vm6359_vm3 = vmmov %vm6354_vm2  ;;  %vm6383_vm13 = vnez %v6264_v25  ;;  %v2989_v25 = vld [vmem:[%s5929_s1 + $0xc0] sm:$0xff] }
 0x66b   : > { %v2830_v35 = vmax.f32 %v5651_v47, %v2824_v56  ;;  %v2825_v2 = vsel %vm6354_vm2, %v2797_v60, %v2798_v45  ;;  %v2750_v44 = vadd.f32 %v5624_v23, %v2749_v11  ;;  %v2826_v30 = vsel %vm6359_vm3, %v2796_v21, %v2797_v60  ;;  %vm6360_vm10 = vmmov %vm6354_vm2 }
 0x66c   : > { %v2829_v38 = vmax.f32 %v2737_v52, %v2825_v2  ;;  %v3438_v24 = vpop.f32.mrf.mxu0  ;;  %v2828_v41 = vmax.f32 %v5671_v15, %v2826_v30  ;;  %v2802_v45 = vrot.slane %v2758_v54, 1  ;;  %vm6361_vm11 = vmmov %vm6354_vm2 }
 0x66d   : > { %3884 = vrot.lane.b32.xlu1 %v3883_v14, %s3954_s27  ;;  %v2800_v33 = vrot.slane %v2750_v44, 1  ;;  %v2761_v28 = vadd.f32 %v3438_v24, %v5624_v23  ;;  %vm6362_vm6 = vmmov %vm6354_vm2  ;;  %s3892_s27 = sshll.u32 %s3957_s13, 4  ;;  %s3893_s27 = int_to_ptr.vmem [resolvable:$false] %s3892_s27 }
 0x66e   : > { %v2752_v47 = vpop.f32.mrf.mxu0  ;;  %v5728_v18 = vpack.c.bf16 %v2829_v38, %v2828_v41  ;;  %vm6363_vm5 = vmmov %vm6354_vm2  ;;  %s3894_s21 = scalar_lea.vmem %s3893_s27, 256  ;;  %p3895_p0 = scmp.lt.s32.totalorder %s5889_s5, %s3893_s27 }
 0x66f   : > { %v2803_v4 = vrot.slane %v2761_v28, 1  ;;  %v2753_v40 = vadd.f32 %v5624_v23, %v2752_v47  ;;  %v2823_v59 = vsel %vm6360_vm10, %v2799_v62, %v2800_v33  ;;  %vm6364_vm0 = vmmov %vm6354_vm2  ;;  %p3896_p1 = scmp.lt.s32.totalorder %s3894_s21, %s3888_s16 }
 0x670   : > { %v3441_v27 = vpop.f32.mrf.mxu0  ;;  %v2831_v57 = vmax.f32 %v2745_v32, %v2823_v59  ;;  %vm6365_vm12 = vmmov %vm6364_vm0 }
 0x671   : > { %v2801_v58 = vrot.slane %v2753_v40, 1  ;;  %v2774_v52 = vadd.f32 %v3441_v27, %v5624_v23  ;;  %v2820_v49 = vsel %vm6361_vm11, %v2802_v45, %v2803_v4  ;;  %vm6366_vm15 = vmmov %vm6364_vm0  ;;  %p3897_p2 = por %p3896_p1, %p3895_p0 }
 0x672   : > { %v2765_v60 = vpop.f32.mrf.mxu0  ;;  %v2834_v14 = vmax.f32 %v2758_v54, %v2820_v49  ;;  %v5736_v56 = vpack.c.bf16 %v2831_v57, %v2830_v35  ;;  %vm6367_vm2 = vmmov %vm6364_vm0 }
 0x673   : > { %v2821_v11 = vsel %vm6362_vm6, %v2801_v58, %v2802_v45  ;;  %v2766_v2 = vadd.f32 %v5624_v23, %v2765_v60  ;;  %v2822_v62 = vsel %vm6363_vm5, %v2800_v33, %v2801_v58  ;;  %v2806_v54 = vrot.slane %v2774_v52, 1  ;;  %vm6368_vm3 = vmmov %vm6364_vm0  ;;  %p3898_p3 = pnand %p3897_p2, %p3891_p13 }
 0x674   : > { %v2833_v30 = vmax.f32 %v2753_v40, %v2821_v11  ;;  %v3442_v32 = vpop.f32.mrf.mxu0  ;;  %v2832_v38 = vmax.f32 %v2750_v44, %v2822_v62  ;;  %vm6369_vm10 = vmmov %vm6364_vm0 }
 0x675   : > { %v2804_v24 = vrot.slane %v2766_v2, 1  ;;  %v2777_v41 = vadd.f32 %v3442_v32, %v5624_v23  ;;  %vm6370_vm11 = vmmov %vm6364_vm0 }
 0x676   : > { %v2768_v47 = vpop.f32.mrf.mxu0  ;;  %v5744_v59 = vpack.c.bf16 %v2833_v30, %v2832_v38  ;;  %vm6371_vm6 = vmmov %vm6364_vm0 }
 0x677   : > { %v2807_v35 = vrot.slane %v2777_v41, 1  ;;  %v2769_v27 = vadd.f32 %v5624_v23, %v2768_v47  ;;  %v2819_v45 = vsel %vm6364_vm0, %v2803_v4, %v2804_v24  ;;  %vm6372_vm5 = vmmov %vm6364_vm0  ;;  %vm2562_vm0 = vcmask 261120  }
 0x678   : > { %v3445_v57 = vpop.f32.mrf.mxu0  ;;  %v2835_v49 = vmax.f32 %v2761_v28, %v2819_v45 }
 0x679   : > { %v2805_v60 = vrot.slane %v2769_v27, 1  ;;  %v2816_v33 = vsel %vm6365_vm12, %v2806_v54, %v2807_v35  ;;  %v2790_v62 = vadd.f32 %v3445_v57, %v5624_v23  ;;  %vm6373_vm12 = vcmask 130048  }
 0x67a   : > { %v2781_v44 = vpop.f32.mrf.mxu0  ;;  %v2838_v40 = vmax.f32 %v2774_v52, %v2816_v33  ;;  %v5751_v58 = vpack.c.bf16 %v2835_v49, %v2834_v14  ;;  %vm6375_vm7 = vmmov %vm6373_vm12 }
 0x67b   : > { %v2817_v11 = vsel %vm6366_vm15, %v2805_v60, %v2806_v54  ;;  %v2782_v30 = vadd.f32 %v5624_v23, %v2781_v44  ;;  %v2818_v4 = vsel %vm6367_vm2, %v2804_v24, %v2805_v60  ;;  %v2810_v14 = vrot.slane %v2790_v62, 1  ;;  %vm6374_vm15 = vmmov %vm6373_vm12 }
 0x67c   : > { %v2837_v32 = vmax.f32 %v2769_v27, %v2817_v11  ;;  %v3446_v28 = vpop.f32.mrf.mxu0  ;;  %v2836_v38 = vmax.f32 %v2766_v2, %v2818_v4  ;;  %vm2579_vm2 = vcmask 392192  }
 0x67d   : > { %v2808_v47 = vrot.slane %v2782_v30, 1  ;;  %v2793_v45 = vadd.f32 %v3446_v28, %v5624_v23 }
 0x67e   : > { %v2784_v22 = vpop.f32.mrf.mxu0  ;;  %v5760_v52 = vpack.c.bf16 %v2837_v32, %v2836_v38 }
 0x67f   : > { %v2811_v49 = vrot.slane %v2793_v45, 1  ;;  %v2785_v54 = vadd.f32 %v5624_v23, %v2784_v22  ;;  %v2815_v57 = vsel %vm6368_vm3, %v2807_v35, %v2808_v47  ;;  %vm6377_vm3 = vmmov %vm6375_vm7 }
 0x680   : > { %v2839_v33 = vmax.f32 %v2777_v41, %v2815_v57  ;;  %vm6378_vm14 = vmmov %vm6377_vm3 }
 0x681   : > { %v2827_v24 = vsel %vm6369_vm10, %v2811_v49, %v2796_v21  ;;  %v2809_v2 = vrot.slane %v2785_v54, 1  ;;  %v2812_v27 = vsel %vm6370_vm11, %v2810_v14, %v2811_v49  ;;  %vm6379_vm10 = vmmov %vm6377_vm3  ;;  %vm6384_vm11 = vnez %v6262_v53 }
 0x682   : > { %v2843_v60 = vmax.f32 %v2793_v45, %v2827_v24  ;;  %v2842_v44 = vmax.f32 %v2790_v62, %v2812_v27  ;;  %v2849_v11 = vpack.c.bf16 %v2839_v33, %v2838_v40  ;;  %vm6380_vm1 = vmmov %vm6377_vm3  ;;  %v3955_v53 = vmov 0.0  }
 0x683   : > { %v2813_v4 = vsel %vm6371_vm6, %v2809_v2, %v2810_v14  ;;  %v2814_v22 = vsel %vm6372_vm5, %v2808_v47, %v2809_v2  ;;  %vm6381_vm4 = vmmov %vm6380_vm1  ;;  %vm6386_vm6 = vnez %v6288_v20  ;;  %vm6387_vm5 = vnez %v6286_v10  ;;  %3471 = vmatprep.subr.bf16.mxu0 %v3955_v53  ;;  %v2990_v10 = vld [vmem:[%s5929_s1 + $0xc8] sm:$0xff] }
 0x684   : > { %v2841_v23 = vmax.f32 %v2785_v54, %v2813_v4  ;;  %v2851_v41 = vpack.c.bf16 %v2843_v60, %v2842_v44  ;;  %v2840_v35 = vmax.f32 %v2782_v30, %v2814_v22  ;;  %vm6385_vm9 = vmpackc.low %vm6383_vm13, %vm6384_vm11  ;;  %v2991_v20 = vpack.c.bf16 %v2990_v10, %v2989_v25 }
 0x685   : > { %vm6397_vm13 = vmmov %vm6380_vm1 }
 0x686   : > { %3447 = vmatprep.subr.bf16.mxu1 %v2851_v41  ;;  %v2850_v15 = vpack.c.bf16 %v2841_v23, %v2840_v35  ;;  %3472 = vmatpush3.bf16.msra.mxu0 %v2991_v20  ;;  %vm6398_vm11 = vmmov %vm6380_vm1 }
 0x6cb   : > { %v3850_v21 = vpop.permute.xlu1 %3849 }
 0x6cc   : > { %v3852_v45 = vunpack.i.h.bf16 %v3850_v21  ;;  %v3851_v62 = vunpack.i.l.bf16 %v3850_v21 }
 0x6cd   : > { %v3855_v32 = vpop.permute.xlu0 %3854 }
 0x6ce   : > { %v3857_v28 = vunpack.i.h.bf16 %v3855_v32  ;;  %v3856_v38 = vunpack.i.l.bf16 %v3855_v32  ;;  %v2556_v16 = vsel %vm6375_vm7, %v2444_v26, %v3851_v62  ;;  %v2557_v55 = vsel %vm6377_vm3, %v2445_v48, %v3852_v45 }
 0x6cf   : > { %vm6392_vm7 = vnez %v6300_v9 }
 0x6d0   : > { %v2554_v1 = vsel %vm6373_vm12, %v2442_v0, %v3856_v38  ;;  %v2555_v30 = vsel %vm6374_vm15, %v2443_v29, %v3857_v28  ;;  %vm6389_vm12 = vnez %v6292_v42  ;;  %vm6390_vm15 = vnez %v6290_v6  ;;  %vm6394_vm3 = vmpackc.low %vm6392_vm7, %vm6393_vm8 }
 0x6d1   : > { %vm3029_vm7 = vcmask 1045509   ;;  %vm3031_vm8 = vcmask 1046534  }
 0x6d2   : > { %v3860_v49 = vpop.permute.xlu0 %3859 }
 0x6d3   : > { %v3862_v40 = vunpack.i.h.bf16 %v3860_v49  ;;  %v3861_v57 = vunpack.i.l.bf16 %v3860_v49 }
 0x6d5   : > { %v2563_v47 = vsel %vm2562_vm0, %v2554_v1, %v3861_v57  ;;  %v2564_v14 = vsel %vm2562_vm0, %v2555_v30, %v3862_v40 }
 0x6d6   : > { %v2571_v33 = vpack.c.bf16 %v2564_v14, %v2563_v47  ;;  %v3875_v61 = vpop.permute.xlu0 %3874 }
 0x6d7   : > { %v3865_v54 = vpop.permute.xlu1 %3864  ;;  %v3877_v0 = vunpack.i.h.bf16 %v3875_v61  ;;  %v3876_v27 = vunpack.i.l.bf16 %v3875_v61 }
 0x6d8   : > { %v3867_v24 = vunpack.i.h.bf16 %v3865_v54  ;;  %v3866_v2 = vunpack.i.l.bf16 %v3865_v54  ;;  %3421 = vmatprep.mubr.msk.bf16.mxu1 %vm2579_vm2, %v2571_v33 }
 0x6d9   : > { %v2558_v7 = vsel %vm6378_vm14, %v2446_v39, %v3876_v27  ;;  %v2559_v63 = vsel %vm6379_vm10, %v2447_v17, %v3877_v0  ;;  %vm3956_vm14 = vmmov 0   ;;  %vm6395_vm10 = vmmov %vm6380_vm1 }
 0x6da   : > { %v2566_v29 = vsel %vm2562_vm0, %v2557_v55, %v3867_v24  ;;  %v2565_v50 = vsel %vm2562_vm0, %v2556_v16, %v3866_v2  ;;  %3473 = vmatprep.mubr.msk.bf16.mxu0 %vm3956_vm14, %v3955_v53  ;;  %vm6402_vm14 = vmmov %vm6380_vm1 }
 0x6db   : > { %v2572_v60 = vpack.c.bf16 %v2566_v29, %v2565_v50  ;;  %v3870_v43 = vpop.permute.xlu1 %3869 }
 0x6dc   : > { %v3880_v44 = vpop.permute.xlu0 %3879  ;;  %v3872_v31 = vunpack.i.h.bf16 %v3870_v43  ;;  %v3871_v4 = vunpack.i.l.bf16 %v3870_v43 }
 0x6dd   : > { %v3882_v26 = vunpack.i.h.bf16 %v3880_v44  ;;  %v3881_v22 = vunpack.i.l.bf16 %v3880_v44  ;;  %3422 = vmatmul.mubr.msk.bf16.vlgmr.msra.gmra.mxu1 %vm2579_vm2, %v2572_v60 }
 0x6de   : > { %3448 = vmatpush3.bf16.msra.mxu1 %v2851_v41  ;;  %v2560_v34 = vsel %vm6380_vm1, %v2448_v36, %v3871_v4  ;;  %v2561_v13 = vsel %vm6381_vm4, %v2449_v8, %v3872_v31  ;;  %v3204_v36 = vld [vmem:[%s5929_s1 + $0xa8] ss:$0 sm:$0xff]  ;;  %vm6396_vm4 = vmmov %vm6380_vm1 }
 0x6df   : > { %v2567_v48 = vsel %vm2562_vm0, %v2558_v7, %v3881_v22  ;;  %v2568_v23 = vsel %vm2562_vm0, %v2559_v63, %v3882_v26  ;;  %3449 = vmatprep.subr.bf16.mxu1 %v2850_v15  ;;  %v3885_v35 = vpop.permute.xlu1 %3884 }
 0x6e0   : > { %v2573_v32 = vpack.c.bf16 %v2568_v23, %v2567_v48  ;;  %v3887_v21 = vunpack.i.h.bf16 %v3885_v35  ;;  %v3886_v5 = vunpack.i.l.bf16 %v3885_v35 }
 0x6e2   : > { %v2569_v39 = vsel %vm2562_vm0, %v2560_v34, %v3886_v5  ;;  %v2570_v12 = vsel %vm2562_vm0, %v2561_v13, %v3887_v21  ;;  %3425 = vmatprep.mubr.msk.bf16.mxu1 %vm2579_vm2, %v2573_v32  ;;  %3450 = vmatpush3.bf16.msra.mxu1 %v2850_v15  ;;  %vm6388_vm0 = vmpackc.low %vm6386_vm6, %vm6387_vm5 }
 0x6e3   : > { %v2574_v17 = vpack.c.bf16 %v2570_v12, %v2569_v39  ;;  %3451 = vmatprep.subr.bf16.mxu1 %v2849_v11  ;;  %vm6400_vm6 = vmmov %vm6380_vm1 }
 0x6e4   : > { %vm6401_vm5 = vmmov %vm6380_vm1 }
 0x6e5   : > { %3426 = vmatmul.mubr.msk.bf16.gmra.mxu1 %vm2579_vm2, %v2574_v17  ;;  %vm6391_vm2 = vmpackc.low %vm6389_vm12, %vm6390_vm15  ;;  %vm3023_vm12 = vcmask 1042434   ;;  %vm3025_vm15 = vcmask 1043459  }
 0x6e6   : > { %3452 = vmatpush3.bf16.msra.mxu1 %v2849_v11  ;;  %3463 = vmatprep.mubr.msk.bf16.mxu1 %vm6385_vm9, %v6382_v19  ;;  %vm6399_vm9 = vmmov %vm6380_vm1 }
 0x6e7   : > { %3453 = vmatprep.subr.bf16.mxu1 %v5760_v52 }
 0x6ea   : > { %3454 = vmatpush3.bf16.msra.mxu1 %v5760_v52 }
 0x6eb   : > { %3455 = vmatprep.subr.bf16.mxu1 %v5751_v58 }
 0x6ee   : > { %3456 = vmatpush3.bf16.msra.mxu1 %v5751_v58 }
 0x6ef   : > { %3457 = vmatprep.subr.bf16.mxu1 %v5744_v59 }
 0x6f2   : > { %3458 = vmatpush3.bf16.msra.mxu1 %v5744_v59 }
 0x6f3   : > { %3459 = vmatprep.subr.bf16.mxu1 %v5736_v56 }
 0x6f6   : > { %3460 = vmatpush3.bf16.msra.mxu1 %v5736_v56 }
 0x6f7   : > { %3461 = vmatprep.subr.bf16.mxu1 %v5728_v18 }
 0x6fa   : > { %3462 = vmatpush3.bf16.msra.mxu1 %v5728_v18 }
 0x6fd   : > { %3464 = vmatmul.mubr.msk.bf16.vlgmr.msra.gmra.mxu1 %vm6388_vm0, %v6382_v19  ;;  %vm3021_vm0 = vcmask 1041409  }
 0x6fe   : > { %3467 = vmatprep.mubr.msk.bf16.mxu1 %vm6391_vm2, %v6382_v19  ;;  %vm3027_vm2 = vcmask 1044484  }
 0x705   : > { %3468 = vmatmul.mubr.msk.bf16.gmra.mxu1 %vm6394_vm3, %v6382_v19  ;;  %vm3033_vm3 = vcmask 1047559  }
 0x79d   : > { %v3423_v6 = vpop.f32.mrf.mxu1 }
 0x79e   : > { %v2635_v18 = vadd.f32 %v3423_v6, %v3204_v36 }
 0x79f   : > { %v2626_v42 = vpop.f32.mrf.mxu1 }
 0x7a0   : > { %v2627_v59 = vadd.f32 %v3204_v36, %v2626_v42 }
 0x7a1   : > { %v3424_v9 = vpop.f32.mrf.mxu1 }
 0x7a2   : > { %v2638_v11 = vadd.f32 %v3424_v9, %v3204_v36 }
 0x7a3   : > { %v2629_v46 = vpop.f32.mrf.mxu1 }
 0x7a4   : > { %v2630_v38 = vadd.f32 %v3204_v36, %v2629_v46 }
 0x7a5   : > { %v3427_v3 = vpop.f32.mrf.mxu1 }
 0x7a6   : > { %v2651_v1 = vadd.f32 %v3427_v3, %v3204_v36 }
 0x7a7   : > { %v2642_v51 = vpop.f32.mrf.mxu1 }
 0x7a8   : > { %v2643_v2 = vadd.f32 %v3204_v36, %v2642_v51 }
 0x7a9   : > { %v3428_v37 = vpop.f32.mrf.mxu1 }
 0x7aa   : > { %v2654_v60 = vadd.f32 %v3428_v37, %v3204_v36 }
 0x7ab   : > { %v2645_v8 = vpop.f32.mrf.mxu1 }
 0x7ac   : > { %v2646_v48 = vadd.f32 %v3204_v36, %v2645_v8 }
 0x7bd   : > { %v3465_v56 = vpop.f32.mrf.mxu1 }
 0x7be   : > { %v2919_v58 = vadd.f32 %v3465_v56, %v2635_v18 }
 0x7bf   : > { %v2886_v52 = vpop.f32.mrf.mxu1 }
 0x7c0   : > { %v2927_v41 = vmax.f32 %v2919_v58, 0.0  ;;  %v2917_v15 = vadd.f32 %v2886_v52, %v2627_v59 }
 0x7c1   : > { %v3466_v28 = vpop.f32.mrf.mxu1 }
 0x7c2   : > { %v2947_v49 = vsel %vm6395_vm10, %v2927_v41, -inf  ;;  %v2925_v45 = vmax.f32 %v2917_v15, 0.0  ;;  %v2920_v62 = vadd.f32 %v3466_v28, %v2638_v11 }
 0x7c3   : > { %v2948_v40 = vrot.slane %v2947_v49, 4  ;;  %v2889_v57 = vpop.f32.mrf.mxu1 }
 0x7c4   : > { %v2933_v30 = vsel %vm6380_vm1, %v2925_v45, -inf  ;;  %v2928_v47 = vmax.f32 %v2920_v62, 0.0  ;;  %v2918_v14 = vadd.f32 %v2889_v57, %v2630_v38 }
 0x7c5   : > { %v2949_v54 = vmax.f32 %v2947_v49, %v2948_v40  ;;  %v2934_v33 = vrot.slane %v2933_v30, 4  ;;  %v3469_v24 = vpop.f32.mrf.mxu1 }
 0x7c6   : > { %v2954_v61 = vsel %vm6396_vm4, %v2928_v47, -inf  ;;  %v2926_v16 = vmax.f32 %v2918_v14, 0.0  ;;  %v2923_v55 = vadd.f32 %v3469_v24, %v2651_v1 }
 0x7c7   : > { %v2950_v29 = vrot.slane %v2949_v54, 2  ;;  %v2935_v50 = vmax.f32 %v2933_v30, %v2934_v33  ;;  %v2955_v0 = vrot.slane %v2954_v61, 4  ;;  %v2902_v27 = vpop.f32.mrf.mxu1 }
 0x7c8   : > { %v2940_v43 = vsel %vm6397_vm13, %v2926_v16, -inf  ;;  %v2931_v44 = vmax.f32 %v2923_v55, 0.0  ;;  %v2921_v31 = vadd.f32 %v2902_v27, %v2643_v2 }
 0x7c9   : > { %v2951_v4 = vmax.f32 %v2949_v54, %v2950_v29  ;;  %v2936_v26 = vrot.slane %v2935_v50, 2  ;;  %v2956_v22 = vmax.f32 %v2954_v61, %v2955_v0  ;;  %v2941_v7 = vrot.slane %v2940_v43, 4  ;;  %v3470_v63 = vpop.f32.mrf.mxu1 }
 0x7ca   : > { %v2975_v23 = vsel %vm6398_vm11, %v2931_v44, -inf  ;;  %v2929_v35 = vmax.f32 %v2921_v31, 0.0  ;;  %v2924_v32 = vadd.f32 %v3470_v63, %v2654_v60 }
 0x7cb   : > { %v2937_v21 = vmax.f32 %v2935_v50, %v2936_v26  ;;  %v2957_v5 = vrot.slane %v2956_v22, 2  ;;  %v2942_v34 = vmax.f32 %v2940_v43, %v2941_v7  ;;  %v2905_v13 = vpop.f32.mrf.mxu1  ;;  %v2976_v39 = vrot.slane %v2975_v23, 4 }
 0x7cc   : > { %v2961_v12 = vsel %vm6399_vm9, %v2929_v35, -inf  ;;  %v2932_v17 = vmax.f32 %v2924_v32, 0.0  ;;  %v2922_v19 = vadd.f32 %v2905_v13, %v2646_v48  ;;  %v2952_v53 = vrot.slane %v2951_v4, 1 }
 0x7cd   : > { %v2938_v25 = vrot.slane %v2937_v21, 1  ;;  %v2958_v10 = vmax.f32 %v2956_v22, %v2957_v5  ;;  %v2943_v20 = vrot.slane %v2942_v34, 2  ;;  %v2977_v6 = vmax.f32 %v2975_v23, %v2976_v39 }
 0x7ce   : > { %v2962_v42 = vrot.slane %v2961_v12, 4  ;;  %v2982_v9 = vsel %vm6400_vm6, %v2932_v17, -inf  ;;  %v2930_v46 = vmax.f32 %v2922_v19, 0.0  ;;  %v2953_v56 = vmax.f32 %v2951_v4, %v2952_v53 }
 0x7cf   : > { %v2939_v3 = vmax.f32 %v2937_v21, %v2938_v25  ;;  %v2944_v51 = vmax.f32 %v2942_v34, %v2943_v20  ;;  %v2978_v37 = vrot.slane %v2977_v6, 2  ;;  %v2983_v8 = vrot.slane %v2982_v9, 4 }
 0x7d0   : > { %v2963_v36 = vmax.f32 %v2961_v12, %v2962_v42  ;;  %v2968_v18 = vsel %vm6401_vm5, %v2930_v46, -inf  ;;  %v2959_v59 = vrot.slane %v2958_v10, 1  ;;  %v2995_v40 = vpack.c.bf16 %v2953_v56, %v2953_v56  ;;  %v3226_v12 = vld [vmem:[%s5929_s1 + $0xd0] ss:$0 sm:$0xff] }
 0x7d1   : > { %v2945_v58 = vrot.slane %v2944_v51, 1  ;;  %v2979_v52 = vmax.f32 %v2977_v6, %v2978_v37  ;;  %v2984_v41 = vmax.f32 %v2982_v9, %v2983_v8  ;;  %v2969_v15 = vrot.slane %v2968_v18, 4 }
 0x7d2   : > { %v2964_v11 = vrot.slane %v2963_v36, 2  ;;  %v2993_v28 = vpack.c.bf16 %v2939_v3, %v2939_v3  ;;  %v2960_v57 = vmax.f32 %v2958_v10, %v2959_v59  ;;  %v3015_v50 = vunpack.c.l.b16 %v2995_v40 }
 0x7d3   : > { %v2946_v38 = vmax.f32 %v2944_v51, %v2945_v58  ;;  %v2985_v45 = vrot.slane %v2984_v41, 2  ;;  %v2970_v62 = vmax.f32 %v2968_v18, %v2969_v15  ;;  %v2980_v30 = vrot.slane %v2979_v52, 1 }
 0x7d4   : > { %v2965_v49 = vmax.f32 %v2963_v36, %v2964_v11  ;;  %v3013_v33 = vunpack.c.l.b16 %v2993_v28  ;;  %v2996_v55 = vpack.c.bf16 %v2960_v57, %v2960_v57 }
 0x7d5   : > { %v2994_v1 = vpack.c.bf16 %v2946_v38, %v2946_v38  ;;  %v2986_v14 = vmax.f32 %v2984_v41, %v2985_v45  ;;  %v2971_v54 = vrot.slane %v2970_v62, 2  ;;  %v2981_v0 = vmax.f32 %v2979_v52, %v2980_v30 }
 0x7d6   : > { %v2966_v47 = vrot.slane %v2965_v49, 1  ;;  %v3016_v31 = vunpack.c.l.b16 %v2996_v55 }
 0x7d7   : > { %v3014_v24 = vunpack.c.l.b16 %v2994_v1  ;;  %v2987_v61 = vrot.slane %v2986_v14, 1  ;;  %v2972_v16 = vmax.f32 %v2970_v62, %v2971_v54  ;;  %v2999_v26 = vpack.c.bf16 %v2981_v0, %v2981_v0 }
 0x7d8   : > { %v2967_v2 = vmax.f32 %v2965_v49, %v2966_v47 }
 0x7d9   : > { %v3022_v29 = vsel %vm3021_vm0, %v3014_v24, %v3013_v33  ;;  %v2988_v60 = vmax.f32 %v2986_v14, %v2987_v61  ;;  %v2973_v43 = vrot.slane %v2972_v16, 1  ;;  %v3019_v35 = vunpack.c.l.b16 %v2999_v26 }
 0x7da   : > { %v2997_v27 = vpack.c.bf16 %v2967_v2, %v2967_v2  ;;  %v3024_v44 = vsel %vm3023_vm12, %v3015_v50, %v3022_v29 }
 0x7db   : > { %v2974_v4 = vmax.f32 %v2972_v16, %v2973_v43  ;;  %v3026_v7 = vsel %vm3025_vm15, %v3016_v31, %v3024_v44  ;;  %v3000_v63 = vpack.c.bf16 %v2988_v60, %v2988_v60 }
 0x7dc   : > { %v3017_v22 = vunpack.c.l.b16 %v2997_v27 }
 0x7dd   : > { %v2998_v48 = vpack.c.bf16 %v2974_v4, %v2974_v4  ;;  %v3020_v21 = vunpack.c.l.b16 %v3000_v63 }
 0x7de   : > { %v3028_v32 = vsel %vm3027_vm2, %v3017_v22, %v3026_v7 }
 0x7df   : > { %v3018_v23 = vunpack.c.l.b16 %v2998_v48 }
 0x7e1   : > { %v3030_v5 = vsel %vm3029_vm7, %v3018_v23, %v3028_v32 }
 0x7e2   : > { %v3032_v34 = vsel %vm3031_vm8, %v3019_v35, %v3030_v5 }
 0x7e3   : > { %v3034_v13 = vsel %vm3033_vm3, %v3020_v21, %v3032_v34 }
 0x7e4   : > { %v3035_v39 = vpack.c.b16 %v3034_v13, %v3034_v13 }
 0x7e6   : > { %3474 = vmatmul.mubr.msk.bf16.vlgmr.msra.gmra.mxu0 %vm6402_vm14, %v3035_v39 }
 0x8a6   : > { %v3073_v17 = vpop.f32.mrf.mxu0 }
 0x8a7   : > { %v3074_v19 = vadd.f32 %v3226_v12, %v3073_v17 }
 0x8a8   : > { %v3475_v53 = vpop.f32.mrf.mxu0 }
 0x8a9   : > { %3079 = vst [vmem:[%s137_s4] sm:$0xff] %v3074_v19 }
 0x8aa   : > { %v3076_v25 = vpop.f32.mrf.mxu0 }
 0x8ab   : > { %3901 = shalt.err (!%p3898_p3)
}
 0x8ac   : > { %s3902_s17 = scalar_lea.hbm %s5887_s8, 128  ;;  %s3906_s24 = scalar_lea.hbm %s5930_s2, 256 }
 0x8ad   : > { %p3903_p4 = scmp.ne.s32.totalorder %s5887_s8, %s3902_s17  ;;  %p3907_p9 = scmp.lt.s32.totalorder %s5887_s8, %s5930_s2 }
 0x8ae   : > { %p3908_p10 = scmp.lt.s32.totalorder %s3906_s24, %s3902_s17 }
 0x8af   : > { %p3904_p7 = pnand %p3903_p4, %p4011_p5 }
 0x8b0   : > { %p3909_p11 = por %p3908_p10, %p3907_p9 }
 0x8b1   : > { %p3905_p8 = pneg %p3904_p7 }
 0x8b3   : > { %p3910_p12 = pnand %p3909_p11, %p3905_p8 }
 0x8b5   : > { %3913 = shalt.err (!%p3910_p12)
}
 0x8b6   : > { %3482 = dma.vmem_to_hbm [thread:$0]  (%p4011_p5), %s5889_s5, 128, %s5887_s8, %s3081_s14   ;;  %v3476_v10 = vpop.f32.mrf.mxu0 }
 0x8b7 PF: > { %p3488_p13 = scmp.ge.s32.totalorder %s3948_s12, 2  ;;  %s3106_s28 = sand.u32 1, %s3936_s9  }
 0x8b8   : > { %s3107_s29 = scalar_lea.sflag [#allocation3], %s3106_s28 }
 0x8b9   : > { %p3485_p0 = pnand %p3488_p13, %p4015_p6 }
 0x8bb   : > { %p3486_p1 = pneg %p3485_p0 }
 0x8bd   : > { %3931 = dma.done.wait (%p3486_p1), %s3107_s29, 128  }
 0x8be   : > { %3933 = vsyncadd (%p3486_p1), %s3107_s29, 4294967168  ;;  %p12_p2 = scmp.ge.s32.totalorder %s3998_s15, 4   ;;  %s6403_s9 = smov %s3940_s10 }
 0x8bf   : > { %s6404_s10 = smov %s3944_s11  ;;  %s6405_s11 = smov %s4009_s18 }
 0x8c0   : > { %s6406_s12 = smov %s3998_s15  ;;  %14 = sbr.rel (!%p12_p2) target bundleno = 3 (0x3), region = 63 }
 0x8c5   :  { %3112 = vsyncpa [#allocation3], 1 }
 0x8c6   :  { %3114 = vsyncpa [#allocation3 + $0x1], 1 }

</bundles_post_ra>
